<compile_context>
chip_gen: v5e
topology: v5e:2x2
jax: 0.10.0
libtpu: 0.0.40
codegen_flags: <defaults>
</compile_context>

<pallas_src>
import functools

import jax
import jax.numpy as jnp
from jax import lax
from jax.experimental import pallas as pl
from jax.experimental.pallas import tpu as pltpu


DP_PAD = 16          # dp (3 coords) zero-padded to 16 channels (bf16 sublane pack)
BLOCKS = [1, 2, 3, 2, 2]
STRIDES = [1, 4, 4, 4, 4]
EXPANSION = 4


def _round_up(x, m):
    return (x + m - 1) // m * m


def _lane_plan(L):
    """Lane tiling policy.

    Returns (tl, nb, use_pallas).  Prefer exactly 2 grid steps (one tile per
    v7x TensorCore) with 128-aligned tiles; cap tiles at 1024 lanes so the
    fused InvResMLP f32 intermediate stays well inside v7x's VMEM; below 128
    lanes the pallas launch is not worth it -> plain XLA fallback.
    """
    if L % 128 != 0:
        return L, 1, False
    tl, nb = L, 1
    if L >= 256 and (L // 2) % 128 == 0:
        tl, nb = L // 2, 2
    while tl > 1024 and tl % 256 == 0:
        tl //= 2
        nb *= 2
    return tl, nb, True


# ----------------------------- Pallas kernels --------------------------------

def _conv_bn_kernel(x_ref, w_ref, b_ref, o_ref, *, act):
    # x: (Cin, tl) bf16, w: (Cout, Cin) bf16 (BN scale folded), b: (Cout, 1) f32
    y = jnp.dot(w_ref[...], x_ref[...], preferred_element_type=jnp.float32)
    y = y + b_ref[...]
    if act:
        y = jnp.maximum(y, 0.0)
    o_ref[...] = y.astype(o_ref.dtype)


def _sa_group_max_kernel(g_ref, w_ref, b_ref, o_ref, *, nsample, tl):
    # g: (Cin, K*tl) — neighbor axis folded into lanes.  One MXU matmul over
    # the whole slab (amortizes the weight push / pipeline fill), then max over
    # neighbors via static 128-aligned lane slices; bias + ReLU applied once
    # after the max (relu(max_k(y_k) + b) == max_k(relu(y_k + b))).
    y = jnp.dot(w_ref[...], g_ref[...], preferred_element_type=jnp.float32)
    h = y[:, 0:tl]
    for k in range(1, nsample):
        h = jnp.maximum(h, y[:, k * tl:(k + 1) * tl])
    o_ref[...] = jnp.maximum(h + b_ref[...], 0.0).astype(o_ref.dtype)


def _invres_block_kernel(g_ref, f_ref, wa_ref, ba_ref, w1_ref, b1_ref,
                         w2_ref, b2_ref, o_ref, *, nsample, tl):
    # Fused InvResMLP block: agg conv (one matmul over neighbor-folded lanes)
    # + neighbor max -> pw1 -> pw2 -> residual add -> ReLU.  h and the 4x
    # expanded intermediate stay in VMEM/vregs; bf16 only at MXU inputs and
    # the final store, all epilogue math in f32.
    y = jnp.dot(wa_ref[...], g_ref[...], preferred_element_type=jnp.float32)
    h = y[:, 0:tl]
    for k in range(1, nsample):
        h = jnp.maximum(h, y[:, k * tl:(k + 1) * tl])
    h = jnp.maximum(h + ba_ref[...], 0.0)
    t = jnp.dot(w1_ref[...], h.astype(jnp.bfloat16),
                preferred_element_type=jnp.float32)
    t = jnp.maximum(t + b1_ref[...], 0.0)
    z = jnp.dot(w2_ref[...], t.astype(jnp.bfloat16),
                preferred_element_type=jnp.float32)
    z = z + b2_ref[...] + f_ref[...].astype(jnp.float32)
    o_ref[...] = jnp.maximum(z, 0.0).astype(o_ref.dtype)


def _dec_mlp_kernel(s_ref, i_ref, w1a_ref, w1b_ref, b1_ref, w2_ref, b2_ref,
                    o_ref):
    # Fused decoder mlp1 -> mlp2.  The skip/interp concat is replaced by two
    # partial matmuls accumulating into the same f32 result.
    t = jnp.dot(w1a_ref[...], s_ref[...], preferred_element_type=jnp.float32)
    t = t + jnp.dot(w1b_ref[...], i_ref[...], preferred_element_type=jnp.float32)
    t = jnp.maximum(t + b1_ref[...], 0.0)
    y = jnp.dot(w2_ref[...], t.astype(jnp.bfloat16),
                preferred_element_type=jnp.float32)
    o_ref[...] = jnp.maximum(y + b2_ref[...], 0.0).astype(o_ref.dtype)


# ----------------------------- kernel wrappers --------------------------------

def conv1d_bn(x, p, act=True, out_dtype=jnp.bfloat16):
    """1x1 Conv1d (bias=False) + folded BatchNorm1d (+ optional ReLU).
    x: (Cin, L) bf16 with L = B * npoints on the lane axis."""
    Cin, L = x.shape
    Cout = p["w"].shape[0]
    tl, nb, use_pallas = _lane_plan(L)
    if not use_pallas:
        y = jnp.dot(p["w"], x, preferred_element_type=jnp.float32) + p["bias"]
        if act:
            y = jnp.maximum(y, 0.0)
        return y.astype(out_dtype)
    return pl.pallas_call(
        functools.partial(_conv_bn_kernel, act=act),
        out_shape=jax.ShapeDtypeStruct((Cout, L), out_dtype),
        grid=(nb,),
        in_specs=[
            pl.BlockSpec((Cin, tl), lambda i: (0, i)),
            pl.BlockSpec((Cout, Cin), lambda i: (0, 0)),
            pl.BlockSpec((Cout, 1), lambda i: (0, 0)),
        ],
        out_specs=pl.BlockSpec((Cout, tl), lambda i: (0, i)),
        compiler_params=pltpu.CompilerParams(dimension_semantics=("parallel",)),
    )(x, p["w"], p["bias"])


def _group_max_ref(g, w, b, nsample):
    """XLA fallback (tiny lane counts): same math as the Pallas group kernels."""
    Cin, KL = g.shape
    L = KL // nsample
    gk = g.reshape(Cin, nsample, L)
    y = jnp.einsum('oc,ckl->okl', w, gk, preferred_element_type=jnp.float32)
    return jnp.maximum(jnp.max(y, axis=1) + b, 0.0)


def sa_group_conv_max(g, p, nsample):
    """Shared conv-bn-relu over neighbor-folded grouped features + max over
    neighbors.  g: (Cin, K*L) with lanes laid out [lane-block, neighbor, point].
    Returns (Cout, L)."""
    Cin, KL = g.shape
    L = KL // nsample
    Cout = p["w"].shape[0]
    tl, nb, use_pallas = _lane_plan(L)
    if not use_pallas:
        return _group_max_ref(g, p["w"], p["bias"], nsample).astype(jnp.bfloat16)
    return pl.pallas_call(
        functools.partial(_sa_group_max_kernel, nsample=nsample, tl=tl),
        out_shape=jax.ShapeDtypeStruct((Cout, L), jnp.bfloat16),
        grid=(nb,),
        in_specs=[
            pl.BlockSpec((Cin, nsample * tl), lambda i: (0, i)),
            pl.BlockSpec((Cout, Cin), lambda i: (0, 0)),
            pl.BlockSpec((Cout, 1), lambda i: (0, 0)),
        ],
        out_specs=pl.BlockSpec((Cout, tl), lambda i: (0, i)),
        compiler_params=pltpu.CompilerParams(dimension_semantics=("parallel",)),
    )(g, p["w"], p["bias"])


def invres_block(g, f, p_agg, p1, p2, nsample):
    """Fused InvResMLP block: relu(pw2(relu(pw1(relu(max_k W_agg@g_k + b)))) + f).
    g: (Cin, K*L) neighbor-folded; f: (C, L) residual input."""
    C, L = f.shape
    Cin = p_agg["w"].shape[1]
    Ce = p1["w"].shape[0]
    tl, nb, use_pallas = _lane_plan(L)
    if not use_pallas:
        h = _group_max_ref(g, p_agg["w"], p_agg["bias"], nsample)
        t = jnp.dot(p1["w"], h.astype(jnp.bfloat16),
                    preferred_element_type=jnp.float32)
        t = jnp.maximum(t + p1["bias"], 0.0)
        z = jnp.dot(p2["w"], t.astype(jnp.bfloat16),
                    preferred_element_type=jnp.float32)
        z = z + p2["bias"] + f.astype(jnp.float32)
        return jnp.maximum(z, 0.0).astype(jnp.bfloat16)
    return pl.pallas_call(
        functools.partial(_invres_block_kernel, nsample=nsample, tl=tl),
        out_shape=jax.ShapeDtypeStruct((C, L), jnp.bfloat16),
        grid=(nb,),
        in_specs=[
            pl.BlockSpec((Cin, nsample * tl), lambda i: (0, i)),
            pl.BlockSpec((C, tl), lambda i: (0, i)),
            pl.BlockSpec((C, Cin), lambda i: (0, 0)),
            pl.BlockSpec((C, 1), lambda i: (0, 0)),
            pl.BlockSpec((Ce, C), lambda i: (0, 0)),
            pl.BlockSpec((Ce, 1), lambda i: (0, 0)),
            pl.BlockSpec((C, Ce), lambda i: (0, 0)),
            pl.BlockSpec((C, 1), lambda i: (0, 0)),
        ],
        out_specs=pl.BlockSpec((C, tl), lambda i: (0, i)),
        compiler_params=pltpu.CompilerParams(dimension_semantics=("parallel",)),
    )(g, f, p_agg["w"], p_agg["bias"], p1["w"], p1["bias"], p2["w"], p2["bias"])


def dec_mlp(skip_f, interp_f, p1, p2):
    """Fused decoder mlp1 -> mlp2.  Skip & interpolated features stay separate
    refs; w1 is split column-wise into two partial matmuls (no HBM concat)."""
    Cs, L = skip_f.shape
    Ci = interp_f.shape[0]
    C1 = p1["w"].shape[0]
    C2 = p2["w"].shape[0]
    w1a = p1["w"][:, :Cs]
    w1b = p1["w"][:, Cs:]
    tl, nb, use_pallas = _lane_plan(L)
    if not use_pallas:
        t = jnp.dot(w1a, skip_f, preferred_element_type=jnp.float32)
        t = t + jnp.dot(w1b, interp_f, preferred_element_type=jnp.float32)
        t = jnp.maximum(t + p1["bias"], 0.0)
        y = jnp.dot(p2["w"], t.astype(jnp.bfloat16),
                    preferred_element_type=jnp.float32)
        return jnp.maximum(y + p2["bias"], 0.0).astype(jnp.bfloat16)
    return pl.pallas_call(
        _dec_mlp_kernel,
        out_shape=jax.ShapeDtypeStruct((C2, L), jnp.bfloat16),
        grid=(nb,),
        in_specs=[
            pl.BlockSpec((Cs, tl), lambda i: (0, i)),
            pl.BlockSpec((Ci, tl), lambda i: (0, i)),
            pl.BlockSpec((C1, Cs), lambda i: (0, 0)),
            pl.BlockSpec((C1, Ci), lambda i: (0, 0)),
            pl.BlockSpec((C1, 1), lambda i: (0, 0)),
            pl.BlockSpec((C2, C1), lambda i: (0, 0)),
            pl.BlockSpec((C2, 1), lambda i: (0, 0)),
        ],
        out_specs=pl.BlockSpec((C2, tl), lambda i: (0, i)),
        compiler_params=pltpu.CompilerParams(dimension_semantics=("parallel",)),
    )(skip_f, interp_f, w1a, w1b, p1["bias"], p2["w"], p2["bias"])


# ----------------------------- parameters -------------------------------------

def make_conv_bn(key, cin, cout):
    kw, kg, kb, km, kv = jax.random.split(key, 5)
    w = jax.random.normal(kw, (cout, cin), jnp.float32) / jnp.sqrt(float(cin))
    gamma = 1.0 + 0.1 * jax.random.normal(kg, (cout,), jnp.float32)
    beta = 0.1 * jax.random.normal(kb, (cout,), jnp.float32)
    mean = 0.1 * jax.random.normal(km, (cout,), jnp.float32)
    var = jnp.abs(jax.random.normal(kv, (cout,), jnp.float32)) + 0.5
    # BatchNorm folded into the conv weight (eval-mode running statistics);
    # only the bias survives as an epilogue add.
    # TODO(synk): PyTorch BatchNorm in train mode uses batch stats; eval-mode
    # folding is used here.
    scale = gamma / jnp.sqrt(var + 1e-5)
    bias = beta - mean * scale
    return {"w": (w * scale[:, None]).astype(jnp.bfloat16),
            "bias": bias.reshape(cout, 1)}


def build_params(cfg, out_dim, key):
    w = cfg.width
    stem_cin = _round_up(cfg.in_channels, 16)   # zero-padded input channels
    keys = iter(jax.random.split(key, 128))
    params = {"stem": make_conv_bn(next(keys), stem_cin, w)}
    chans = [w, 2 * w, 4 * w, 8 * w, 16 * w]
    enc = []
    for s in range(1, 5):
        cin, cout = chans[s - 1], chans[s]
        stage = {"sa": make_conv_bn(next(keys), cin + DP_PAD, cout), "blocks": []}
        for _ in range(BLOCKS[s] - 1):
            stage["blocks"].append({
                "agg": make_conv_bn(next(keys), cout + DP_PAD, cout),
                "pw1": make_conv_bn(next(keys), cout, cout * EXPANSION),
                "pw2": make_conv_bn(next(keys), cout * EXPANSION, cout),
            })
        enc.append(stage)
    params["enc"] = enc
    dec = []
    dec_out = [8 * w, 4 * w, 2 * w, w]
    skips = [8 * w, 4 * w, 2 * w, w]
    prev = 16 * w
    for i in range(4):
        cin = skips[i] + prev          # columns: [skip | previous-level]
        cout = dec_out[i]
        dec.append({"mlp1": make_conv_bn(next(keys), cin, cout),
                    "mlp2": make_conv_bn(next(keys), cout, cout)})
        prev = cout
    params["dec"] = dec
    layer_dims = [w, 2 * w, 4 * w, 8 * w, 16 * w, 8 * w, 4 * w, 2 * w, w]
    params["f_fc"] = make_conv_bn(next(keys), layer_dims[cfg.f_layer - 1], out_dim)
    params["c_fc"] = make_conv_bn(next(keys), layer_dims[cfg.c_layer - 1], out_dim)
    return params


# ----------------------------- JAX glue ----------------------------------------

def build_group_features(query_xyz, src_xyz, src_feats, nsample, radius, nb):
    """dp_fj grouped neighbor features with the neighbor axis folded into lanes.

    Returns (DP_PAD + C, nb * K * tl) bf16 where tl = (B*M)//nb and the lane
    order is [lane-block, neighbor, point-within-block], so a Pallas BlockSpec
    of (Cin, K*tl) per grid step sees all K neighbor slabs for its points."""
    B, M, _ = query_xyz.shape
    S = src_xyz.shape[1]
    C = src_feats.shape[0]
    L = B * M
    tl = L // nb
    # TODO(synk): ball-query within `radius` replaced by kNN (deficit padded by
    # repeating the nearest neighbor, like ballquery does).
    d2 = jnp.sum((query_xyz[:, :, None, :] - src_xyz[:, None, :, :]) ** 2, axis=-1)
    k = min(nsample, S)
    _, idx = lax.top_k(-d2, k)                                   # (B, M, k)
    if k < nsample:
        idx = jnp.concatenate([idx] + [idx[:, :, :1]] * (nsample - k), axis=-1)
    idx_k = jnp.transpose(idx, (2, 0, 1)).reshape(nsample, L)    # (K, B*M)
    flat_idx = idx_k + jnp.repeat(jnp.arange(B) * S, M)[None, :]
    # TODO(synk): gather stays in XLA; for very large clouds it could be moved
    # in-kernel with scalar-prefetched indices + manual DMA.
    g_f = jnp.take(src_feats, flat_idx, axis=1)                  # (C, K, B*M)
    g_xyz = jnp.take(src_xyz.reshape(B * S, 3), flat_idx, axis=0)  # (K, B*M, 3)
    dp = (g_xyz - query_xyz.reshape(L, 3)[None]) * (1.0 / radius)  # normalize_dp
    dp = jnp.transpose(dp, (2, 0, 1))                            # (3, K, B*M)
    dp = jnp.pad(dp, ((0, DP_PAD - 3), (0, 0), (0, 0)))          # sublane pad
    g = jnp.concatenate([dp.astype(jnp.bfloat16), g_f], axis=0)  # (Cin, K, B*M)
    cin = DP_PAD + C
    # fold neighbors into lanes: (Cin, K, nb, tl) -> (Cin, nb, K, tl) -> 2D
    g = g.reshape(cin, nsample, nb, tl).transpose(0, 2, 1, 3)
    return g.reshape(cin, L * nsample)


def three_interpolate(fine_xyz, coarse_xyz, coarse_feats):
    """Inverse-distance-weighted 3-NN feature interpolation (decoder FP)."""
    B, M, _ = fine_xyz.shape
    S = coarse_xyz.shape[1]
    d2 = jnp.sum((fine_xyz[:, :, None, :] - coarse_xyz[:, None, :, :]) ** 2, -1)
    k = min(3, S)
    neg, idx = lax.top_k(-d2, k)
    # TODO(synk): reference three_nn weighting is 1/(dist+eps) on whatever
    # distance the CUDA op returns (often squared); squared distance used here.
    wgt = 1.0 / (-neg + 1e-8)
    wgt = wgt / jnp.sum(wgt, axis=-1, keepdims=True)             # (B, M, k)
    flat_idx = idx + (jnp.arange(B) * S)[:, None, None]          # (B, M, k)
    gf = jnp.take(coarse_feats, flat_idx, axis=1)                # (C, B, M, k)
    out = jnp.sum(gf.astype(jnp.float32) * wgt[None], axis=-1)   # (C, B, M)
    return out.reshape(-1, B * M).astype(jnp.bfloat16)


# ----------------------------- PointNext forward --------------------------------

def pointnext_forward(params, cfg, out_dim, x):
    B, N, _ = x.shape
    K = cfg.nsample
    stem_cin = _round_up(cfg.in_channels, 16)

    # f_input = cat(x, x[:, :, 2:]) -> channels-first, flattened over batch,
    # zero-padded to a sublane-friendly channel count, cast to bf16.
    f_in = jnp.concatenate([x, x[:, :, 2:]], axis=-1)                 # (B, N, Cin)
    f_in = jnp.transpose(f_in, (2, 0, 1)).reshape(cfg.in_channels, B * N)
    f_in = jnp.pad(f_in, ((0, stem_cin - cfg.in_channels), (0, 0)))
    f_in = f_in.astype(jnp.bfloat16)

    # ---- encoder --------------------------------------------------------------
    pts = [x]                                                          # (B, S, 3)
    feats = [conv1d_bn(f_in, params["stem"], act=True)]                # (C, B*S)
    radius = cfg.radius
    for s in range(1, 5):
        prev_xyz, prev_f = pts[-1], feats[-1]
        stride = STRIDES[s]
        # TODO(synk): furthest-point-sampling replaced by strided subsampling.
        new_xyz = prev_xyz[:, ::stride, :]
        L_new = B * new_xyz.shape[1]
        _, nb, _ = _lane_plan(L_new)
        stage = params["enc"][s - 1]
        g = build_group_features(new_xyz, prev_xyz, prev_f, K, radius, nb)
        f = sa_group_conv_max(g, stage["sa"], K)                       # SA downsample
        radius = radius * 2.0
        for blk in stage["blocks"]:                                    # InvResMLP
            g = build_group_features(new_xyz, new_xyz, f, K, radius, nb)
            f = invres_block(g, f, blk["agg"], blk["pw1"], blk["pw2"], K)
        pts.append(new_xyz)
        feats.append(f)

    def enc_layer(li):
        return (feats[li - 1], pts[li - 1]) if li <= 5 else (None, None)

    c_feats, c_points = enc_layer(cfg.c_layer)
    f_feats, f_points = enc_layer(cfg.f_layer)

    # ---- decoder (only when a requested layer lives in the decoder) -----------
    if c_feats is None or f_feats is None:
        dec_feats, dec_pts = {}, {}
        cur_f = feats[4]
        for i in range(4):                                             # layers 6..9
            layer_idx = 6 + i
            fine_idx = 3 - i
            fine_xyz = pts[fine_idx]
            interp = three_interpolate(fine_xyz, pts[4 - i], cur_f)
            cur_f = dec_mlp(feats[fine_idx], interp,
                            params["dec"][i]["mlp1"], params["dec"][i]["mlp2"])
            dec_feats[layer_idx] = cur_f
            dec_pts[layer_idx] = fine_xyz
        if c_feats is None:
            c_feats, c_points = dec_feats[cfg.c_layer], dec_pts[cfg.c_layer]
        if f_feats is None:
            f_feats, f_points = dec_feats[cfg.f_layer], dec_pts[cfg.f_layer]

    # ---- heads -----------------------------------------------------------------
    def unflatten(y):                               # (Cout, B*M) -> (B, Cout, M)
        Cout, L = y.shape
        return jnp.transpose(y.reshape(Cout, B, L // B), (1, 0, 2))

    c_ebds_output = unflatten(
        conv1d_bn(c_feats, params["c_fc"], act=False, out_dtype=jnp.float32))
    f_ebds_output = unflatten(
        conv1d_bn(f_feats, params["f_fc"], act=False, out_dtype=jnp.float32))
    c_points = c_points[:, :, :3]
    f_points = f_points[:, :, :3]
    f_mask = jnp.ones((f_ebds_output.shape[0], f_ebds_output.shape[2]), jnp.bool_)
    c_mask = jnp.ones((c_ebds_output.shape[0], c_ebds_output.shape[2]), jnp.bool_)
    return f_ebds_output, c_ebds_output, f_points, c_points, f_mask, c_mask


# ----------------------------- main ----------------------------------------------

class Config:
    in_channels = 4
    width = 16
    radius = 0.15
    nsample = 8
    f_layer = 8   # decoder layer -> 2*width channels at N/4 points
    c_layer = 4   # encoder layer -> 8*width channels at N/64 points


if __name__ == "__main__":
    cfg = Config()
    out_dim = 32
    B, N = 2, 512

    key = jax.random.PRNGKey(0)
    kx, kp = jax.random.split(key)
    x = jax.random.uniform(kx, (B, N, 3), jnp.float32)
    params = build_params(cfg, out_dim, kp)

    fwd = jax.jit(lambda prm, xx: pointnext_forward(prm, cfg, out_dim, xx))
    out = fwd(params, x)
    jax.block_until_ready(out)

    f_ebd, c_ebd, f_pts, c_pts, f_mask, c_mask = out
    assert f_ebd.shape == (B, out_dim, N // 4)
    assert c_ebd.shape == (B, out_dim, N // 64)
    assert f_pts.shape == (B, N // 4, 3) and c_pts.shape == (B, N // 64, 3)
    assert f_mask.shape == (B, N // 4) and c_mask.shape == (B, N // 64)
    assert bool(jnp.isfinite(f_ebd).all()) and bool(jnp.isfinite(c_ebd).all())
    print("KERNEL_OK")
</pallas_src>

<mosaic_0001>
module attributes {stable_mosaic.version = 11 : i64} {
  func.func @_conv_bn_kernel(%arg0: i32, %arg1: memref<16x512xbf16, #tpu.memory_space<vmem>>, %arg2: memref<16x16xbf16, #tpu.memory_space<vmem>>, %arg3: memref<16x1xf32, #tpu.memory_space<vmem>>, %arg4: memref<16x512xbf16, #tpu.memory_space<vmem>>) attributes {dimension_semantics = [#tpu.dimension_semantics<parallel>], iteration_bounds = array<i64: 2>, scalar_prefetch = 0 : i64, scratch_operands = 0 : i64, tpu.core_type = #tpu.core_type<tc>, window_params = [{transform_indices = @transform_0, window_bounds = array<i64: 16, 512>}, {pipeline_mode = #tpu.pipeline_mode<synchronous>, transform_indices = @transform_1, window_bounds = array<i64: 16, 16>}, {pipeline_mode = #tpu.pipeline_mode<synchronous>, transform_indices = @transform_2, window_bounds = array<i64: 16, 1>}, {transform_indices = @transform_3, window_bounds = array<i64: 16, 512>}]} {
    %c0 = arith.constant 0 : index
    %c0_0 = arith.constant 0 : index
    %0 = vector.load %arg2[%c0, %c0_0] : memref<16x16xbf16, #tpu.memory_space<vmem>>, vector<16x16xbf16>
    %c0_1 = arith.constant 0 : index
    %c0_2 = arith.constant 0 : index
    %1 = vector.load %arg1[%c0_1, %c0_2] : memref<16x512xbf16, #tpu.memory_space<vmem>>, vector<16x512xbf16>
    %cst = arith.constant dense<0.000000e+00> : vector<16x512xf32>
    %2 = tpu.matmul %0, %1, %cst {dimension_numbers = #tpu.dot_dimension_numbers<[1], [0], [0], [1], [0, 0, 1, 1], [], []>} : vector<16x16xbf16>, vector<16x512xbf16>, vector<16x512xf32> -> vector<16x512xf32>
    %c0_3 = arith.constant 0 : index
    %c0_4 = arith.constant 0 : index
    %3 = vector.load %arg3[%c0_3, %c0_4] : memref<16x1xf32, #tpu.memory_space<vmem>>, vector<16x1xf32>
    %4 = vector.broadcast %3 : vector<16x1xf32> to vector<16x512xf32>
    %5 = arith.addf %2, %4 : vector<16x512xf32>
    %cst_5 = arith.constant 0.000000e+00 : f32
    %6 = vector.broadcast %cst_5 : f32 to vector<16x512xf32>
    %7 = arith.maximumf %5, %6 : vector<16x512xf32>
    %8 = arith.truncf %7 : vector<16x512xf32> to vector<16x512xbf16>
    %c0_6 = arith.constant 0 : index
    %c0_7 = arith.constant 0 : index
    %9 = vector.load %arg4[%c0_6, %c0_7] : memref<16x512xbf16, #tpu.memory_space<vmem>>, vector<16x512xbf16>
    tpu.vector_store %arg4[%c0_6, %c0_7], %8 {strides = array<i32>} : memref<16x512xbf16, #tpu.memory_space<vmem>>, vector<16x512xbf16>,
    return
  }
  func.func @transform_0(%arg0: i32) -> (i32, i32) {
    %c0_i32 = arith.constant 0 : i32
    %c0_i32_0 = arith.constant 0 : i32
    return %c0_i32, %arg0 : i32, i32
  }
  func.func @transform_1(%arg0: i32) -> (i32, i32) {
    %c0_i32 = arith.constant 0 : i32
    %c0_i32_0 = arith.constant 0 : i32
    %c0_i32_1 = arith.constant 0 : i32
    return %c0_i32, %c0_i32_0 : i32, i32
  }
  func.func @transform_2(%arg0: i32) -> (i32, i32) {
    %c0_i32 = arith.constant 0 : i32
    %c0_i32_0 = arith.constant 0 : i32
    %c0_i32_1 = arith.constant 0 : i32
    return %c0_i32, %c0_i32_0 : i32, i32
  }
  func.func @transform_3(%arg0: i32) -> (i32, i32) {
    %c0_i32 = arith.constant 0 : i32
    %c0_i32_0 = arith.constant 0 : i32
    return %c0_i32, %arg0 : i32, i32
  }
}

module attributes {stable_mosaic.version = 11 : i64} {
  func.func @_sa_group_max_kernel(%arg0: i32, %arg1: memref<32x1024xbf16, #tpu.memory_space<vmem>>, %arg2: memref<32x32xbf16, #tpu.memory_space<vmem>>, %arg3: memref<32x1xf32, #tpu.memory_space<vmem>>, %arg4: memref<32x128xbf16, #tpu.memory_space<vmem>>) attributes {dimension_semantics = [#tpu.dimension_semantics<parallel>], iteration_bounds = array<i64: 2>, scalar_prefetch = 0 : i64, scratch_operands = 0 : i64, tpu.core_type = #tpu.core_type<tc>, window_params = [{transform_indices = @transform_0, window_bounds = array<i64: 32, 1024>}, {pipeline_mode = #tpu.pipeline_mode<synchronous>, transform_indices = @transform_1, window_bounds = array<i64: 32, 32>}, {pipeline_mode = #tpu.pipeline_mode<synchronous>, transform_indices = @transform_2, window_bounds = array<i64: 32, 1>}, {transform_indices = @transform_3, window_bounds = array<i64: 32, 128>}]} {
    %c0 = arith.constant 0 : index
    %c0_0 = arith.constant 0 : index
    %0 = vector.load %arg2[%c0, %c0_0] : memref<32x32xbf16, #tpu.memory_space<vmem>>, vector<32x32xbf16>
    %c0_1 = arith.constant 0 : index
    %c0_2 = arith.constant 0 : index
    %1 = vector.load %arg1[%c0_1, %c0_2] : memref<32x1024xbf16, #tpu.memory_space<vmem>>, vector<32x1024xbf16>
    %cst = arith.constant dense<0.000000e+00> : vector<32x1024xf32>
    %2 = tpu.matmul %0, %1, %cst {dimension_numbers = #tpu.dot_dimension_numbers<[1], [0], [0], [1], [0, 0, 1, 1], [], []>} : vector<32x32xbf16>, vector<32x1024xbf16>, vector<32x1024xf32> -> vector<32x1024xf32>
    %3 = vector.extract_strided_slice %2 {offsets = [0, 0], sizes = [32, 128], strides = [1, 1]} : vector<32x1024xf32> to vector<32x128xf32>
    %4 = vector.extract_strided_slice %2 {offsets = [0, 128], sizes = [32, 128], strides = [1, 1]} : vector<32x1024xf32> to vector<32x128xf32>
    %5 = arith.maximumf %3, %4 : vector<32x128xf32>
    %6 = vector.extract_strided_slice %2 {offsets = [0, 256], sizes = [32, 128], strides = [1, 1]} : vector<32x1024xf32> to vector<32x128xf32>
    %7 = arith.maximumf %5, %6 : vector<32x128xf32>
    %8 = vector.extract_strided_slice %2 {offsets = [0, 384], sizes = [32, 128], strides = [1, 1]} : vector<32x1024xf32> to vector<32x128xf32>
    %9 = arith.maximumf %7, %8 : vector<32x128xf32>
    %10 = vector.extract_strided_slice %2 {offsets = [0, 512], sizes = [32, 128], strides = [1, 1]} : vector<32x1024xf32> to vector<32x128xf32>
    %11 = arith.maximumf %9, %10 : vector<32x128xf32>
    %12 = vector.extract_strided_slice %2 {offsets = [0, 640], sizes = [32, 128], strides = [1, 1]} : vector<32x1024xf32> to vector<32x128xf32>
    %13 = arith.maximumf %11, %12 : vector<32x128xf32>
    %14 = vector.extract_strided_slice %2 {offsets = [0, 768], sizes = [32, 128], strides = [1, 1]} : vector<32x1024xf32> to vector<32x128xf32>
    %15 = arith.maximumf %13, %14 : vector<32x128xf32>
    %16 = vector.extract_strided_slice %2 {offsets = [0, 896], sizes = [32, 128], strides = [1, 1]} : vector<32x1024xf32> to vector<32x128xf32>
    %17 = arith.maximumf %15, %16 : vector<32x128xf32>
    %c0_3 = arith.constant 0 : index
    %c0_4 = arith.constant 0 : index
    %18 = vector.load %arg3[%c0_3, %c0_4] : memref<32x1xf32, #tpu.memory_space<vmem>>, vector<32x1xf32>
    %19 = vector.broadcast %18 : vector<32x1xf32> to vector<32x128xf32>
    %20 = arith.addf %17, %19 : vector<32x128xf32>
    %cst_5 = arith.constant 0.000000e+00 : f32
    %21 = vector.broadcast %cst_5 : f32 to vector<32x128xf32>
    %22 = arith.maximumf %20, %21 : vector<32x128xf32>
    %23 = arith.truncf %22 : vector<32x128xf32> to vector<32x128xbf16>
    %c0_6 = arith.constant 0 : index
    %c0_7 = arith.constant 0 : index
    %24 = vector.load %arg4[%c0_6, %c0_7] : memref<32x128xbf16, #tpu.memory_space<vmem>>, vector<32x128xbf16>
    tpu.vector_store %arg4[%c0_6, %c0_7], %23 {strides = array<i32>} : memref<32x128xbf16, #tpu.memory_space<vmem>>, vector<32x128xbf16>,
    return
  }
  func.func @transform_0(%arg0: i32) -> (i32, i32) {
    %c0_i32 = arith.constant 0 : i32
    %c0_i32_0 = arith.constant 0 : i32
    return %c0_i32, %arg0 : i32, i32
  }
  func.func @transform_1(%arg0: i32) -> (i32, i32) {
    %c0_i32 = arith.constant 0 : i32
    %c0_i32_0 = arith.constant 0 : i32
    %c0_i32_1 = arith.constant 0 : i32
    return %c0_i32, %c0_i32_0 : i32, i32
  }
  func.func @transform_2(%arg0: i32) -> (i32, i32) {
    %c0_i32 = arith.constant 0 : i32
    %c0_i32_0 = arith.constant 0 : i32
    %c0_i32_1 = arith.constant 0 : i32
    return %c0_i32, %c0_i32_0 : i32, i32
  }
  func.func @transform_3(%arg0: i32) -> (i32, i32) {
    %c0_i32 = arith.constant 0 : i32
    %c0_i32_0 = arith.constant 0 : i32
    return %c0_i32, %arg0 : i32, i32
  }
}

module attributes {stable_mosaic.version = 11 : i64} {
  func.func @_invres_block_kernel(%arg0: i32, %arg1: memref<48x1024xbf16, #tpu.memory_space<vmem>>, %arg2: memref<32x128xbf16, #tpu.memory_space<vmem>>, %arg3: memref<32x48xbf16, #tpu.memory_space<vmem>>, %arg4: memref<32x1xf32, #tpu.memory_space<vmem>>, %arg5: memref<128x32xbf16, #tpu.memory_space<vmem>>, %arg6: memref<128x1xf32, #tpu.memory_space<vmem>>, %arg7: memref<32x128xbf16, #tpu.memory_space<vmem>>, %arg8: memref<32x1xf32, #tpu.memory_space<vmem>>, %arg9: memref<32x128xbf16, #tpu.memory_space<vmem>>) attributes {dimension_semantics = [#tpu.dimension_semantics<parallel>], iteration_bounds = array<i64: 2>, scalar_prefetch = 0 : i64, scratch_operands = 0 : i64, tpu.core_type = #tpu.core_type<tc>, window_params = [{transform_indices = @transform_0, window_bounds = array<i64: 48, 1024>}, {transform_indices = @transform_1, window_bounds = array<i64: 32, 128>}, {pipeline_mode = #tpu.pipeline_mode<synchronous>, transform_indices = @transform_2, window_bounds = array<i64: 32, 48>}, {pipeline_mode = #tpu.pipeline_mode<synchronous>, transform_indices = @transform_3, window_bounds = array<i64: 32, 1>}, {pipeline_mode = #tpu.pipeline_mode<synchronous>, transform_indices = @transform_4, window_bounds = array<i64: 128, 32>}, {pipeline_mode = #tpu.pipeline_mode<synchronous>, transform_indices = @transform_5, window_bounds = array<i64: 128, 1>}, {pipeline_mode = #tpu.pipeline_mode<synchronous>, transform_indices = @transform_6, window_bounds = array<i64: 32, 128>}, {pipeline_mode = #tpu.pipeline_mode<synchronous>, transform_indices = @transform_7, window_bounds = array<i64: 32, 1>}, {transform_indices = @transform_8, window_bounds = array<i64: 32, 128>}]} {
    %c0 = arith.constant 0 : index
    %c0_0 = arith.constant 0 : index
    %0 = vector.load %arg3[%c0, %c0_0] : memref<32x48xbf16, #tpu.memory_space<vmem>>, vector<32x48xbf16>
    %c0_1 = arith.constant 0 : index
    %c0_2 = arith.constant 0 : index
    %1 = vector.load %arg1[%c0_1, %c0_2] : memref<48x1024xbf16, #tpu.memory_space<vmem>>, vector<48x1024xbf16>
    %cst = arith.constant dense<0.000000e+00> : vector<32x1024xf32>
    %2 = tpu.matmul %0, %1, %cst {dimension_numbers = #tpu.dot_dimension_numbers<[1], [0], [0], [1], [0, 0, 1, 1], [], []>} : vector<32x48xbf16>, vector<48x1024xbf16>, vector<32x1024xf32> -> vector<32x1024xf32>
    %3 = vector.extract_strided_slice %2 {offsets = [0, 0], sizes = [32, 128], strides = [1, 1]} : vector<32x1024xf32> to vector<32x128xf32>
    %4 = vector.extract_strided_slice %2 {offsets = [0, 128], sizes = [32, 128], strides = [1, 1]} : vector<32x1024xf32> to vector<32x128xf32>
    %5 = arith.maximumf %3, %4 : vector<32x128xf32>
    %6 = vector.extract_strided_slice %2 {offsets = [0, 256], sizes = [32, 128], strides = [1, 1]} : vector<32x1024xf32> to vector<32x128xf32>
    %7 = arith.maximumf %5, %6 : vector<32x128xf32>
    %8 = vector.extract_strided_slice %2 {offsets = [0, 384], sizes = [32, 128], strides = [1, 1]} : vector<32x1024xf32> to vector<32x128xf32>
    %9 = arith.maximumf %7, %8 : vector<32x128xf32>
    %10 = vector.extract_strided_slice %2 {offsets = [0, 512], sizes = [32, 128], strides = [1, 1]} : vector<32x1024xf32> to vector<32x128xf32>
    %11 = arith.maximumf %9, %10 : vector<32x128xf32>
    %12 = vector.extract_strided_slice %2 {offsets = [0, 640], sizes = [32, 128], strides = [1, 1]} : vector<32x1024xf32> to vector<32x128xf32>
    %13 = arith.maximumf %11, %12 : vector<32x128xf32>
    %14 = vector.extract_strided_slice %2 {offsets = [0, 768], sizes = [32, 128], strides = [1, 1]} : vector<32x1024xf32> to vector<32x128xf32>
    %15 = arith.maximumf %13, %14 : vector<32x128xf32>
    %16 = vector.extract_strided_slice %2 {offsets = [0, 896], sizes = [32, 128], strides = [1, 1]} : vector<32x1024xf32> to vector<32x128xf32>
    %17 = arith.maximumf %15, %16 : vector<32x128xf32>
    %c0_3 = arith.constant 0 : index
    %c0_4 = arith.constant 0 : index
    %18 = vector.load %arg4[%c0_3, %c0_4] : memref<32x1xf32, #tpu.memory_space<vmem>>, vector<32x1xf32>
    %19 = vector.broadcast %18 : vector<32x1xf32> to vector<32x128xf32>
    %20 = arith.addf %17, %19 : vector<32x128xf32>
    %cst_5 = arith.constant 0.000000e+00 : f32
    %21 = vector.broadcast %cst_5 : f32 to vector<32x128xf32>
    %22 = arith.maximumf %20, %21 : vector<32x128xf32>
    %c0_6 = arith.constant 0 : index
    %c0_7 = arith.constant 0 : index
    %23 = vector.load %arg5[%c0_6, %c0_7] : memref<128x32xbf16, #tpu.memory_space<vmem>>, vector<128x32xbf16>
    %24 = arith.truncf %22 : vector<32x128xf32> to vector<32x128xbf16>
    %cst_8 = arith.constant dense<0.000000e+00> : vector<128x128xf32>
    %25 = tpu.matmul %23, %24, %cst_8 {dimension_numbers = #tpu.dot_dimension_numbers<[1], [0], [0], [1], [0, 0, 1, 1], [], []>} : vector<128x32xbf16>, vector<32x128xbf16>, vector<128x128xf32> -> vector<128x128xf32>
    %c0_9 = arith.constant 0 : index
    %c0_10 = arith.constant 0 : index
    %26 = vector.load %arg6[%c0_9, %c0_10] : memref<128x1xf32, #tpu.memory_space<vmem>>, vector<128x1xf32>
    %27 = vector.broadcast %26 : vector<128x1xf32> to vector<128x128xf32>
    %28 = arith.addf %25, %27 : vector<128x128xf32>
    %cst_11 = arith.constant 0.000000e+00 : f32
    %29 = vector.broadcast %cst_11 : f32 to vector<128x128xf32>
    %30 = arith.maximumf %28, %29 : vector<128x128xf32>
    %c0_12 = arith.constant 0 : index
    %c0_13 = arith.constant 0 : index
    %31 = vector.load %arg7[%c0_12, %c0_13] : memref<32x128xbf16, #tpu.memory_space<vmem>>, vector<32x128xbf16>
    %32 = arith.truncf %30 : vector<128x128xf32> to vector<128x128xbf16>
    %cst_14 = arith.constant dense<0.000000e+00> : vector<32x128xf32>
    %33 = tpu.matmul %31, %32, %cst_14 {dimension_numbers = #tpu.dot_dimension_numbers<[1], [0], [0], [1], [0, 0, 1, 1], [], []>} : vector<32x128xbf16>, vector<128x128xbf16>, vector<32x128xf32> -> vector<32x128xf32>
    %c0_15 = arith.constant 0 : index
    %c0_16 = arith.constant 0 : index
    %34 = vector.load %arg8[%c0_15, %c0_16] : memref<32x1xf32, #tpu.memory_space<vmem>>, vector<32x1xf32>
    %35 = vector.broadcast %34 : vector<32x1xf32> to vector<32x128xf32>
    %36 = arith.addf %33, %35 : vector<32x128xf32>
    %c0_17 = arith.constant 0 : index
    %c0_18 = arith.constant 0 : index
    %37 = vector.load %arg2[%c0_17, %c0_18] : memref<32x128xbf16, #tpu.memory_space<vmem>>, vector<32x128xbf16>
    %38 = arith.extf %37 : vector<32x128xbf16> to vector<32x128xf32>
    %39 = arith.addf %36, %38 : vector<32x128xf32>
    %cst_19 = arith.constant 0.000000e+00 : f32
    %40 = vector.broadcast %cst_19 : f32 to vector<32x128xf32>
    %41 = arith.maximumf %39, %40 : vector<32x128xf32>
    %42 = arith.truncf %41 : vector<32x128xf32> to vector<32x128xbf16>
    %c0_20 = arith.constant 0 : index
    %c0_21 = arith.constant 0 : index
    %43 = vector.load %arg9[%c0_20, %c0_21] : memref<32x128xbf16, #tpu.memory_space<vmem>>, vector<32x128xbf16>
    tpu.vector_store %arg9[%c0_20, %c0_21], %42 {strides = array<i32>} : memref<32x128xbf16, #tpu.memory_space<vmem>>, vector<32x128xbf16>,
    return
  }
  func.func @transform_0(%arg0: i32) -> (i32, i32) {
    %c0_i32 = arith.constant 0 : i32
    %c0_i32_0 = arith.constant 0 : i32
    return %c0_i32, %arg0 : i32, i32
  }
  func.func @transform_1(%arg0: i32) -> (i32, i32) {
    %c0_i32 = arith.constant 0 : i32
    %c0_i32_0 = arith.constant 0 : i32
    return %c0_i32, %arg0 : i32, i32
  }
  func.func @transform_2(%arg0: i32) -> (i32, i32) {
    %c0_i32 = arith.constant 0 : i32
    %c0_i32_0 = arith.constant 0 : i32
    %c0_i32_1 = arith.constant 0 : i32
    return %c0_i32, %c0_i32_0 : i32, i32
  }
  func.func @transform_3(%arg0: i32) -> (i32, i32) {
    %c0_i32 = arith.constant 0 : i32
    %c0_i32_0 = arith.constant 0 : i32
    %c0_i32_1 = arith.constant 0 : i32
    return %c0_i32, %c0_i32_0 : i32, i32
  }
  func.func @transform_4(%arg0: i32) -> (i32, i32) {
    %c0_i32 = arith.constant 0 : i32
    %c0_i32_0 = arith.constant 0 : i32
    %c0_i32_1 = arith.constant 0 : i32
    return %c0_i32, %c0_i32_0 : i32, i32
  }
  func.func @transform_5(%arg0: i32) -> (i32, i32) {
    %c0_i32 = arith.constant 0 : i32
    %c0_i32_0 = arith.constant 0 : i32
    %c0_i32_1 = arith.constant 0 : i32
    return %c0_i32, %c0_i32_0 : i32, i32
  }
  func.func @transform_6(%arg0: i32) -> (i32, i32) {
    %c0_i32 = arith.constant 0 : i32
    %c0_i32_0 = arith.constant 0 : i32
    %c0_i32_1 = arith.constant 0 : i32
    return %c0_i32, %c0_i32_0 : i32, i32
  }
  func.func @transform_7(%arg0: i32) -> (i32, i32) {
    %c0_i32 = arith.constant 0 : i32
    %c0_i32_0 = arith.constant 0 : i32
    %c0_i32_1 = arith.constant 0 : i32
    return %c0_i32, %c0_i32_0 : i32, i32
  }
  func.func @transform_8(%arg0: i32) -> (i32, i32) {
    %c0_i32 = arith.constant 0 : i32
    %c0_i32_0 = arith.constant 0 : i32
    return %c0_i32, %arg0 : i32, i32
  }
}

module attributes {stable_mosaic.version = 11 : i64} {
  func.func @_dec_mlp_kernel(%arg0: i32, %arg1: memref<32x128xbf16, #tpu.memory_space<vmem>>, %arg2: memref<64x128xbf16, #tpu.memory_space<vmem>>, %arg3: memref<32x32xbf16, #tpu.memory_space<vmem>>, %arg4: memref<32x64xbf16, #tpu.memory_space<vmem>>, %arg5: memref<32x1xf32, #tpu.memory_space<vmem>>, %arg6: memref<32x32xbf16, #tpu.memory_space<vmem>>, %arg7: memref<32x1xf32, #tpu.memory_space<vmem>>, %arg8: memref<32x128xbf16, #tpu.memory_space<vmem>>) attributes {dimension_semantics = [#tpu.dimension_semantics<parallel>], iteration_bounds = array<i64: 2>, scalar_prefetch = 0 : i64, scratch_operands = 0 : i64, tpu.core_type = #tpu.core_type<tc>, window_params = [{transform_indices = @transform_0, window_bounds = array<i64: 32, 128>}, {transform_indices = @transform_1, window_bounds = array<i64: 64, 128>}, {pipeline_mode = #tpu.pipeline_mode<synchronous>, transform_indices = @transform_2, window_bounds = array<i64: 32, 32>}, {pipeline_mode = #tpu.pipeline_mode<synchronous>, transform_indices = @transform_3, window_bounds = array<i64: 32, 64>}, {pipeline_mode = #tpu.pipeline_mode<synchronous>, transform_indices = @transform_4, window_bounds = array<i64: 32, 1>}, {pipeline_mode = #tpu.pipeline_mode<synchronous>, transform_indices = @transform_5, window_bounds = array<i64: 32, 32>}, {pipeline_mode = #tpu.pipeline_mode<synchronous>, transform_indices = @transform_6, window_bounds = array<i64: 32, 1>}, {transform_indices = @transform_7, window_bounds = array<i64: 32, 128>}]} {
    %c0 = arith.constant 0 : index
    %c0_0 = arith.constant 0 : index
    %0 = vector.load %arg3[%c0, %c0_0] : memref<32x32xbf16, #tpu.memory_space<vmem>>, vector<32x32xbf16>
    %c0_1 = arith.constant 0 : index
    %c0_2 = arith.constant 0 : index
    %1 = vector.load %arg1[%c0_1, %c0_2] : memref<32x128xbf16, #tpu.memory_space<vmem>>, vector<32x128xbf16>
    %cst = arith.constant dense<0.000000e+00> : vector<32x128xf32>
    %2 = tpu.matmul %0, %1, %cst {dimension_numbers = #tpu.dot_dimension_numbers<[1], [0], [0], [1], [0, 0, 1, 1], [], []>} : vector<32x32xbf16>, vector<32x128xbf16>, vector<32x128xf32> -> vector<32x128xf32>
    %c0_3 = arith.constant 0 : index
    %c0_4 = arith.constant 0 : index
    %3 = vector.load %arg4[%c0_3, %c0_4] : memref<32x64xbf16, #tpu.memory_space<vmem>>, vector<32x64xbf16>
    %c0_5 = arith.constant 0 : index
    %c0_6 = arith.constant 0 : index
    %4 = vector.load %arg2[%c0_5, %c0_6] : memref<64x128xbf16, #tpu.memory_space<vmem>>, vector<64x128xbf16>
    %cst_7 = arith.constant dense<0.000000e+00> : vector<32x128xf32>
    %5 = tpu.matmul %3, %4, %cst_7 {dimension_numbers = #tpu.dot_dimension_numbers<[1], [0], [0], [1], [0, 0, 1, 1], [], []>} : vector<32x64xbf16>, vector<64x128xbf16>, vector<32x128xf32> -> vector<32x128xf32>
    %6 = arith.addf %2, %5 : vector<32x128xf32>
    %c0_8 = arith.constant 0 : index
    %c0_9 = arith.constant 0 : index
    %7 = vector.load %arg5[%c0_8, %c0_9] : memref<32x1xf32, #tpu.memory_space<vmem>>, vector<32x1xf32>
    %8 = vector.broadcast %7 : vector<32x1xf32> to vector<32x128xf32>
    %9 = arith.addf %6, %8 : vector<32x128xf32>
    %cst_10 = arith.constant 0.000000e+00 : f32
    %10 = vector.broadcast %cst_10 : f32 to vector<32x128xf32>
    %11 = arith.maximumf %9, %10 : vector<32x128xf32>
    %c0_11 = arith.constant 0 : index
    %c0_12 = arith.constant 0 : index
    %12 = vector.load %arg6[%c0_11, %c0_12] : memref<32x32xbf16, #tpu.memory_space<vmem>>, vector<32x32xbf16>
    %13 = arith.truncf %11 : vector<32x128xf32> to vector<32x128xbf16>
    %cst_13 = arith.constant dense<0.000000e+00> : vector<32x128xf32>
    %14 = tpu.matmul %12, %13, %cst_13 {dimension_numbers = #tpu.dot_dimension_numbers<[1], [0], [0], [1], [0, 0, 1, 1], [], []>} : vector<32x32xbf16>, vector<32x128xbf16>, vector<32x128xf32> -> vector<32x128xf32>
    %c0_14 = arith.constant 0 : index
    %c0_15 = arith.constant 0 : index
    %15 = vector.load %arg7[%c0_14, %c0_15] : memref<32x1xf32, #tpu.memory_space<vmem>>, vector<32x1xf32>
    %16 = vector.broadcast %15 : vector<32x1xf32> to vector<32x128xf32>
    %17 = arith.addf %14, %16 : vector<32x128xf32>
    %cst_16 = arith.constant 0.000000e+00 : f32
    %18 = vector.broadcast %cst_16 : f32 to vector<32x128xf32>
    %19 = arith.maximumf %17, %18 : vector<32x128xf32>
    %20 = arith.truncf %19 : vector<32x128xf32> to vector<32x128xbf16>
    %c0_17 = arith.constant 0 : index
    %c0_18 = arith.constant 0 : index
    %21 = vector.load %arg8[%c0_17, %c0_18] : memref<32x128xbf16, #tpu.memory_space<vmem>>, vector<32x128xbf16>
    tpu.vector_store %arg8[%c0_17, %c0_18], %20 {strides = array<i32>} : memref<32x128xbf16, #tpu.memory_space<vmem>>, vector<32x128xbf16>,
    return
  }
  func.func @transform_0(%arg0: i32) -> (i32, i32) {
    %c0_i32 = arith.constant 0 : i32
    %c0_i32_0 = arith.constant 0 : i32
    return %c0_i32, %arg0 : i32, i32
  }
  func.func @transform_1(%arg0: i32) -> (i32, i32) {
    %c0_i32 = arith.constant 0 : i32
    %c0_i32_0 = arith.constant 0 : i32
    return %c0_i32, %arg0 : i32, i32
  }
  func.func @transform_2(%arg0: i32) -> (i32, i32) {
    %c0_i32 = arith.constant 0 : i32
    %c0_i32_0 = arith.constant 0 : i32
    %c0_i32_1 = arith.constant 0 : i32
    return %c0_i32, %c0_i32_0 : i32, i32
  }
  func.func @transform_3(%arg0: i32) -> (i32, i32) {
    %c0_i32 = arith.constant 0 : i32
    %c0_i32_0 = arith.constant 0 : i32
    %c0_i32_1 = arith.constant 0 : i32
    return %c0_i32, %c0_i32_0 : i32, i32
  }
  func.func @transform_4(%arg0: i32) -> (i32, i32) {
    %c0_i32 = arith.constant 0 : i32
    %c0_i32_0 = arith.constant 0 : i32
    %c0_i32_1 = arith.constant 0 : i32
    return %c0_i32, %c0_i32_0 : i32, i32
  }
  func.func @transform_5(%arg0: i32) -> (i32, i32) {
    %c0_i32 = arith.constant 0 : i32
    %c0_i32_0 = arith.constant 0 : i32
    %c0_i32_1 = arith.constant 0 : i32
    return %c0_i32, %c0_i32_0 : i32, i32
  }
  func.func @transform_6(%arg0: i32) -> (i32, i32) {
    %c0_i32 = arith.constant 0 : i32
    %c0_i32_0 = arith.constant 0 : i32
    %c0_i32_1 = arith.constant 0 : i32
    return %c0_i32, %c0_i32_0 : i32, i32
  }
  func.func @transform_7(%arg0: i32) -> (i32, i32) {
    %c0_i32 = arith.constant 0 : i32
    %c0_i32_0 = arith.constant 0 : i32
    return %c0_i32, %arg0 : i32, i32
  }
}

module attributes {stable_mosaic.version = 11 : i64} {
  func.func @_conv_bn_kernel(%arg0: i32, %arg1: memref<32x128xbf16, #tpu.memory_space<vmem>>, %arg2: memref<32x32xbf16, #tpu.memory_space<vmem>>, %arg3: memref<32x1xf32, #tpu.memory_space<vmem>>, %arg4: memref<32x128xf32, #tpu.memory_space<vmem>>) attributes {dimension_semantics = [#tpu.dimension_semantics<parallel>], iteration_bounds = array<i64: 2>, scalar_prefetch = 0 : i64, scratch_operands = 0 : i64, tpu.core_type = #tpu.core_type<tc>, window_params = [{transform_indices = @transform_0, window_bounds = array<i64: 32, 128>}, {pipeline_mode = #tpu.pipeline_mode<synchronous>, transform_indices = @transform_1, window_bounds = array<i64: 32, 32>}, {pipeline_mode = #tpu.pipeline_mode<synchronous>, transform_indices = @transform_2, window_bounds = array<i64: 32, 1>}, {transform_indices = @transform_3, window_bounds = array<i64: 32, 128>}]} {
    %c0 = arith.constant 0 : index
    %c0_0 = arith.constant 0 : index
    %0 = vector.load %arg2[%c0, %c0_0] : memref<32x32xbf16, #tpu.memory_space<vmem>>, vector<32x32xbf16>
    %c0_1 = arith.constant 0 : index
    %c0_2 = arith.constant 0 : index
    %1 = vector.load %arg1[%c0_1, %c0_2] : memref<32x128xbf16, #tpu.memory_space<vmem>>, vector<32x128xbf16>
    %cst = arith.constant dense<0.000000e+00> : vector<32x128xf32>
    %2 = tpu.matmul %0, %1, %cst {dimension_numbers = #tpu.dot_dimension_numbers<[1], [0], [0], [1], [0, 0, 1, 1], [], []>} : vector<32x32xbf16>, vector<32x128xbf16>, vector<32x128xf32> -> vector<32x128xf32>
    %c0_3 = arith.constant 0 : index
    %c0_4 = arith.constant 0 : index
    %3 = vector.load %arg3[%c0_3, %c0_4] : memref<32x1xf32, #tpu.memory_space<vmem>>, vector<32x1xf32>
    %4 = vector.broadcast %3 : vector<32x1xf32> to vector<32x128xf32>
    %5 = arith.addf %2, %4 : vector<32x128xf32>
    %c0_5 = arith.constant 0 : index
    %c0_6 = arith.constant 0 : index
    %6 = vector.load %arg4[%c0_5, %c0_6] : memref<32x128xf32, #tpu.memory_space<vmem>>, vector<32x128xf32>
    tpu.vector_store %arg4[%c0_5, %c0_6], %5 {strides = array<i32>} : memref<32x128xf32, #tpu.memory_space<vmem>>, vector<32x128xf32>,
    return
  }
  func.func @transform_0(%arg0: i32) -> (i32, i32) {
    %c0_i32 = arith.constant 0 : i32
    %c0_i32_0 = arith.constant 0 : i32
    return %c0_i32, %arg0 : i32, i32
  }
  func.func @transform_1(%arg0: i32) -> (i32, i32) {
    %c0_i32 = arith.constant 0 : i32
    %c0_i32_0 = arith.constant 0 : i32
    %c0_i32_1 = arith.constant 0 : i32
    return %c0_i32, %c0_i32_0 : i32, i32
  }
  func.func @transform_2(%arg0: i32) -> (i32, i32) {
    %c0_i32 = arith.constant 0 : i32
    %c0_i32_0 = arith.constant 0 : i32
    %c0_i32_1 = arith.constant 0 : i32
    return %c0_i32, %c0_i32_0 : i32, i32
  }
  func.func @transform_3(%arg0: i32) -> (i32, i32) {
    %c0_i32 = arith.constant 0 : i32
    %c0_i32_0 = arith.constant 0 : i32
    return %c0_i32, %arg0 : i32, i32
  }
}

</mosaic_0001>

<bundles_post_ra>
// kernel: neg.15
= control target key start
LH: loop header
LB: loop body
LE: loop exit
PB: predicated region body
PF: predicated region fallthrough
CT: control target
= control target key end

     0   :  { %s2056_s0 = inlined_call_operand.vmem [shape: f32[2,128,512], index: 0, kind: input, shape index: {}]   ;;  %s2057_s1 = inlined_call_operand.vmem [shape: f32[2,128,512], index: 1, kind: output, shape index: {}]  }
   0x1   :  { %v2_v0 = vld [vmem:[%s2056_s0] sm:$0xff]  ;;  %v1086_v62 = vld [vmem:[%s2056_s0 + $0x8] sm:$0xff] }
   0x2   :  { %v1024_v1 = vld [vmem:[%s2056_s0 + $0x200] sm:$0xff]  ;;  %v5_v3 = vxor.u32 2147483648, %v2_v0  ;;  %v1088_v0 = vld [vmem:[%s2056_s0 + $0x208] sm:$0xff] }
   0x3   :  { %v1026_v2 = vld [vmem:[%s2056_s0 + $0x20] sm:$0xff]  ;;  %v12_v4 = vxor.u32 2147483648, %v1024_v1 }
   0x4   :  { %v20_v5 = vxor.u32 2147483648, %v1026_v2  ;;  %v1028_v6 = vld [vmem:[%s2056_s0 + $0x220] sm:$0xff]  ;;  %7 = vst [vmem:[%s2057_s1] sm:$0xff] %v5_v3  ;;  %v1090_v2 = vld [vmem:[%s2056_s0 + $0x28] sm:$0xff]  ;;  %v260_v3 = vxor.u32 2147483648, %v1086_v62  ;;  %v1150_v62 = vld [vmem:[%s2056_s0 + $0x10] sm:$0xff] }
   0x5   :  { %v1030_v7 = vld [vmem:[%s2056_s0 + $0x40] sm:$0xff]  ;;  %v28_v9 = vxor.u32 2147483648, %v1028_v6  ;;  %1025 = vst [vmem:[%s2057_s1 + $0x200] sm:$0xff] %v12_v4  ;;  %v1092_v4 = vld [vmem:[%s2056_s0 + $0x228] sm:$0xff] }
   0x6   :  { %v1032_v8 = vld [vmem:[%s2056_s0 + $0x240] sm:$0xff]  ;;  %v36_v11 = vxor.u32 2147483648, %v1030_v7  ;;  %1027 = vst [vmem:[%s2057_s1 + $0x20] sm:$0xff] %v20_v5  ;;  %v268_v5 = vxor.u32 2147483648, %v1088_v0  ;;  %v1094_v6 = vld [vmem:[%s2056_s0 + $0x48] sm:$0xff]  ;;  %v276_v7 = vxor.u32 2147483648, %v1090_v2 }
   0x7   :  { %v1034_v10 = vld [vmem:[%s2056_s0 + $0x60] sm:$0xff]  ;;  %v44_v13 = vxor.u32 2147483648, %v1032_v8  ;;  %1029 = vst [vmem:[%s2057_s1 + $0x220] sm:$0xff] %v28_v9  ;;  %v1096_v8 = vld [vmem:[%s2056_s0 + $0x248] sm:$0xff]  ;;  %v284_v9 = vxor.u32 2147483648, %v1092_v4  ;;  %v1152_v0 = vld [vmem:[%s2056_s0 + $0x210] sm:$0xff] }
   0x8   :  { %v1036_v12 = vld [vmem:[%s2056_s0 + $0x260] sm:$0xff]  ;;  %v52_v15 = vxor.u32 2147483648, %v1034_v10  ;;  %1031 = vst [vmem:[%s2057_s1 + $0x40] sm:$0xff] %v36_v11  ;;  %v1098_v10 = vld [vmem:[%s2056_s0 + $0x68] sm:$0xff]  ;;  %v292_v11 = vxor.u32 2147483648, %v1094_v6  ;;  %v1154_v2 = vld [vmem:[%s2056_s0 + $0x30] sm:$0xff] }
   0x9   :  { %v1038_v14 = vld [vmem:[%s2056_s0 + $0x80] sm:$0xff]  ;;  %v60_v17 = vxor.u32 2147483648, %v1036_v12  ;;  %1033 = vst [vmem:[%s2057_s1 + $0x240] sm:$0xff] %v44_v13  ;;  %v1100_v12 = vld [vmem:[%s2056_s0 + $0x268] sm:$0xff]  ;;  %v300_v13 = vxor.u32 2147483648, %v1096_v8  ;;  %v1156_v4 = vld [vmem:[%s2056_s0 + $0x230] sm:$0xff] }
   0xa   :  { %v1040_v16 = vld [vmem:[%s2056_s0 + $0x280] sm:$0xff]  ;;  %v68_v19 = vxor.u32 2147483648, %v1038_v14  ;;  %1035 = vst [vmem:[%s2057_s1 + $0x60] sm:$0xff] %v52_v15  ;;  %v1102_v14 = vld [vmem:[%s2056_s0 + $0x88] sm:$0xff]  ;;  %v308_v15 = vxor.u32 2147483648, %v1098_v10  ;;  %v1158_v6 = vld [vmem:[%s2056_s0 + $0x50] sm:$0xff] }
   0xb   :  { %v1042_v18 = vld [vmem:[%s2056_s0 + $0xa0] sm:$0xff]  ;;  %v76_v21 = vxor.u32 2147483648, %v1040_v16  ;;  %1037 = vst [vmem:[%s2057_s1 + $0x260] sm:$0xff] %v60_v17  ;;  %v1104_v16 = vld [vmem:[%s2056_s0 + $0x288] sm:$0xff]  ;;  %v316_v17 = vxor.u32 2147483648, %v1100_v12  ;;  %v1160_v8 = vld [vmem:[%s2056_s0 + $0x250] sm:$0xff] }
   0xc   :  { %v1044_v20 = vld [vmem:[%s2056_s0 + $0x2a0] sm:$0xff]  ;;  %v84_v23 = vxor.u32 2147483648, %v1042_v18  ;;  %1039 = vst [vmem:[%s2057_s1 + $0x80] sm:$0xff] %v68_v19  ;;  %v1106_v18 = vld [vmem:[%s2056_s0 + $0xa8] sm:$0xff]  ;;  %v324_v19 = vxor.u32 2147483648, %v1102_v14  ;;  %v1162_v10 = vld [vmem:[%s2056_s0 + $0x70] sm:$0xff] }
   0xd   :  { %v1046_v22 = vld [vmem:[%s2056_s0 + $0xc0] sm:$0xff]  ;;  %v92_v25 = vxor.u32 2147483648, %v1044_v20  ;;  %1041 = vst [vmem:[%s2057_s1 + $0x280] sm:$0xff] %v76_v21  ;;  %v1108_v20 = vld [vmem:[%s2056_s0 + $0x2a8] sm:$0xff]  ;;  %v332_v21 = vxor.u32 2147483648, %v1104_v16  ;;  %v1164_v12 = vld [vmem:[%s2056_s0 + $0x270] sm:$0xff] }
   0xe   :  { %v1048_v24 = vld [vmem:[%s2056_s0 + $0x2c0] sm:$0xff]  ;;  %v100_v27 = vxor.u32 2147483648, %v1046_v22  ;;  %1043 = vst [vmem:[%s2057_s1 + $0xa0] sm:$0xff] %v84_v23  ;;  %v1110_v22 = vld [vmem:[%s2056_s0 + $0xc8] sm:$0xff]  ;;  %v340_v23 = vxor.u32 2147483648, %v1106_v18  ;;  %v1166_v14 = vld [vmem:[%s2056_s0 + $0x90] sm:$0xff] }
   0xf   :  { %v1050_v26 = vld [vmem:[%s2056_s0 + $0xe0] sm:$0xff]  ;;  %v108_v29 = vxor.u32 2147483648, %v1048_v24  ;;  %1045 = vst [vmem:[%s2057_s1 + $0x2a0] sm:$0xff] %v92_v25  ;;  %v1112_v24 = vld [vmem:[%s2056_s0 + $0x2c8] sm:$0xff]  ;;  %v348_v25 = vxor.u32 2147483648, %v1108_v20  ;;  %v1168_v16 = vld [vmem:[%s2056_s0 + $0x290] sm:$0xff] }
  0x10   :  { %v1052_v28 = vld [vmem:[%s2056_s0 + $0x2e0] sm:$0xff]  ;;  %v116_v31 = vxor.u32 2147483648, %v1050_v26  ;;  %1047 = vst [vmem:[%s2057_s1 + $0xc0] sm:$0xff] %v100_v27  ;;  %v1114_v26 = vld [vmem:[%s2056_s0 + $0xe8] sm:$0xff]  ;;  %v356_v27 = vxor.u32 2147483648, %v1110_v22  ;;  %v1170_v18 = vld [vmem:[%s2056_s0 + $0xb0] sm:$0xff] }
  0x11   :  { %v1054_v30 = vld [vmem:[%s2056_s0 + $0x100] sm:$0xff]  ;;  %v124_v33 = vxor.u32 2147483648, %v1052_v28  ;;  %1049 = vst [vmem:[%s2057_s1 + $0x2c0] sm:$0xff] %v108_v29  ;;  %v1116_v28 = vld [vmem:[%s2056_s0 + $0x2e8] sm:$0xff]  ;;  %v364_v29 = vxor.u32 2147483648, %v1112_v24  ;;  %v1172_v20 = vld [vmem:[%s2056_s0 + $0x2b0] sm:$0xff] }
  0x12   :  { %v1056_v32 = vld [vmem:[%s2056_s0 + $0x300] sm:$0xff]  ;;  %v132_v35 = vxor.u32 2147483648, %v1054_v30  ;;  %1051 = vst [vmem:[%s2057_s1 + $0xe0] sm:$0xff] %v116_v31  ;;  %v1118_v30 = vld [vmem:[%s2056_s0 + $0x108] sm:$0xff]  ;;  %v372_v31 = vxor.u32 2147483648, %v1114_v26  ;;  %v1174_v22 = vld [vmem:[%s2056_s0 + $0xd0] sm:$0xff] }
  0x13   :  { %v1058_v34 = vld [vmem:[%s2056_s0 + $0x120] sm:$0xff]  ;;  %v140_v37 = vxor.u32 2147483648, %v1056_v32  ;;  %1053 = vst [vmem:[%s2057_s1 + $0x2e0] sm:$0xff] %v124_v33  ;;  %v1120_v32 = vld [vmem:[%s2056_s0 + $0x308] sm:$0xff]  ;;  %v380_v33 = vxor.u32 2147483648, %v1116_v28  ;;  %v1176_v24 = vld [vmem:[%s2056_s0 + $0x2d0] sm:$0xff] }
  0x14   :  { %v1060_v36 = vld [vmem:[%s2056_s0 + $0x320] sm:$0xff]  ;;  %v148_v39 = vxor.u32 2147483648, %v1058_v34  ;;  %1055 = vst [vmem:[%s2057_s1 + $0x100] sm:$0xff] %v132_v35  ;;  %v1122_v34 = vld [vmem:[%s2056_s0 + $0x128] sm:$0xff]  ;;  %v388_v35 = vxor.u32 2147483648, %v1118_v30  ;;  %v1178_v26 = vld [vmem:[%s2056_s0 + $0xf0] sm:$0xff] }
  0x15   :  { %v1062_v38 = vld [vmem:[%s2056_s0 + $0x140] sm:$0xff]  ;;  %v156_v41 = vxor.u32 2147483648, %v1060_v36  ;;  %1057 = vst [vmem:[%s2057_s1 + $0x300] sm:$0xff] %v140_v37  ;;  %v1124_v36 = vld [vmem:[%s2056_s0 + $0x328] sm:$0xff]  ;;  %v396_v37 = vxor.u32 2147483648, %v1120_v32  ;;  %v1180_v28 = vld [vmem:[%s2056_s0 + $0x2f0] sm:$0xff] }
  0x16   :  { %v1064_v40 = vld [vmem:[%s2056_s0 + $0x340] sm:$0xff]  ;;  %v164_v43 = vxor.u32 2147483648, %v1062_v38  ;;  %1059 = vst [vmem:[%s2057_s1 + $0x120] sm:$0xff] %v148_v39  ;;  %v1126_v38 = vld [vmem:[%s2056_s0 + $0x148] sm:$0xff]  ;;  %v404_v39 = vxor.u32 2147483648, %v1122_v34  ;;  %v1182_v30 = vld [vmem:[%s2056_s0 + $0x110] sm:$0xff] }
  0x17   :  { %v1066_v42 = vld [vmem:[%s2056_s0 + $0x160] sm:$0xff]  ;;  %v172_v45 = vxor.u32 2147483648, %v1064_v40  ;;  %1061 = vst [vmem:[%s2057_s1 + $0x320] sm:$0xff] %v156_v41  ;;  %v1128_v40 = vld [vmem:[%s2056_s0 + $0x348] sm:$0xff]  ;;  %v412_v41 = vxor.u32 2147483648, %v1124_v36  ;;  %v1184_v32 = vld [vmem:[%s2056_s0 + $0x310] sm:$0xff] }
  0x18   :  { %v1068_v44 = vld [vmem:[%s2056_s0 + $0x360] sm:$0xff]  ;;  %v180_v47 = vxor.u32 2147483648, %v1066_v42  ;;  %1063 = vst [vmem:[%s2057_s1 + $0x140] sm:$0xff] %v164_v43  ;;  %v1130_v42 = vld [vmem:[%s2056_s0 + $0x168] sm:$0xff]  ;;  %v420_v43 = vxor.u32 2147483648, %v1126_v38  ;;  %v1186_v34 = vld [vmem:[%s2056_s0 + $0x130] sm:$0xff] }
  0x19   :  { %v1070_v46 = vld [vmem:[%s2056_s0 + $0x180] sm:$0xff]  ;;  %v188_v49 = vxor.u32 2147483648, %v1068_v44  ;;  %1065 = vst [vmem:[%s2057_s1 + $0x340] sm:$0xff] %v172_v45  ;;  %v1132_v44 = vld [vmem:[%s2056_s0 + $0x368] sm:$0xff]  ;;  %v428_v45 = vxor.u32 2147483648, %v1128_v40  ;;  %v1188_v36 = vld [vmem:[%s2056_s0 + $0x330] sm:$0xff] }
  0x1a   :  { %v1072_v48 = vld [vmem:[%s2056_s0 + $0x380] sm:$0xff]  ;;  %v196_v51 = vxor.u32 2147483648, %v1070_v46  ;;  %1067 = vst [vmem:[%s2057_s1 + $0x160] sm:$0xff] %v180_v47  ;;  %v1134_v46 = vld [vmem:[%s2056_s0 + $0x188] sm:$0xff]  ;;  %v436_v47 = vxor.u32 2147483648, %v1130_v42  ;;  %v1190_v38 = vld [vmem:[%s2056_s0 + $0x150] sm:$0xff] }
  0x1b   :  { %v1074_v50 = vld [vmem:[%s2056_s0 + $0x1a0] sm:$0xff]  ;;  %v204_v53 = vxor.u32 2147483648, %v1072_v48  ;;  %1069 = vst [vmem:[%s2057_s1 + $0x360] sm:$0xff] %v188_v49  ;;  %v1136_v48 = vld [vmem:[%s2056_s0 + $0x388] sm:$0xff]  ;;  %v444_v49 = vxor.u32 2147483648, %v1132_v44  ;;  %v1192_v40 = vld [vmem:[%s2056_s0 + $0x350] sm:$0xff] }
  0x1c   :  { %v1076_v52 = vld [vmem:[%s2056_s0 + $0x3a0] sm:$0xff]  ;;  %v212_v55 = vxor.u32 2147483648, %v1074_v50  ;;  %1071 = vst [vmem:[%s2057_s1 + $0x180] sm:$0xff] %v196_v51  ;;  %v1138_v50 = vld [vmem:[%s2056_s0 + $0x1a8] sm:$0xff]  ;;  %v452_v51 = vxor.u32 2147483648, %v1134_v46  ;;  %v1194_v42 = vld [vmem:[%s2056_s0 + $0x170] sm:$0xff] }
  0x1d   :  { %v1078_v54 = vld [vmem:[%s2056_s0 + $0x1c0] sm:$0xff]  ;;  %v220_v57 = vxor.u32 2147483648, %v1076_v52  ;;  %1073 = vst [vmem:[%s2057_s1 + $0x380] sm:$0xff] %v204_v53  ;;  %v1140_v52 = vld [vmem:[%s2056_s0 + $0x3a8] sm:$0xff]  ;;  %v460_v53 = vxor.u32 2147483648, %v1136_v48  ;;  %v1196_v44 = vld [vmem:[%s2056_s0 + $0x370] sm:$0xff] }
  0x1e   :  { %v1080_v56 = vld [vmem:[%s2056_s0 + $0x3c0] sm:$0xff]  ;;  %v228_v59 = vxor.u32 2147483648, %v1078_v54  ;;  %1075 = vst [vmem:[%s2057_s1 + $0x1a0] sm:$0xff] %v212_v55  ;;  %v1142_v54 = vld [vmem:[%s2056_s0 + $0x1c8] sm:$0xff]  ;;  %v468_v55 = vxor.u32 2147483648, %v1138_v50  ;;  %v1198_v46 = vld [vmem:[%s2056_s0 + $0x190] sm:$0xff] }
  0x1f   :  { %v1082_v58 = vld [vmem:[%s2056_s0 + $0x1e0] sm:$0xff]  ;;  %v236_v61 = vxor.u32 2147483648, %v1080_v56  ;;  %1077 = vst [vmem:[%s2057_s1 + $0x3a0] sm:$0xff] %v220_v57  ;;  %v1144_v56 = vld [vmem:[%s2056_s0 + $0x3c8] sm:$0xff]  ;;  %v476_v57 = vxor.u32 2147483648, %v1140_v52  ;;  %v1200_v48 = vld [vmem:[%s2056_s0 + $0x390] sm:$0xff] }
  0x20   :  { %v1084_v60 = vld [vmem:[%s2056_s0 + $0x3e0] sm:$0xff]  ;;  %v244_v63 = vxor.u32 2147483648, %v1082_v58  ;;  %1079 = vst [vmem:[%s2057_s1 + $0x1c0] sm:$0xff] %v228_v59  ;;  %v1146_v58 = vld [vmem:[%s2056_s0 + $0x1e8] sm:$0xff]  ;;  %v484_v59 = vxor.u32 2147483648, %v1142_v54  ;;  %v1202_v50 = vld [vmem:[%s2056_s0 + $0x1b0] sm:$0xff] }
  0x21   :  { %v252_v1 = vxor.u32 2147483648, %v1084_v60  ;;  %1081 = vst [vmem:[%s2057_s1 + $0x3c0] sm:$0xff] %v236_v61  ;;  %v1148_v60 = vld [vmem:[%s2056_s0 + $0x3e8] sm:$0xff]  ;;  %v492_v61 = vxor.u32 2147483648, %v1144_v56  ;;  %v1204_v52 = vld [vmem:[%s2056_s0 + $0x3b0] sm:$0xff] }
  0x22   :  { %1083 = vst [vmem:[%s2057_s1 + $0x1e0] sm:$0xff] %v244_v63  ;;  %v500_v63 = vxor.u32 2147483648, %v1146_v58  ;;  %v1206_v54 = vld [vmem:[%s2056_s0 + $0x1d0] sm:$0xff] }
  0x23   :  { %1085 = vst [vmem:[%s2057_s1 + $0x3e0] sm:$0xff] %v252_v1  ;;  %v508_v1 = vxor.u32 2147483648, %v1148_v60  ;;  %v1208_v56 = vld [vmem:[%s2056_s0 + $0x3d0] sm:$0xff] }
  0x24   :  { %1087 = vst [vmem:[%s2057_s1 + $0x8] sm:$0xff] %v260_v3  ;;  %v516_v3 = vxor.u32 2147483648, %v1150_v62  ;;  %v1210_v58 = vld [vmem:[%s2056_s0 + $0x1f0] sm:$0xff]  ;;  %v1214_v62 = vld [vmem:[%s2056_s0 + $0x18] sm:$0xff] }
  0x25   :  { %1089 = vst [vmem:[%s2057_s1 + $0x208] sm:$0xff] %v268_v5  ;;  %v524_v5 = vxor.u32 2147483648, %v1152_v0  ;;  %v1212_v60 = vld [vmem:[%s2056_s0 + $0x3f0] sm:$0xff]  ;;  %v1216_v0 = vld [vmem:[%s2056_s0 + $0x218] sm:$0xff] }
  0x26   :  { %1091 = vst [vmem:[%s2057_s1 + $0x28] sm:$0xff] %v276_v7  ;;  %v532_v7 = vxor.u32 2147483648, %v1154_v2  ;;  %v1218_v2 = vld [vmem:[%s2056_s0 + $0x38] sm:$0xff] }
  0x27   :  { %1093 = vst [vmem:[%s2057_s1 + $0x228] sm:$0xff] %v284_v9  ;;  %v540_v9 = vxor.u32 2147483648, %v1156_v4  ;;  %v1220_v4 = vld [vmem:[%s2056_s0 + $0x238] sm:$0xff] }
  0x28   :  { %1095 = vst [vmem:[%s2057_s1 + $0x48] sm:$0xff] %v292_v11  ;;  %v548_v11 = vxor.u32 2147483648, %v1158_v6  ;;  %v1222_v6 = vld [vmem:[%s2056_s0 + $0x58] sm:$0xff] }
  0x29   :  { %1097 = vst [vmem:[%s2057_s1 + $0x248] sm:$0xff] %v300_v13  ;;  %v556_v13 = vxor.u32 2147483648, %v1160_v8  ;;  %v1224_v8 = vld [vmem:[%s2056_s0 + $0x258] sm:$0xff] }
  0x2a   :  { %1099 = vst [vmem:[%s2057_s1 + $0x68] sm:$0xff] %v308_v15  ;;  %v564_v15 = vxor.u32 2147483648, %v1162_v10  ;;  %v1226_v10 = vld [vmem:[%s2056_s0 + $0x78] sm:$0xff] }
  0x2b   :  { %1101 = vst [vmem:[%s2057_s1 + $0x268] sm:$0xff] %v316_v17  ;;  %v572_v17 = vxor.u32 2147483648, %v1164_v12  ;;  %v1228_v12 = vld [vmem:[%s2056_s0 + $0x278] sm:$0xff] }
  0x2c   :  { %1103 = vst [vmem:[%s2057_s1 + $0x88] sm:$0xff] %v324_v19  ;;  %v580_v19 = vxor.u32 2147483648, %v1166_v14  ;;  %v1230_v14 = vld [vmem:[%s2056_s0 + $0x98] sm:$0xff] }
  0x2d   :  { %1105 = vst [vmem:[%s2057_s1 + $0x288] sm:$0xff] %v332_v21  ;;  %v588_v21 = vxor.u32 2147483648, %v1168_v16  ;;  %v1232_v16 = vld [vmem:[%s2056_s0 + $0x298] sm:$0xff] }
  0x2e   :  { %1107 = vst [vmem:[%s2057_s1 + $0xa8] sm:$0xff] %v340_v23  ;;  %v596_v23 = vxor.u32 2147483648, %v1170_v18  ;;  %v1234_v18 = vld [vmem:[%s2056_s0 + $0xb8] sm:$0xff] }
  0x2f   :  { %1109 = vst [vmem:[%s2057_s1 + $0x2a8] sm:$0xff] %v348_v25  ;;  %v604_v25 = vxor.u32 2147483648, %v1172_v20  ;;  %v1236_v20 = vld [vmem:[%s2056_s0 + $0x2b8] sm:$0xff] }
  0x30   :  { %1111 = vst [vmem:[%s2057_s1 + $0xc8] sm:$0xff] %v356_v27  ;;  %v612_v27 = vxor.u32 2147483648, %v1174_v22  ;;  %v1238_v22 = vld [vmem:[%s2056_s0 + $0xd8] sm:$0xff] }
  0x31   :  { %1113 = vst [vmem:[%s2057_s1 + $0x2c8] sm:$0xff] %v364_v29  ;;  %v620_v29 = vxor.u32 2147483648, %v1176_v24  ;;  %v1240_v24 = vld [vmem:[%s2056_s0 + $0x2d8] sm:$0xff] }
  0x32   :  { %1115 = vst [vmem:[%s2057_s1 + $0xe8] sm:$0xff] %v372_v31  ;;  %v628_v31 = vxor.u32 2147483648, %v1178_v26  ;;  %v1242_v26 = vld [vmem:[%s2056_s0 + $0xf8] sm:$0xff] }
  0x33   :  { %1117 = vst [vmem:[%s2057_s1 + $0x2e8] sm:$0xff] %v380_v33  ;;  %v636_v33 = vxor.u32 2147483648, %v1180_v28  ;;  %v1244_v28 = vld [vmem:[%s2056_s0 + $0x2f8] sm:$0xff] }
  0x34   :  { %1119 = vst [vmem:[%s2057_s1 + $0x108] sm:$0xff] %v388_v35  ;;  %v644_v35 = vxor.u32 2147483648, %v1182_v30  ;;  %v1246_v30 = vld [vmem:[%s2056_s0 + $0x118] sm:$0xff] }
  0x35   :  { %1121 = vst [vmem:[%s2057_s1 + $0x308] sm:$0xff] %v396_v37  ;;  %v652_v37 = vxor.u32 2147483648, %v1184_v32  ;;  %v1248_v32 = vld [vmem:[%s2056_s0 + $0x318] sm:$0xff] }
  0x36   :  { %1123 = vst [vmem:[%s2057_s1 + $0x128] sm:$0xff] %v404_v39  ;;  %v660_v39 = vxor.u32 2147483648, %v1186_v34  ;;  %v1250_v34 = vld [vmem:[%s2056_s0 + $0x138] sm:$0xff] }
  0x37   :  { %1125 = vst [vmem:[%s2057_s1 + $0x328] sm:$0xff] %v412_v41  ;;  %v668_v41 = vxor.u32 2147483648, %v1188_v36  ;;  %v1252_v36 = vld [vmem:[%s2056_s0 + $0x338] sm:$0xff] }
  0x38   :  { %1127 = vst [vmem:[%s2057_s1 + $0x148] sm:$0xff] %v420_v43  ;;  %v676_v43 = vxor.u32 2147483648, %v1190_v38  ;;  %v1254_v38 = vld [vmem:[%s2056_s0 + $0x158] sm:$0xff] }
  0x39   :  { %1129 = vst [vmem:[%s2057_s1 + $0x348] sm:$0xff] %v428_v45  ;;  %v684_v45 = vxor.u32 2147483648, %v1192_v40  ;;  %v1256_v40 = vld [vmem:[%s2056_s0 + $0x358] sm:$0xff] }
  0x3a   :  { %1131 = vst [vmem:[%s2057_s1 + $0x168] sm:$0xff] %v436_v47  ;;  %v692_v47 = vxor.u32 2147483648, %v1194_v42  ;;  %v1258_v42 = vld [vmem:[%s2056_s0 + $0x178] sm:$0xff] }
  0x3b   :  { %1133 = vst [vmem:[%s2057_s1 + $0x368] sm:$0xff] %v444_v49  ;;  %v700_v49 = vxor.u32 2147483648, %v1196_v44  ;;  %v1260_v44 = vld [vmem:[%s2056_s0 + $0x378] sm:$0xff] }
  0x3c   :  { %1135 = vst [vmem:[%s2057_s1 + $0x188] sm:$0xff] %v452_v51  ;;  %v708_v51 = vxor.u32 2147483648, %v1198_v46  ;;  %v1262_v46 = vld [vmem:[%s2056_s0 + $0x198] sm:$0xff] }
  0x3d   :  { %1137 = vst [vmem:[%s2057_s1 + $0x388] sm:$0xff] %v460_v53  ;;  %v716_v53 = vxor.u32 2147483648, %v1200_v48  ;;  %v1264_v48 = vld [vmem:[%s2056_s0 + $0x398] sm:$0xff] }
  0x3e   :  { %1139 = vst [vmem:[%s2057_s1 + $0x1a8] sm:$0xff] %v468_v55  ;;  %v724_v55 = vxor.u32 2147483648, %v1202_v50  ;;  %v1266_v50 = vld [vmem:[%s2056_s0 + $0x1b8] sm:$0xff] }
  0x3f   :  { %1141 = vst [vmem:[%s2057_s1 + $0x3a8] sm:$0xff] %v476_v57  ;;  %v732_v57 = vxor.u32 2147483648, %v1204_v52  ;;  %v1268_v52 = vld [vmem:[%s2056_s0 + $0x3b8] sm:$0xff] }
  0x40   :  { %1143 = vst [vmem:[%s2057_s1 + $0x1c8] sm:$0xff] %v484_v59  ;;  %v740_v59 = vxor.u32 2147483648, %v1206_v54  ;;  %v1270_v54 = vld [vmem:[%s2056_s0 + $0x1d8] sm:$0xff] }
  0x41   :  { %1145 = vst [vmem:[%s2057_s1 + $0x3c8] sm:$0xff] %v492_v61  ;;  %v748_v61 = vxor.u32 2147483648, %v1208_v56  ;;  %v1272_v56 = vld [vmem:[%s2056_s0 + $0x3d8] sm:$0xff] }
  0x42   :  { %1147 = vst [vmem:[%s2057_s1 + $0x1e8] sm:$0xff] %v500_v63  ;;  %v756_v63 = vxor.u32 2147483648, %v1210_v58  ;;  %v1274_v58 = vld [vmem:[%s2056_s0 + $0x1f8] sm:$0xff] }
  0x43   :  { %1149 = vst [vmem:[%s2057_s1 + $0x3e8] sm:$0xff] %v508_v1  ;;  %v764_v1 = vxor.u32 2147483648, %v1212_v60  ;;  %v1276_v60 = vld [vmem:[%s2056_s0 + $0x3f8] sm:$0xff] }
  0x44   :  { %1151 = vst [vmem:[%s2057_s1 + $0x10] sm:$0xff] %v516_v3  ;;  %v772_v3 = vxor.u32 2147483648, %v1214_v62  ;;  %v1012_v62 = vxor.u32 2147483648, %v1274_v58 }
  0x45   :  { %1153 = vst [vmem:[%s2057_s1 + $0x210] sm:$0xff] %v524_v5  ;;  %v780_v5 = vxor.u32 2147483648, %v1216_v0 }
  0x46   :  { %1155 = vst [vmem:[%s2057_s1 + $0x30] sm:$0xff] %v532_v7  ;;  %v788_v7 = vxor.u32 2147483648, %v1218_v2 }
  0x47   :  { %1157 = vst [vmem:[%s2057_s1 + $0x230] sm:$0xff] %v540_v9  ;;  %v796_v9 = vxor.u32 2147483648, %v1220_v4 }
  0x48   :  { %1159 = vst [vmem:[%s2057_s1 + $0x50] sm:$0xff] %v548_v11  ;;  %v804_v11 = vxor.u32 2147483648, %v1222_v6 }
  0x49   :  { %1161 = vst [vmem:[%s2057_s1 + $0x250] sm:$0xff] %v556_v13  ;;  %v812_v13 = vxor.u32 2147483648, %v1224_v8 }
  0x4a   :  { %1163 = vst [vmem:[%s2057_s1 + $0x70] sm:$0xff] %v564_v15  ;;  %v820_v15 = vxor.u32 2147483648, %v1226_v10 }
  0x4b   :  { %1165 = vst [vmem:[%s2057_s1 + $0x270] sm:$0xff] %v572_v17  ;;  %v828_v17 = vxor.u32 2147483648, %v1228_v12 }
  0x4c   :  { %1167 = vst [vmem:[%s2057_s1 + $0x90] sm:$0xff] %v580_v19  ;;  %v836_v19 = vxor.u32 2147483648, %v1230_v14 }
  0x4d   :  { %1169 = vst [vmem:[%s2057_s1 + $0x290] sm:$0xff] %v588_v21  ;;  %v844_v21 = vxor.u32 2147483648, %v1232_v16 }
  0x4e   :  { %1171 = vst [vmem:[%s2057_s1 + $0xb0] sm:$0xff] %v596_v23  ;;  %v852_v23 = vxor.u32 2147483648, %v1234_v18 }
  0x4f   :  { %1173 = vst [vmem:[%s2057_s1 + $0x2b0] sm:$0xff] %v604_v25  ;;  %v860_v25 = vxor.u32 2147483648, %v1236_v20 }
  0x50   :  { %1175 = vst [vmem:[%s2057_s1 + $0xd0] sm:$0xff] %v612_v27  ;;  %v868_v27 = vxor.u32 2147483648, %v1238_v22 }
  0x51   :  { %1177 = vst [vmem:[%s2057_s1 + $0x2d0] sm:$0xff] %v620_v29  ;;  %v876_v29 = vxor.u32 2147483648, %v1240_v24 }
  0x52   :  { %1179 = vst [vmem:[%s2057_s1 + $0xf0] sm:$0xff] %v628_v31  ;;  %v884_v31 = vxor.u32 2147483648, %v1242_v26 }
  0x53   :  { %1181 = vst [vmem:[%s2057_s1 + $0x2f0] sm:$0xff] %v636_v33  ;;  %v892_v33 = vxor.u32 2147483648, %v1244_v28 }
  0x54   :  { %1183 = vst [vmem:[%s2057_s1 + $0x110] sm:$0xff] %v644_v35  ;;  %v900_v35 = vxor.u32 2147483648, %v1246_v30 }
  0x55   :  { %1185 = vst [vmem:[%s2057_s1 + $0x310] sm:$0xff] %v652_v37  ;;  %v908_v37 = vxor.u32 2147483648, %v1248_v32 }
  0x56   :  { %1187 = vst [vmem:[%s2057_s1 + $0x130] sm:$0xff] %v660_v39  ;;  %v916_v39 = vxor.u32 2147483648, %v1250_v34 }
  0x57   :  { %1189 = vst [vmem:[%s2057_s1 + $0x330] sm:$0xff] %v668_v41  ;;  %v924_v41 = vxor.u32 2147483648, %v1252_v36 }
  0x58   :  { %1191 = vst [vmem:[%s2057_s1 + $0x150] sm:$0xff] %v676_v43  ;;  %v932_v43 = vxor.u32 2147483648, %v1254_v38 }
  0x59   :  { %1193 = vst [vmem:[%s2057_s1 + $0x350] sm:$0xff] %v684_v45  ;;  %v940_v45 = vxor.u32 2147483648, %v1256_v40 }
  0x5a   :  { %1195 = vst [vmem:[%s2057_s1 + $0x170] sm:$0xff] %v692_v47  ;;  %v948_v47 = vxor.u32 2147483648, %v1258_v42 }
  0x5b   :  { %1197 = vst [vmem:[%s2057_s1 + $0x370] sm:$0xff] %v700_v49  ;;  %v956_v49 = vxor.u32 2147483648, %v1260_v44 }
  0x5c   :  { %1199 = vst [vmem:[%s2057_s1 + $0x190] sm:$0xff] %v708_v51  ;;  %v964_v51 = vxor.u32 2147483648, %v1262_v46 }
  0x5d   :  { %1201 = vst [vmem:[%s2057_s1 + $0x390] sm:$0xff] %v716_v53  ;;  %v972_v53 = vxor.u32 2147483648, %v1264_v48 }
  0x5e   :  { %1203 = vst [vmem:[%s2057_s1 + $0x1b0] sm:$0xff] %v724_v55  ;;  %v980_v55 = vxor.u32 2147483648, %v1266_v50 }
  0x5f   :  { %1205 = vst [vmem:[%s2057_s1 + $0x3b0] sm:$0xff] %v732_v57  ;;  %v988_v57 = vxor.u32 2147483648, %v1268_v52 }
  0x60   :  { %1207 = vst [vmem:[%s2057_s1 + $0x1d0] sm:$0xff] %v740_v59  ;;  %v996_v59 = vxor.u32 2147483648, %v1270_v54 }
  0x61   :  { %1209 = vst [vmem:[%s2057_s1 + $0x3d0] sm:$0xff] %v748_v61  ;;  %v1004_v61 = vxor.u32 2147483648, %v1272_v56 }
  0x62   :  { %1211 = vst [vmem:[%s2057_s1 + $0x1f0] sm:$0xff] %v756_v63  ;;  %v1020_v63 = vxor.u32 2147483648, %v1276_v60 }
  0x63   :  { %1213 = vst [vmem:[%s2057_s1 + $0x3f0] sm:$0xff] %v764_v1 }
  0x64   :  { %1215 = vst [vmem:[%s2057_s1 + $0x18] sm:$0xff] %v772_v3 }
  0x65   :  { %1217 = vst [vmem:[%s2057_s1 + $0x218] sm:$0xff] %v780_v5 }
  0x66   :  { %1219 = vst [vmem:[%s2057_s1 + $0x38] sm:$0xff] %v788_v7 }
  0x67   :  { %1221 = vst [vmem:[%s2057_s1 + $0x238] sm:$0xff] %v796_v9 }
  0x68   :  { %1223 = vst [vmem:[%s2057_s1 + $0x58] sm:$0xff] %v804_v11 }
  0x69   :  { %1225 = vst [vmem:[%s2057_s1 + $0x258] sm:$0xff] %v812_v13 }
  0x6a   :  { %1227 = vst [vmem:[%s2057_s1 + $0x78] sm:$0xff] %v820_v15 }
  0x6b   :  { %1229 = vst [vmem:[%s2057_s1 + $0x278] sm:$0xff] %v828_v17 }
  0x6c   :  { %1231 = vst [vmem:[%s2057_s1 + $0x98] sm:$0xff] %v836_v19 }
  0x6d   :  { %1233 = vst [vmem:[%s2057_s1 + $0x298] sm:$0xff] %v844_v21 }
  0x6e   :  { %1235 = vst [vmem:[%s2057_s1 + $0xb8] sm:$0xff] %v852_v23 }
  0x6f   :  { %1237 = vst [vmem:[%s2057_s1 + $0x2b8] sm:$0xff] %v860_v25 }
  0x70   :  { %1239 = vst [vmem:[%s2057_s1 + $0xd8] sm:$0xff] %v868_v27 }
  0x71   :  { %1241 = vst [vmem:[%s2057_s1 + $0x2d8] sm:$0xff] %v876_v29 }
  0x72   :  { %1243 = vst [vmem:[%s2057_s1 + $0xf8] sm:$0xff] %v884_v31 }
  0x73   :  { %1245 = vst [vmem:[%s2057_s1 + $0x2f8] sm:$0xff] %v892_v33 }
  0x74   :  { %1247 = vst [vmem:[%s2057_s1 + $0x118] sm:$0xff] %v900_v35 }
  0x75   :  { %1249 = vst [vmem:[%s2057_s1 + $0x318] sm:$0xff] %v908_v37 }
  0x76   :  { %1251 = vst [vmem:[%s2057_s1 + $0x138] sm:$0xff] %v916_v39 }
  0x77   :  { %1253 = vst [vmem:[%s2057_s1 + $0x338] sm:$0xff] %v924_v41 }
  0x78   :  { %1255 = vst [vmem:[%s2057_s1 + $0x158] sm:$0xff] %v932_v43 }
  0x79   :  { %1257 = vst [vmem:[%s2057_s1 + $0x358] sm:$0xff] %v940_v45 }
  0x7a   :  { %1259 = vst [vmem:[%s2057_s1 + $0x178] sm:$0xff] %v948_v47 }
  0x7b   :  { %1261 = vst [vmem:[%s2057_s1 + $0x378] sm:$0xff] %v956_v49 }
  0x7c   :  { %1263 = vst [vmem:[%s2057_s1 + $0x198] sm:$0xff] %v964_v51 }
  0x7d   :  { %1265 = vst [vmem:[%s2057_s1 + $0x398] sm:$0xff] %v972_v53 }
  0x7e   :  { %1267 = vst [vmem:[%s2057_s1 + $0x1b8] sm:$0xff] %v980_v55 }
  0x7f   :  { %1269 = vst [vmem:[%s2057_s1 + $0x3b8] sm:$0xff] %v988_v57 }
  0x80   :  { %1271 = vst [vmem:[%s2057_s1 + $0x1d8] sm:$0xff] %v996_v59 }
  0x81   :  { %1273 = vst [vmem:[%s2057_s1 + $0x3d8] sm:$0xff] %v1004_v61 }
  0x82   :  { %1275 = vst [vmem:[%s2057_s1 + $0x1f8] sm:$0xff] %v1012_v62 }
  0x83   :  { %1277 = vst [vmem:[%s2057_s1 + $0x3f8] sm:$0xff] %v1020_v63 }

// kernel: neg.16
= control target key start
LH: loop header
LB: loop body
LE: loop exit
PB: predicated region body
PF: predicated region fallthrough
CT: control target
= control target key end

     0   :  { %s520_s0 = inlined_call_operand.vmem [shape: f32[2,128,128], index: 0, kind: input, shape index: {}]   ;;  %s521_s1 = inlined_call_operand.vmem [shape: f32[2,128,128], index: 1, kind: output, shape index: {}]  }
   0x1   :  { %v2_v0 = vld [vmem:[%s520_s0] sm:$0xff]  ;;  %v258_v2 = vld [vmem:[%s520_s0 + $0x8] sm:$0xff]  ;;  %v262_v7 = vld [vmem:[%s520_s0 + $0x10] sm:$0xff] }
   0x2   :  { %v256_v1 = vld [vmem:[%s520_s0 + $0x80] sm:$0xff]  ;;  %v5_v3 = vxor.u32 2147483648, %v2_v0  ;;  %v20_v5 = vxor.u32 2147483648, %v258_v2  ;;  %v260_v6 = vld [vmem:[%s520_s0 + $0x88] sm:$0xff]  ;;  %v264_v8 = vld [vmem:[%s520_s0 + $0x90] sm:$0xff]  ;;  %v36_v11 = vxor.u32 2147483648, %v262_v7 }
   0x3   :  { %v12_v4 = vxor.u32 2147483648, %v256_v1  ;;  %v28_v9 = vxor.u32 2147483648, %v260_v6  ;;  %v266_v10 = vld [vmem:[%s520_s0 + $0x18] sm:$0xff]  ;;  %v44_v13 = vxor.u32 2147483648, %v264_v8  ;;  %v270_v14 = vld [vmem:[%s520_s0 + $0x20] sm:$0xff]  ;;  %v274_v18 = vld [vmem:[%s520_s0 + $0x28] sm:$0xff] }
   0x4   :  { %7 = vst [vmem:[%s521_s1] sm:$0xff] %v5_v3  ;;  %v268_v12 = vld [vmem:[%s520_s0 + $0x98] sm:$0xff]  ;;  %v52_v15 = vxor.u32 2147483648, %v266_v10  ;;  %v272_v16 = vld [vmem:[%s520_s0 + $0xa0] sm:$0xff]  ;;  %v68_v19 = vxor.u32 2147483648, %v270_v14  ;;  %v276_v20 = vld [vmem:[%s520_s0 + $0xa8] sm:$0xff]  ;;  %v84_v23 = vxor.u32 2147483648, %v274_v18 }
   0x5   :  { %257 = vst [vmem:[%s521_s1 + $0x80] sm:$0xff] %v12_v4  ;;  %v60_v17 = vxor.u32 2147483648, %v268_v12  ;;  %v76_v21 = vxor.u32 2147483648, %v272_v16  ;;  %v278_v22 = vld [vmem:[%s520_s0 + $0x30] sm:$0xff]  ;;  %v92_v25 = vxor.u32 2147483648, %v276_v20  ;;  %v282_v26 = vld [vmem:[%s520_s0 + $0x38] sm:$0xff] }
   0x6   :  { %259 = vst [vmem:[%s521_s1 + $0x8] sm:$0xff] %v20_v5  ;;  %v280_v24 = vld [vmem:[%s520_s0 + $0xb0] sm:$0xff]  ;;  %v100_v27 = vxor.u32 2147483648, %v278_v22  ;;  %v284_v28 = vld [vmem:[%s520_s0 + $0xb8] sm:$0xff]  ;;  %v286_v30 = vld [vmem:[%s520_s0 + $0x40] sm:$0xff]  ;;  %v116_v31 = vxor.u32 2147483648, %v282_v26 }
   0x7   :  { %261 = vst [vmem:[%s521_s1 + $0x88] sm:$0xff] %v28_v9  ;;  %v108_v29 = vxor.u32 2147483648, %v280_v24  ;;  %v288_v32 = vld [vmem:[%s520_s0 + $0xc0] sm:$0xff]  ;;  %v124_v33 = vxor.u32 2147483648, %v284_v28  ;;  %v290_v34 = vld [vmem:[%s520_s0 + $0x48] sm:$0xff]  ;;  %v132_v35 = vxor.u32 2147483648, %v286_v30 }
   0x8   :  { %263 = vst [vmem:[%s521_s1 + $0x10] sm:$0xff] %v36_v11  ;;  %v292_v36 = vld [vmem:[%s520_s0 + $0xc8] sm:$0xff]  ;;  %v140_v37 = vxor.u32 2147483648, %v288_v32  ;;  %v294_v38 = vld [vmem:[%s520_s0 + $0x50] sm:$0xff]  ;;  %v148_v39 = vxor.u32 2147483648, %v290_v34  ;;  %v298_v42 = vld [vmem:[%s520_s0 + $0x58] sm:$0xff] }
   0x9   :  { %265 = vst [vmem:[%s521_s1 + $0x90] sm:$0xff] %v44_v13  ;;  %v296_v40 = vld [vmem:[%s520_s0 + $0xd0] sm:$0xff]  ;;  %v156_v41 = vxor.u32 2147483648, %v292_v36  ;;  %v164_v43 = vxor.u32 2147483648, %v294_v38  ;;  %v300_v44 = vld [vmem:[%s520_s0 + $0xd8] sm:$0xff]  ;;  %v302_v46 = vld [vmem:[%s520_s0 + $0x60] sm:$0xff] }
   0xa   :  { %267 = vst [vmem:[%s521_s1 + $0x18] sm:$0xff] %v52_v15  ;;  %v172_v45 = vxor.u32 2147483648, %v296_v40  ;;  %v180_v47 = vxor.u32 2147483648, %v298_v42  ;;  %v304_v48 = vld [vmem:[%s520_s0 + $0xe0] sm:$0xff]  ;;  %v188_v49 = vxor.u32 2147483648, %v300_v44  ;;  %v306_v50 = vld [vmem:[%s520_s0 + $0x68] sm:$0xff] }
   0xb   :  { %269 = vst [vmem:[%s521_s1 + $0x98] sm:$0xff] %v60_v17  ;;  %v196_v51 = vxor.u32 2147483648, %v302_v46  ;;  %v308_v52 = vld [vmem:[%s520_s0 + $0xe8] sm:$0xff]  ;;  %v204_v53 = vxor.u32 2147483648, %v304_v48  ;;  %v310_v54 = vld [vmem:[%s520_s0 + $0x70] sm:$0xff]  ;;  %v212_v55 = vxor.u32 2147483648, %v306_v50 }
   0xc   :  { %271 = vst [vmem:[%s521_s1 + $0x20] sm:$0xff] %v68_v19  ;;  %v312_v56 = vld [vmem:[%s520_s0 + $0xf0] sm:$0xff]  ;;  %v220_v57 = vxor.u32 2147483648, %v308_v52  ;;  %v314_v58 = vld [vmem:[%s520_s0 + $0x78] sm:$0xff]  ;;  %v228_v59 = vxor.u32 2147483648, %v310_v54 }
   0xd   :  { %273 = vst [vmem:[%s521_s1 + $0xa0] sm:$0xff] %v76_v21  ;;  %v316_v60 = vld [vmem:[%s520_s0 + $0xf8] sm:$0xff]  ;;  %v236_v61 = vxor.u32 2147483648, %v312_v56  ;;  %v244_v62 = vxor.u32 2147483648, %v314_v58 }
   0xe   :  { %275 = vst [vmem:[%s521_s1 + $0x28] sm:$0xff] %v84_v23  ;;  %v252_v63 = vxor.u32 2147483648, %v316_v60 }
   0xf   :  { %277 = vst [vmem:[%s521_s1 + $0xa8] sm:$0xff] %v92_v25 }
  0x10   :  { %279 = vst [vmem:[%s521_s1 + $0x30] sm:$0xff] %v100_v27 }
  0x11   :  { %281 = vst [vmem:[%s521_s1 + $0xb0] sm:$0xff] %v108_v29 }
  0x12   :  { %283 = vst [vmem:[%s521_s1 + $0x38] sm:$0xff] %v116_v31 }
  0x13   :  { %285 = vst [vmem:[%s521_s1 + $0xb8] sm:$0xff] %v124_v33 }
  0x14   :  { %287 = vst [vmem:[%s521_s1 + $0x40] sm:$0xff] %v132_v35 }
  0x15   :  { %289 = vst [vmem:[%s521_s1 + $0xc0] sm:$0xff] %v140_v37 }
  0x16   :  { %291 = vst [vmem:[%s521_s1 + $0x48] sm:$0xff] %v148_v39 }
  0x17   :  { %293 = vst [vmem:[%s521_s1 + $0xc8] sm:$0xff] %v156_v41 }
  0x18   :  { %295 = vst [vmem:[%s521_s1 + $0x50] sm:$0xff] %v164_v43 }
  0x19   :  { %297 = vst [vmem:[%s521_s1 + $0xd0] sm:$0xff] %v172_v45 }
  0x1a   :  { %299 = vst [vmem:[%s521_s1 + $0x58] sm:$0xff] %v180_v47 }
  0x1b   :  { %301 = vst [vmem:[%s521_s1 + $0xd8] sm:$0xff] %v188_v49 }
  0x1c   :  { %303 = vst [vmem:[%s521_s1 + $0x60] sm:$0xff] %v196_v51 }
  0x1d   :  { %305 = vst [vmem:[%s521_s1 + $0xe0] sm:$0xff] %v204_v53 }
  0x1e   :  { %307 = vst [vmem:[%s521_s1 + $0x68] sm:$0xff] %v212_v55 }
  0x1f   :  { %309 = vst [vmem:[%s521_s1 + $0xe8] sm:$0xff] %v220_v57 }
  0x20   :  { %311 = vst [vmem:[%s521_s1 + $0x70] sm:$0xff] %v228_v59 }
  0x21   :  { %313 = vst [vmem:[%s521_s1 + $0xf0] sm:$0xff] %v236_v61 }
  0x22   :  { %315 = vst [vmem:[%s521_s1 + $0x78] sm:$0xff] %v244_v62 }
  0x23   :  { %317 = vst [vmem:[%s521_s1 + $0xf8] sm:$0xff] %v252_v63 }

// kernel: _lambda_.5
= control target key start
LH: loop header
LB: loop body
LE: loop exit
PB: predicated region body
PF: predicated region fallthrough
CT: control target
= control target key end

     0   :  { %s519_s12 = smov 0   ;;  %s521_s13 = smov 0   ;;  %s602_s0 = inlined_call_operand.vmem [shape: bf16[16,1024], index: 0, kind: input, shape index: {}]   ;;  %s603_s1 = inlined_call_operand.vmem [shape: bf16[16,16], index: 1, kind: input, shape index: {}]   ;;  %s604_s2 = inlined_call_operand.vmem [shape: f32[16,1], index: 2, kind: input, shape index: {}]   ;;  %s605_s3 = inlined_call_operand.vmem [shape: bf16[16,1024], index: 3, kind: output, shape index: {}]  }
   0x1   :  { %s523_s14 = smov 0  }
   0x2 LB: > { %s402_s15 = sadd.s32 4294967295, %s496_s14   ;;  %s536_s16 = sadd.s32 1, %s496_s14   ;;  %s496_s14 = sphi %s523_s14, %s609_s14   ;;  %s492_s13 = sphi %s521_s13, %s608_s13   ;;  %s488_s12 = sphi %s519_s12, %s607_s12  }
   0x3   : > { %s17_s17 = ssub.s32 %s496_s14, %s536_s16  ;;  %s20_s18 = sadd.s32 1, %s492_s13 }
   0x4   : > { %p18_p0 = scmp.eq.s32.totalorder %s17_s17, 0  ;;  %p27_p1 = scmp.ne.s32.totalorder %s492_s13, %s488_s12 }
   0x5   : > { %p28_p2 = scmp.eq.s32.totalorder %s496_s14, 0  ;;  %p99_p3 = scmp.eq.s32.totalorder %s402_s15, 1 }
   0x6   : > { %s547_s19 = scalar_select %p18_p0, %s492_s13, %s20_s18  }
   0x7   : > { %p29_p4 = por %p28_p2, %p27_p1  ;;  %p549_p5 = por %p99_p3, %p27_p1 }
   0x8   : > { %p405_p6 = scmp.ge.s32.totalorder %s496_s14, 2 }
   0xa   : > { %127 = sbr.rel (%p405_p6) target bundleno = 23 (0x17), region = 24 }
   0xf   : > { %130 = sbr.rel (!%p29_p4) target bundleno = 23 (0x17), region = 28  ;;  %s132_s21 = sand.u32 (%p29_p4), 1, %s492_s13  }
  0x10   : > { %s441_s22 = sshll.u32 (%p29_p4), %s496_s14, 4  ;;  %s406_s23 = sshll.u32 (%p29_p4), %s132_s21, 5 }
  0x11   : > { %s137_s26 = scalar_lea.vmem (%p29_p4), %s602_s0, %s441_s22  ;;  %s134_s27 = scalar_lea.vmem (%p29_p4), [#allocation2], %s406_s23 }
  0x12   : > { %v150_v0 = vld [vmem:[%s137_s26] sm:$0xff] (%p29_p4)  ;;  %v152_v1 = vld [vmem:[%s137_s26 + $0x8] sm:$0xff] (%p29_p4) }
  0x13   : > { %v154_v2 = vld [vmem:[%s137_s26 + $0x20] sm:$0xff] (%p29_p4)  ;;  %151 = vst [vmem:[%s134_s27] sm:$0xff] (%p29_p4), %v150_v0  ;;  %v156_v3 = vld [vmem:[%s137_s26 + $0x28] sm:$0xff] (%p29_p4) }
  0x14   : > { %153 = vst [vmem:[%s134_s27 + $0x8] sm:$0xff] %v152_v1 }
  0x15   : > { %155 = vst [vmem:[%s134_s27 + $0x10] sm:$0xff] %v154_v2 }
  0x16   : > { %157 = vst [vmem:[%s134_s27 + $0x18] sm:$0xff] %v156_v3 }
  0x17 PF: > { %p409_p7 = scmp.ge.s32.totalorder %s496_s14, 1  ;;  %p162_p8 = scmp.lt.s32.totalorder %s496_s14, 3 }
  0x19   : > { %p163_p9 = pnand %p409_p7, %p162_p8 }
  0x1a   : > { %s169_s28 = sand.u32 (!%p163_p9), 1, %s488_s12  }
  0x1b   : > { %166 = sbr.rel (%p163_p9) target bundleno = 195 (0xc3), region = 51  ;;  %s565_s4 = sshll.u32 (!%p163_p9), %s169_s28, 5 }
  0x1c   : > { %s171_s5 = scalar_lea.vmem (!%p163_p9), [#allocation2], %s565_s4  ;;  %s575_s10 = scalar_lea.vmem (!%p163_p9), [#allocation3], %s565_s4 }
  0x20   : > { %v200_v4 = vld [vmem:[%s604_s2] sm:$0xff]  ;;  %v498_v5 = vmov 0   ;;  %v445_v7 = vld [vmem:[%s171_s5 + $0xc] sm:$0xf0]  ;;  %v420_v10 = vld [vmem:[%s171_s5 + $0x10] sm:$0xf0] }
  0x21   : > { %473 = vset.pattern.permute.xlu0 %v498_v5  ;;  %v418_v6 = vld [vmem:[%s171_s5] sm:$0xf]  ;;  %v443_v8 = vld [vmem:[%s171_s5 + $0x4] sm:$0xf]  ;;  %v426_v11 = vld [vmem:[%s171_s5 + $0x8] sm:$0xf] }
  0x22   : > { %204 = vperm.xlu0 %473, %v200_v4   ;;  %v419_v9 = vor.u32 %v445_v7, %v418_v6  ;;  %v446_v12 = vld [vmem:[%s171_s5 + $0x14] sm:$0xf0]  ;;  %v423_v13 = vor.u32 %v443_v8, %v420_v10  ;;  %v444_v15 = vld [vmem:[%s171_s5 + $0xc] sm:$0xf]  ;;  %v428_v16 = vld [vmem:[%s171_s5 + $0x18] sm:$0xf0] }
  0x23   : > { %v427_v14 = vor.u32 %v446_v12, %v426_v11  ;;  %v442_v17 = vld [vmem:[%s603_s1] sm:$0xff]  ;;  %v431_v18 = vor.u32 %v444_v15, %v428_v16  ;;  %vm237_vm0 = vcmask 130048   ;;  %v201_v19 = vld [vmem:[%s604_s2 + $0x8] sm:$0xff]  ;;  %s447_s11 = sshll.u32 (%p549_p5), %s402_s15, 4 }
  0x24   : > { %248 = vmatpush.bf16.msra.mxu0 %v419_v9  ;;  %262 = vmatpush.bf16.msra.mxu1 %v423_v13  ;;  %s322_s18 = scalar_lea.vmem (%p549_p5), %s605_s3, %s447_s11 }
  0x25   : > { %276 = vmatpush.bf16.msra.mxu2 %v427_v14  ;;  %290 = vmatpush.bf16.msra.mxu3 %v431_v18 }
  0x27   : > { %432 = vmatmul.msk.bf16.vlgmr.msra.gmra.mxu0 %vm237_vm0, %v442_v17  ;;  %433 = vmatmul.msk.bf16.vlgmr.msra.gmra.mxu1 %vm237_vm0, %v442_v17 }
  0x28   : > { %434 = vmatmul.msk.bf16.vlgmr.msra.gmra.mxu2 %vm237_vm0, %v442_v17  ;;  %435 = vmatmul.msk.bf16.vlgmr.msra.gmra.mxu3 %vm237_vm0, %v442_v17 }
  0x2a   : > { %209 = vperm.xlu0 %473, %v201_v19  }
  0x94   : > { %v205_v20 = vpop.permute.xlu0 %204 }
  0x9c   : > { %v210_v28 = vpop.permute.xlu0 %209 }
  0xa4   : > { %v250_v21 = vpop.f32.mrf.mxu0  ;;  %v264_v23 = vpop.f32.mrf.mxu1 }
  0xa5   : > { %v251_v22 = vadd.f32 %v250_v21, %v205_v20  ;;  %v265_v24 = vadd.f32 %v264_v23, %v205_v20 }
  0xa7   : > { %v297_v25 = vmax.f32 %v251_v22, 0.0  ;;  %v298_v26 = vmax.f32 %v265_v24, 0.0 }
  0xa9   : > { %v305_v27 = vpack.c.bf16 %v298_v26, %v297_v25 }
  0xab   : > { %v278_v29 = vpop.f32.mrf.mxu2  ;;  %309 = vst [vmem:[%s575_s10] sm:$0xff] %v305_v27  ;;  %v292_v31 = vpop.f32.mrf.mxu3 }
  0xac   : > { %v279_v30 = vadd.f32 %v278_v29, %v205_v20  ;;  %v252_v32 = vpop.f32.mrf.mxu0  ;;  %v293_v33 = vadd.f32 %v292_v31, %v205_v20  ;;  %v266_v35 = vpop.f32.mrf.mxu1 }
  0xad   : > { %v253_v34 = vadd.f32 %v252_v32, %v210_v28  ;;  %v267_v37 = vadd.f32 %v266_v35, %v210_v28 }
  0xae   : > { %v299_v36 = vmax.f32 %v279_v30, 0.0  ;;  %v300_v38 = vmax.f32 %v293_v33, 0.0 }
  0xaf   : > { %v301_v39 = vmax.f32 %v253_v34, 0.0  ;;  %v302_v40 = vmax.f32 %v267_v37, 0.0 }
  0xb0   : > { %v306_v41 = vpack.c.bf16 %v300_v38, %v299_v36 }
  0xb1   : > { %v307_v42 = vpack.c.bf16 %v302_v40, %v301_v39 }
  0xb2   : > { %310 = vst [vmem:[%s575_s10 + $0x8] sm:$0xff] %v306_v41  ;;  %v335_v50 = vld [vmem:[%s575_s10] sm:$0xff] (%p549_p5) }
  0xb3   : > { %v280_v43 = vpop.f32.mrf.mxu2  ;;  %311 = vst [vmem:[%s575_s10 + $0x10] sm:$0xff] %v307_v42  ;;  %v294_v45 = vpop.f32.mrf.mxu3 }
  0xb4   : > { %v281_v44 = vadd.f32 %v280_v43, %v210_v28  ;;  %v295_v46 = vadd.f32 %v294_v45, %v210_v28  ;;  %336 = vst [vmem:[%s322_s18] sm:$0xff] (%p549_p5), %v335_v50 }
  0xb6   : > { %v303_v47 = vmax.f32 %v281_v44, 0.0  ;;  %v304_v48 = vmax.f32 %v295_v46, 0.0  ;;  %319 = sbr.rel (!%p549_p5) target bundleno = 195 (0xc3), region = 59 }
  0xb8   : > { %v308_v49 = vpack.c.bf16 %v304_v48, %v303_v47 }
  0xb9   : > { %v337_v51 = vld [vmem:[%s575_s10 + $0x8] sm:$0xff] (%p549_p5) }
  0xba   : > { %312 = vst [vmem:[%s575_s10 + $0x18] sm:$0xff] %v308_v49  ;;  %v339_v52 = vld [vmem:[%s575_s10 + $0x10] sm:$0xff] (%p549_p5) }
  0xbb   : > { %338 = vst [vmem:[%s322_s18 + $0x8] sm:$0xff] %v337_v51 }
  0xbc   : > { %340 = vst [vmem:[%s322_s18 + $0x20] sm:$0xff] %v339_v52 }
  0xc1   : > { %v341_v53 = vld [vmem:[%s575_s10 + $0x18] sm:$0xff] }
  0xc2   : > { %342 = vst [vmem:[%s322_s18 + $0x28] sm:$0xff] %v341_v53 }
  0xc3 PF: > { %p10_p10 = scmp.ge.s32.totalorder %s536_s16, 4   ;;  %s607_s12 = smov %s492_s13 }
  0xc4   : > { %s608_s13 = smov %s547_s19  ;;  %s609_s14 = smov %s536_s16 }
  0xc5   :  { %12 = sbr.rel (!%p10_p10) target bundleno = 2 (0x2), region = 113 }

// kernel: _lambda_.6
= control target key start
LH: loop header
LB: loop body
LE: loop exit
PB: predicated region body
PF: predicated region fallthrough
CT: control target
= control target key end

     0   :  { %s876_s12 = smov 0   ;;  %s878_s13 = smov 0   ;;  %s1036_s0 = inlined_call_operand.vmem [shape: bf16[32,2048], index: 0, kind: input, shape index: {}]   ;;  %s1037_s1 = inlined_call_operand.vmem [shape: bf16[32,32], index: 1, kind: input, shape index: {}]   ;;  %s1038_s2 = inlined_call_operand.vmem [shape: f32[32,1], index: 2, kind: input, shape index: {}]   ;;  %s1039_s3 = inlined_call_operand.vmem [shape: bf16[32,256], index: 3, kind: output, shape index: {}]  }
   0x1   :  { %s880_s14 = smov 0  }
   0x2 LB: > { %s672_s15 = sadd.s32 4294967295, %s853_s14   ;;  %s893_s16 = sadd.s32 1, %s853_s14   ;;  %s853_s14 = sphi %s880_s14, %s1043_s14   ;;  %s849_s13 = sphi %s878_s13, %s1042_s13   ;;  %s845_s12 = sphi %s876_s12, %s1041_s12  }
   0x3   : > { %s17_s17 = ssub.s32 %s853_s14, %s893_s16  ;;  %s20_s18 = sadd.s32 1, %s849_s13 }
   0x4   : > { %p18_p0 = scmp.eq.s32.totalorder %s17_s17, 0  ;;  %p27_p1 = scmp.ne.s32.totalorder %s849_s13, %s845_s12 }
   0x5   : > { %p28_p2 = scmp.eq.s32.totalorder %s853_s14, 0  ;;  %p99_p3 = scmp.eq.s32.totalorder %s672_s15, 1 }
   0x6   : > { %s904_s19 = scalar_select %p18_p0, %s849_s13, %s20_s18  }
   0x7   : > { %p29_p4 = por %p28_p2, %p27_p1  ;;  %p906_p5 = por %p99_p3, %p27_p1 }
   0x8   : > { %p675_p6 = scmp.ge.s32.totalorder %s853_s14, 2 }
   0xa   : > { %127 = sbr.rel (%p675_p6) target bundleno = 35 (0x23), region = 24 }
   0xf   : > { %130 = sbr.rel (!%p29_p4) target bundleno = 35 (0x23), region = 28  ;;  %s132_s21 = sand.u32 (%p29_p4), 1, %s849_s13  }
  0x10   : > { %s774_s22 = sshll.u32 (%p29_p4), %s853_s14, 5  ;;  %s676_s23 = sshll.u32 (%p29_p4), %s132_s21, 7 }
  0x11   : > { %s916_s26 = scalar_lea.vmem (%p29_p4), %s1036_s0, %s774_s22  ;;  %s134_s27 = scalar_lea.vmem (%p29_p4), [#allocation2], %s676_s23 }
  0x12   : > { %v150_v0 = vld [vmem:[%s916_s26] sm:$0xff] (%p29_p4)  ;;  %v152_v1 = vld [vmem:[%s916_s26 + $0x8] sm:$0xff] (%p29_p4)  ;;  %v154_v2 = vld [vmem:[%s916_s26 + $0x10] sm:$0xff] (%p29_p4) }
  0x13   : > { %151 = vst [vmem:[%s134_s27] sm:$0xff] (%p29_p4), %v150_v0  ;;  %v156_v3 = vld [vmem:[%s916_s26 + $0x18] sm:$0xff] (%p29_p4)  ;;  %v158_v4 = vld [vmem:[%s916_s26 + $0x40] sm:$0xff] (%p29_p4)  ;;  %v160_v5 = vld [vmem:[%s916_s26 + $0x48] sm:$0xff] (%p29_p4) }
  0x14   : > { %153 = vst [vmem:[%s134_s27 + $0x8] sm:$0xff] %v152_v1  ;;  %v162_v6 = vld [vmem:[%s916_s26 + $0x50] sm:$0xff]  ;;  %v164_v7 = vld [vmem:[%s916_s26 + $0x58] sm:$0xff]  ;;  %v166_v8 = vld [vmem:[%s916_s26 + $0x80] sm:$0xff] }
  0x15   : > { %155 = vst [vmem:[%s134_s27 + $0x10] sm:$0xff] %v154_v2  ;;  %v168_v9 = vld [vmem:[%s916_s26 + $0x88] sm:$0xff]  ;;  %v170_v10 = vld [vmem:[%s916_s26 + $0x90] sm:$0xff]  ;;  %v172_v11 = vld [vmem:[%s916_s26 + $0x98] sm:$0xff] }
  0x16   : > { %157 = vst [vmem:[%s134_s27 + $0x18] sm:$0xff] %v156_v3  ;;  %v174_v12 = vld [vmem:[%s916_s26 + $0xc0] sm:$0xff]  ;;  %v176_v13 = vld [vmem:[%s916_s26 + $0xc8] sm:$0xff]  ;;  %v178_v14 = vld [vmem:[%s916_s26 + $0xd0] sm:$0xff] }
  0x17   : > { %159 = vst [vmem:[%s134_s27 + $0x20] sm:$0xff] %v158_v4  ;;  %v180_v15 = vld [vmem:[%s916_s26 + $0xd8] sm:$0xff] }
  0x18   : > { %161 = vst [vmem:[%s134_s27 + $0x28] sm:$0xff] %v160_v5 }
  0x19   : > { %163 = vst [vmem:[%s134_s27 + $0x30] sm:$0xff] %v162_v6 }
  0x1a   : > { %165 = vst [vmem:[%s134_s27 + $0x38] sm:$0xff] %v164_v7 }
  0x1b   : > { %167 = vst [vmem:[%s134_s27 + $0x40] sm:$0xff] %v166_v8 }
  0x1c   : > { %169 = vst [vmem:[%s134_s27 + $0x48] sm:$0xff] %v168_v9 }
  0x1d   : > { %171 = vst [vmem:[%s134_s27 + $0x50] sm:$0xff] %v170_v10 }
  0x1e   : > { %173 = vst [vmem:[%s134_s27 + $0x58] sm:$0xff] %v172_v11 }
  0x1f   : > { %175 = vst [vmem:[%s134_s27 + $0x60] sm:$0xff] %v174_v12 }
  0x20   : > { %177 = vst [vmem:[%s134_s27 + $0x68] sm:$0xff] %v176_v13 }
  0x21   : > { %179 = vst [vmem:[%s134_s27 + $0x70] sm:$0xff] %v178_v14 }
  0x22   : > { %181 = vst [vmem:[%s134_s27 + $0x78] sm:$0xff] %v180_v15 }
  0x23 PF: > { %p679_p7 = scmp.ge.s32.totalorder %s853_s14, 1  ;;  %p186_p8 = scmp.lt.s32.totalorder %s853_s14, 3 }
  0x25   : > { %p187_p9 = pnand %p679_p7, %p186_p8 }
  0x26   : > { %s193_s28 = sand.u32 (!%p187_p9), 1, %s845_s12  }
  0x27   : > { %190 = sbr.rel (%p187_p9) target bundleno = 264 (0x108), region = 51  ;;  %s680_s29 = sshll.u32 (!%p187_p9), %s193_s28, 7 }
  0x28   : > { %s939_s30 = scalar_lea.vmem (!%p187_p9), [#allocation2], %s680_s29  ;;  %s681_s23 = sshll.u32 (!%p187_p9), %s193_s28, 4 }
  0x29   : > { %s214_s24 = scalar_lea.vmem (!%p187_p9), [#allocation3], %s681_s23 }
  0x2c   : > { %vm327_vm0 = vcmask 261120   ;;  %v724_v16 = vld [vmem:[%s939_s30 + $0x40] sm:$0xf]  ;;  %v785_v18 = vld [vmem:[%s939_s30 + $0x44] sm:$0xf]  ;;  %v776_v1 = vld [vmem:[%s1037_s1 + $0x8] sm:$0xff] }
  0x2d   : > { %v789_v17 = vld [vmem:[%s939_s30 + $0x5c] sm:$0xf0]  ;;  %v726_v20 = vld [vmem:[%s939_s30 + $0x60] sm:$0xf0]  ;;  %v732_v21 = vld [vmem:[%s939_s30 + $0x48] sm:$0xf] }
  0x2e   : > { %v725_v19 = vor.u32 %v789_v17, %v724_v16  ;;  %v790_v22 = vld [vmem:[%s939_s30 + $0x64] sm:$0xf0]  ;;  %v729_v23 = vor.u32 %v785_v18, %v726_v20  ;;  %v786_v25 = vld [vmem:[%s939_s30 + $0x4c] sm:$0xf]  ;;  %v692_v27 = vld [vmem:[%s939_s30] sm:$0xf] }
  0x2f   : > { %v733_v24 = vor.u32 %v790_v22, %v732_v21  ;;  %v734_v26 = vld [vmem:[%s939_s30 + $0x68] sm:$0xf0]  ;;  %v781_v29 = vld [vmem:[%s939_s30 + $0x1c] sm:$0xf0]  ;;  %v777_v30 = vld [vmem:[%s939_s30 + $0x4] sm:$0xf] }
  0x30   : > { %340 = vmatpush.bf16.msra.mxu0 %v725_v19  ;;  %v737_v28 = vor.u32 %v786_v25, %v734_v26  ;;  %v694_v31 = vld [vmem:[%s939_s30 + $0x20] sm:$0xf0]  ;;  %359 = vmatpush.bf16.msra.mxu1 %v729_v23  ;;  %v693_v32 = vor.u32 %v781_v29, %v692_v27  ;;  %v700_v34 = vld [vmem:[%s939_s30 + $0x8] sm:$0xf]  ;;  %v778_v36 = vld [vmem:[%s939_s30 + $0xc] sm:$0xf] }
  0x31   : > { %378 = vmatpush.bf16.msra.mxu2 %v733_v24  ;;  %v697_v33 = vor.u32 %v777_v30, %v694_v31  ;;  %v782_v35 = vld [vmem:[%s939_s30 + $0x24] sm:$0xf0]  ;;  %v959_v37 = vld [vmem:[%s1037_s1] sm:$0xff]  ;;  %v702_v39 = vld [vmem:[%s939_s30 + $0x28] sm:$0xf0]  ;;  %v855_v4 = vmov 0  }
  0x32   : > { %397 = vmatpush.bf16.msra.mxu3 %v737_v28  ;;  %v701_v38 = vor.u32 %v782_v35, %v700_v34  ;;  %v748_v40 = vld [vmem:[%s939_s30 + $0x58] sm:$0xf]  ;;  %v705_v42 = vor.u32 %v778_v36, %v702_v39  ;;  %v740_v44 = vld [vmem:[%s939_s30 + $0x50] sm:$0xf]  ;;  %v788_v46 = vld [vmem:[%s939_s30 + $0x5c] sm:$0xf]  ;;  %829 = vset.pattern.permute.xlu0 %v855_v4 }
  0x33   : > { %v792_v41 = vld [vmem:[%s939_s30 + $0x74] sm:$0xf0]  ;;  %v791_v45 = vld [vmem:[%s939_s30 + $0x6c] sm:$0xf0]  ;;  %v750_v47 = vld [vmem:[%s939_s30 + $0x78] sm:$0xf0]  ;;  %830 = vset.pattern.permute.xlu1 %v855_v4 }
  0x34   : > { %v749_v43 = vor.u32 %v792_v41, %v748_v40  ;;  %341 = vmatpush.bf16.msra.mxu0 %v693_v32  ;;  %v787_v48 = vld [vmem:[%s939_s30 + $0x54] sm:$0xf]  ;;  %360 = vmatpush.bf16.msra.mxu1 %v697_v33  ;;  %v741_v50 = vor.u32 %v791_v45, %v740_v44  ;;  %v753_v51 = vor.u32 %v788_v46, %v750_v47  ;;  %v716_v52 = vld [vmem:[%s939_s30 + $0x18] sm:$0xf]  ;;  %v708_v54 = vld [vmem:[%s939_s30 + $0x10] sm:$0xf] }
  0x35   : > { %v742_v49 = vld [vmem:[%s939_s30 + $0x70] sm:$0xf0]  ;;  %379 = vmatpush.bf16.msra.mxu2 %v701_v38  ;;  %v784_v53 = vld [vmem:[%s939_s30 + $0x34] sm:$0xf0]  ;;  %v783_v57 = vld [vmem:[%s939_s30 + $0x2c] sm:$0xf0] }
  0x36   : > { %398 = vmatpush.bf16.msra.mxu3 %v705_v42  ;;  %v745_v55 = vor.u32 %v787_v48, %v742_v49  ;;  %v717_v56 = vor.u32 %v784_v53, %v716_v52  ;;  %v780_v58 = vld [vmem:[%s939_s30 + $0x1c] sm:$0xf]  ;;  %v779_v61 = vld [vmem:[%s939_s30 + $0x14] sm:$0xf]  ;;  %v709_v63 = vor.u32 %v783_v57, %v708_v54  ;;  %v514_v2 = vld [vmem:[%s1038_s2] sm:$0xff]  ;;  %s771_s12 = sshll.u32 (%p906_p5), %s672_s15, 2 }
  0x37   : > { %v718_v59 = vld [vmem:[%s939_s30 + $0x38] sm:$0xf0]  ;;  %754 = vmatmul.msk.bf16.vlgmr.msra.gmra.mxu0 %vm327_vm0, %v959_v37  ;;  %v710_v62 = vld [vmem:[%s939_s30 + $0x30] sm:$0xf0]  ;;  %756 = vmatmul.msk.bf16.vlgmr.msra.gmra.mxu1 %vm327_vm0, %v959_v37  ;;  %v515_v5 = vld [vmem:[%s1038_s2 + $0x8] sm:$0xff]  ;;  %s562_s27 = scalar_lea.vmem (%p906_p5), %s1039_s3, %s771_s12 }
  0x38   : > { %v721_v60 = vor.u32 %v780_v58, %v718_v59  ;;  %758 = vmatmul.msk.bf16.vlgmr.msra.gmra.mxu2 %vm327_vm0, %v959_v37  ;;  %416 = vmatpush.bf16.msrb.mxu0 %v741_v50  ;;  %v713_v0 = vor.u32 %v779_v61, %v710_v62  ;;  %v516_v3 = vld [vmem:[%s1038_s2 + $0x10] sm:$0xff]  ;;  %v517_v6 = vld [vmem:[%s1038_s2 + $0x18] sm:$0xff] }
  0x39   : > { %454 = vmatpush.bf16.msrb.mxu2 %v749_v43  ;;  %760 = vmatmul.msk.bf16.vlgmr.msra.gmra.mxu3 %vm327_vm0, %v959_v37 }
  0x3a   : > { %473 = vmatpush.bf16.msrb.mxu3 %v753_v51  ;;  %435 = vmatpush.bf16.msrb.mxu1 %v745_v55 }
  0x3b   : > { %520 = vperm.xlu0 %829, %v514_v2   ;;  %530 = vperm.xlu1 %830, %v516_v3  }
  0x3c   : > { %417 = vmatpush.bf16.msrb.mxu0 %v709_v63 }
  0x3d   : > { %455 = vmatpush.bf16.msrb.mxu2 %v717_v56 }
  0x3e   : > { %474 = vmatpush.bf16.msrb.mxu3 %v721_v60  ;;  %436 = vmatpush.bf16.msrb.mxu1 %v713_v0 }
  0x43   : > { %525 = vperm.xlu0 %829, %v515_v5   ;;  %535 = vperm.xlu1 %830, %v517_v6  }
  0x47   : > { %755 = vmatmul.msk.bf16.gmra.mxu0 %vm327_vm0, %v776_v1  ;;  %757 = vmatmul.msk.bf16.gmra.mxu1 %vm327_vm0, %v776_v1 }
  0x48   : > { %759 = vmatmul.msk.bf16.gmra.mxu2 %vm327_vm0, %v776_v1 }
  0x49   : > { %761 = vmatmul.msk.bf16.gmra.mxu3 %vm327_vm0, %v776_v1 }
  0x57   : > { %762 = vmatmul.msk.bf16.vlgmr.msrb.gmra.mxu0 %vm327_vm0, %v959_v37  ;;  %764 = vmatmul.msk.bf16.vlgmr.msrb.gmra.mxu1 %vm327_vm0, %v959_v37 }
  0x58   : > { %766 = vmatmul.msk.bf16.vlgmr.msrb.gmra.mxu2 %vm327_vm0, %v959_v37 }
  0x59   : > { %768 = vmatmul.msk.bf16.vlgmr.msrb.gmra.mxu3 %vm327_vm0, %v959_v37 }
  0x67   : > { %763 = vmatmul.msk.bf16.gmra.mxu0 %vm327_vm0, %v776_v1  ;;  %765 = vmatmul.msk.bf16.gmra.mxu1 %vm327_vm0, %v776_v1 }
  0x68   : > { %767 = vmatmul.msk.bf16.gmra.mxu2 %vm327_vm0, %v776_v1 }
  0x69   : > { %769 = vmatmul.msk.bf16.gmra.mxu3 %vm327_vm0, %v776_v1 }
  0xad   : > { %v521_v32 = vpop.permute.xlu0 %520  ;;  %v531_v1 = vpop.permute.xlu1 %530 }
  0xb4   : > { %v343_v7 = vpop.f32.mrf.mxu0  ;;  %v362_v8 = vpop.f32.mrf.mxu1 }
  0xb5   : > { %v486_v21 = vmax.f32 %v343_v7, %v362_v8  ;;  %v526_v48 = vpop.permute.xlu0 %525 }
  0xbb   : > { %v381_v9 = vpop.f32.mrf.mxu2 }
  0xbc   : > { %v400_v10 = vpop.f32.mrf.mxu3  ;;  %v345_v11 = vpop.f32.mrf.mxu0  ;;  %v490_v22 = vmax.f32 %v486_v21, %v381_v9 }
  0xbd   : > { %v364_v12 = vpop.f32.mrf.mxu1 }
  0xbe   : > { %v494_v27 = vmax.f32 %v490_v22, %v400_v10  ;;  %v487_v28 = vmax.f32 %v345_v11, %v364_v12  ;;  %v536_v12 = vpop.permute.xlu1 %535 }
  0xc3   : > { %v383_v13 = vpop.f32.mrf.mxu2 }
  0xc4   : > { %v402_v14 = vpop.f32.mrf.mxu3  ;;  %v348_v15 = vpop.f32.mrf.mxu0  ;;  %v491_v29 = vmax.f32 %v487_v28, %v383_v13 }
  0xc5   : > { %v367_v16 = vpop.f32.mrf.mxu1 }
  0xc6   : > { %v495_v33 = vmax.f32 %v491_v29, %v402_v14  ;;  %v488_v40 = vmax.f32 %v348_v15, %v367_v16 }
  0xcb   : > { %v386_v17 = vpop.f32.mrf.mxu2 }
  0xcc   : > { %v405_v18 = vpop.f32.mrf.mxu3  ;;  %v350_v19 = vpop.f32.mrf.mxu0  ;;  %v492_v41 = vmax.f32 %v488_v40, %v386_v17 }
  0xcd   : > { %v369_v20 = vpop.f32.mrf.mxu1 }
  0xce   : > { %v496_v49 = vmax.f32 %v492_v41, %v405_v18  ;;  %v489_v50 = vmax.f32 %v350_v19, %v369_v20 }
  0xd3   : > { %v388_v23 = vpop.f32.mrf.mxu2 }
  0xd4   : > { %v407_v24 = vpop.f32.mrf.mxu3  ;;  %v419_v25 = vpop.f32.mrf.mxu0  ;;  %v493_v54 = vmax.f32 %v489_v50, %v388_v23 }
  0xd5   : > { %v438_v26 = vpop.f32.mrf.mxu1  ;;  %v498_v30 = vmax.f32 %v494_v27, %v419_v25 }
  0xd6   : > { %v497_v60 = vmax.f32 %v493_v54, %v407_v24 }
  0xd7   : > { %v502_v34 = vmax.f32 %v498_v30, %v438_v26 }
  0xdb   : > { %v457_v31 = vpop.f32.mrf.mxu2 }
  0xdc   : > { %v476_v35 = vpop.f32.mrf.mxu3  ;;  %v421_v36 = vpop.f32.mrf.mxu0  ;;  %v506_v38 = vmax.f32 %v502_v34, %v457_v31 }
  0xdd   : > { %v440_v37 = vpop.f32.mrf.mxu1  ;;  %v499_v39 = vmax.f32 %v495_v33, %v421_v36 }
  0xde   : > { %v510_v42 = vmax.f32 %v506_v38, %v476_v35 }
  0xdf   : > { %v503_v43 = vmax.f32 %v499_v39, %v440_v37 }
  0xe0   : > { %v538_v51 = vadd.f32 %v521_v32, %v510_v42 }
  0xe2   : > { %v542_v57 = vmax.f32 %v538_v51, 0.0 }
  0xe3   : > { %v459_v44 = vpop.f32.mrf.mxu2 }
  0xe4   : > { %v507_v45 = vmax.f32 %v503_v43, %v459_v44  ;;  %v478_v46 = vpop.f32.mrf.mxu3  ;;  %v424_v47 = vpop.f32.mrf.mxu0 }
  0xe5   : > { %v443_v53 = vpop.f32.mrf.mxu1  ;;  %v500_v55 = vmax.f32 %v496_v49, %v424_v47 }
  0xe6   : > { %v511_v52 = vmax.f32 %v507_v45, %v478_v46 }
  0xe7   : > { %v504_v61 = vmax.f32 %v500_v55, %v443_v53 }
  0xe8   : > { %v539_v56 = vadd.f32 %v526_v48, %v511_v52 }
  0xea   : > { %v543_v58 = vmax.f32 %v539_v56, 0.0 }
  0xeb   : > { %v462_v59 = vpop.f32.mrf.mxu2 }
  0xec   : > { %v796_v62 = vpack.c.bf16 %v543_v58, %v542_v57  ;;  %v481_v63 = vpop.f32.mrf.mxu3  ;;  %v426_v0 = vpop.f32.mrf.mxu0  ;;  %v508_v2 = vmax.f32 %v504_v61, %v462_v59 }
  0xed   : > { %v501_v3 = vmax.f32 %v497_v60, %v426_v0  ;;  %v445_v4 = vpop.f32.mrf.mxu1 }
  0xee   : > { %797 = vst [vmem:[%s214_s24] sm:$0xff] %v796_v62   ;;  %v512_v5 = vmax.f32 %v508_v2, %v481_v63 }
  0xef   : > { %v505_v6 = vmax.f32 %v501_v3, %v445_v4 }
  0xf0   : > { %v540_v10 = vadd.f32 %v531_v1, %v512_v5 }
  0xf2   : > { %v544_v14 = vmax.f32 %v540_v10, 0.0 }
  0xf3   : > { %v464_v7 = vpop.f32.mrf.mxu2 }
  0xf4   : > { %v509_v8 = vmax.f32 %v505_v6, %v464_v7  ;;  %v483_v9 = vpop.f32.mrf.mxu3 }
  0xf5   : > { %v579_v17 = vld [vmem:[%s214_s24] sm:$0xf] (%p906_p5)  ;;  %v581_v18 = vld [vmem:[%s214_s24 + $0x4] sm:$0xf] (%p906_p5) }
  0xf6   : > { %v513_v11 = vmax.f32 %v509_v8, %v483_v9  ;;  %580 = vst [vmem:[%s562_s27] sm:$0xf] (%p906_p5), %v579_v17 }
  0xf7   : > { %582 = vst [vmem:[%s562_s27 + $0x8] sm:$0xf] (%p906_p5), %v581_v18 }
  0xf8   : > { %v541_v13 = vadd.f32 %v536_v12, %v513_v11 }
  0xfa   : > { %v545_v15 = vmax.f32 %v541_v13, 0.0  ;;  %560 = sbr.rel (!%p906_p5) target bundleno = 264 (0x108), region = 59 }
  0xfc   : > { %v801_v16 = vpack.c.bf16 %v545_v15, %v544_v14 }
  0xfe   : > { %803 = vst [vmem:[%s214_s24 + $0x8] sm:$0xff] %v801_v16  }
 0x105   : > { %v583_v19 = vld [vmem:[%s214_s24 + $0x8] sm:$0xf]  ;;  %v585_v20 = vld [vmem:[%s214_s24 + $0xc] sm:$0xf] }
 0x106   : > { %584 = vst [vmem:[%s562_s27 + $0x10] sm:$0xf] %v583_v19 }
 0x107   : > { %586 = vst [vmem:[%s562_s27 + $0x18] sm:$0xf] %v585_v20 }
 0x108 PF: > { %p10_p10 = scmp.ge.s32.totalorder %s893_s16, 4   ;;  %s1041_s12 = smov %s849_s13 }
 0x109   : > { %s1042_s13 = smov %s904_s19  ;;  %s1043_s14 = smov %s893_s16 }
 0x10a   :  { %12 = sbr.rel (!%p10_p10) target bundleno = 2 (0x2), region = 131 }

// kernel: neg.28
= control target key start
LH: loop header
LB: loop body
LE: loop exit
PB: predicated region body
PF: predicated region fallthrough
CT: control target
= control target key end

     0   :  { %s136_s0 = inlined_call_operand.vmem [shape: f32[2,128,32], index: 0, kind: input, shape index: {}]   ;;  %s137_s1 = inlined_call_operand.vmem [shape: f32[2,128,32], index: 1, kind: output, shape index: {}]  }
   0x1   :  { %v2_v0 = vld [vmem:[%s136_s0] sm:$0xff]  ;;  %v66_v2 = vld [vmem:[%s136_s0 + $0x8] sm:$0xff]  ;;  %v70_v7 = vld [vmem:[%s136_s0 + $0x10] sm:$0xff] }
   0x2   :  { %v64_v1 = vld [vmem:[%s136_s0 + $0x20] sm:$0xff]  ;;  %v5_v3 = vxor.u32 2147483648, %v2_v0  ;;  %v20_v5 = vxor.u32 2147483648, %v66_v2  ;;  %v68_v6 = vld [vmem:[%s136_s0 + $0x28] sm:$0xff]  ;;  %v72_v8 = vld [vmem:[%s136_s0 + $0x30] sm:$0xff]  ;;  %v36_v11 = vxor.u32 2147483648, %v70_v7 }
   0x3   :  { %v12_v4 = vxor.u32 2147483648, %v64_v1  ;;  %v28_v9 = vxor.u32 2147483648, %v68_v6  ;;  %v74_v10 = vld [vmem:[%s136_s0 + $0x18] sm:$0xff]  ;;  %v44_v13 = vxor.u32 2147483648, %v72_v8 }
   0x4   :  { %7 = vst [vmem:[%s137_s1] sm:$0xff] %v5_v3  ;;  %v76_v12 = vld [vmem:[%s136_s0 + $0x38] sm:$0xff]  ;;  %v52_v14 = vxor.u32 2147483648, %v74_v10 }
   0x5   :  { %65 = vst [vmem:[%s137_s1 + $0x20] sm:$0xff] %v12_v4  ;;  %v60_v15 = vxor.u32 2147483648, %v76_v12 }
   0x6   :  { %67 = vst [vmem:[%s137_s1 + $0x8] sm:$0xff] %v20_v5 }
   0x7   :  { %69 = vst [vmem:[%s137_s1 + $0x28] sm:$0xff] %v28_v9 }
   0x8   :  { %71 = vst [vmem:[%s137_s1 + $0x10] sm:$0xff] %v36_v11 }
   0x9   :  { %73 = vst [vmem:[%s137_s1 + $0x30] sm:$0xff] %v44_v13 }
   0xa   :  { %75 = vst [vmem:[%s137_s1 + $0x18] sm:$0xff] %v52_v14 }
   0xb   :  { %77 = vst [vmem:[%s137_s1 + $0x38] sm:$0xff] %v60_v15 }

// kernel: _lambda_.7
= control target key start
LH: loop header
LB: loop body
LE: loop exit
PB: predicated region body
PF: predicated region fallthrough
CT: control target
= control target key end

     0   :  { %s1633_s27 = smov 0   ;;  %s1635_s28 = smov 0   ;;  %s1954_s0 = inlined_call_operand.vmem [shape: bf16[48,2048], index: 0, kind: input, shape index: {}]   ;;  %s1955_s1 = inlined_call_operand.vmem [shape: bf16[32,256], index: 1, kind: input, shape index: {}]   ;;  %s1956_s2 = inlined_call_operand.vmem [shape: bf16[32,48], index: 2, kind: input, shape index: {}]   ;;  %s1957_s3 = inlined_call_operand.vmem [shape: f32[32,1], index: 3, kind: input, shape index: {}]   ;;  %s1958_s4 = inlined_call_operand.vmem [shape: bf16[128,32], index: 4, kind: input, shape index: {}]   ;;  %s1959_s5 = inlined_call_operand.vmem [shape: f32[128,1], index: 5, kind: input, shape index: {}]   ;;  %s1960_s6 = inlined_call_operand.vmem [shape: bf16[32,128], index: 6, kind: input, shape index: {}]   ;;  %s1961_s7 = inlined_call_operand.vmem [shape: f32[32,1], index: 7, kind: input, shape index: {}]   ;;  %s1962_s8 = inlined_call_operand.vmem [shape: bf16[32,256], index: 8, kind: output, shape index: {}]  }
   0x1   :  { %s1637_s29 = smov 0  }
   0x2 LB: > { %s1291_s30 = sadd.s32 4294967295, %s1585_s29   ;;  %s1650_s9 = sadd.s32 1, %s1585_s29   ;;  %s1585_s29 = sphi %s1637_s29, %s1967_s29   ;;  %s1581_s28 = sphi %s1635_s28, %s1966_s28   ;;  %s1577_s27 = sphi %s1633_s27, %s1965_s27  }
   0x3   : > { %s22_s10 = ssub.s32 %s1585_s29, %s1650_s9  ;;  %s25_s11 = sadd.s32 1, %s1581_s28 }
   0x4   : > { %p23_p0 = scmp.eq.s32.totalorder %s22_s10, 0  ;;  %p32_p1 = scmp.ne.s32.totalorder %s1581_s28, %s1577_s27 }
   0x5   : > { %p33_p2 = scmp.eq.s32.totalorder %s1585_s29, 0  ;;  %p214_p3 = scmp.eq.s32.totalorder %s1291_s30, 1 }
   0x6   : > { %s1661_s12 = scalar_select %p23_p0, %s1581_s28, %s25_s11  }
   0x7   : > { %p1663_p4 = por %p33_p2, %p32_p1  ;;  %p1667_p5 = por %p214_p3, %p32_p1 }
   0x8   : > { %p1294_p6 = scmp.ge.s32.totalorder %s1585_s29, 2 }
   0xa   : > { %254 = sbr.rel (%p1294_p6) target bundleno = 51 (0x33), region = 40 }
   0xf   : > { %257 = sbr.rel (!%p1663_p4) target bundleno = 43 (0x2b), region = 44  ;;  %s259_s15 = sand.u32 (%p1663_p4), 1, %s1581_s28  }
  0x10   : > { %s1474_s16 = sshll.u32 (%p1663_p4), %s1585_s29, 5  ;;  %s1533_s17 = smul.u32 (%p1663_p4), 192, %s259_s15 }
  0x11   : > { %s1679_s20 = scalar_lea.vmem (%p1663_p4), %s1954_s0, %s1474_s16 }
  0x12   : > { %v277_v0 = vld [vmem:[%s1679_s20] sm:$0xff] (%p1663_p4)  ;;  %v279_v1 = vld [vmem:[%s1679_s20 + $0x8] sm:$0xff] (%p1663_p4)  ;;  %v281_v2 = vld [vmem:[%s1679_s20 + $0x10] sm:$0xff] (%p1663_p4)  ;;  %s1684_s21 = scalar_lea.vmem (%p1663_p4), [#allocation2], %s1533_s17 }
  0x13   : > { %278 = vst [vmem:[%s1684_s21] sm:$0xff] (%p1663_p4), %v277_v0  ;;  %v283_v3 = vld [vmem:[%s1679_s20 + $0x18] sm:$0xff] (%p1663_p4)  ;;  %v285_v4 = vld [vmem:[%s1679_s20 + $0x40] sm:$0xff] (%p1663_p4)  ;;  %v287_v5 = vld [vmem:[%s1679_s20 + $0x48] sm:$0xff] (%p1663_p4) }
  0x14   : > { %280 = vst [vmem:[%s1684_s21 + $0x8] sm:$0xff] %v279_v1  ;;  %v289_v6 = vld [vmem:[%s1679_s20 + $0x50] sm:$0xff]  ;;  %v291_v7 = vld [vmem:[%s1679_s20 + $0x58] sm:$0xff]  ;;  %v293_v8 = vld [vmem:[%s1679_s20 + $0x80] sm:$0xff] }
  0x15   : > { %282 = vst [vmem:[%s1684_s21 + $0x10] sm:$0xff] %v281_v2  ;;  %v295_v9 = vld [vmem:[%s1679_s20 + $0x88] sm:$0xff]  ;;  %v297_v10 = vld [vmem:[%s1679_s20 + $0x90] sm:$0xff]  ;;  %v299_v11 = vld [vmem:[%s1679_s20 + $0x98] sm:$0xff] }
  0x16   : > { %284 = vst [vmem:[%s1684_s21 + $0x18] sm:$0xff] %v283_v3  ;;  %v301_v12 = vld [vmem:[%s1679_s20 + $0xc0] sm:$0xff]  ;;  %v303_v13 = vld [vmem:[%s1679_s20 + $0xc8] sm:$0xff]  ;;  %v305_v14 = vld [vmem:[%s1679_s20 + $0xd0] sm:$0xff] }
  0x17   : > { %286 = vst [vmem:[%s1684_s21 + $0x20] sm:$0xff] %v285_v4  ;;  %v307_v15 = vld [vmem:[%s1679_s20 + $0xd8] sm:$0xff]  ;;  %v309_v16 = vld [vmem:[%s1679_s20 + $0x100] sm:$0xff]  ;;  %v311_v17 = vld [vmem:[%s1679_s20 + $0x108] sm:$0xff] }
  0x18   : > { %288 = vst [vmem:[%s1684_s21 + $0x28] sm:$0xff] %v287_v5  ;;  %v313_v18 = vld [vmem:[%s1679_s20 + $0x110] sm:$0xff]  ;;  %v315_v19 = vld [vmem:[%s1679_s20 + $0x118] sm:$0xff]  ;;  %v317_v20 = vld [vmem:[%s1679_s20 + $0x140] sm:$0xff] }
  0x19   : > { %290 = vst [vmem:[%s1684_s21 + $0x30] sm:$0xff] %v289_v6  ;;  %v319_v21 = vld [vmem:[%s1679_s20 + $0x148] sm:$0xff]  ;;  %v321_v22 = vld [vmem:[%s1679_s20 + $0x150] sm:$0xff]  ;;  %v323_v23 = vld [vmem:[%s1679_s20 + $0x158] sm:$0xff] }
  0x1a   : > { %292 = vst [vmem:[%s1684_s21 + $0x38] sm:$0xff] %v291_v7 }
  0x1b   : > { %294 = vst [vmem:[%s1684_s21 + $0x40] sm:$0xff] %v293_v8 }
  0x1c   : > { %296 = vst [vmem:[%s1684_s21 + $0x48] sm:$0xff] %v295_v9 }
  0x1d   : > { %298 = vst [vmem:[%s1684_s21 + $0x50] sm:$0xff] %v297_v10 }
  0x1e   : > { %300 = vst [vmem:[%s1684_s21 + $0x58] sm:$0xff] %v299_v11 }
  0x1f   : > { %302 = vst [vmem:[%s1684_s21 + $0x60] sm:$0xff] %v301_v12 }
  0x20   : > { %304 = vst [vmem:[%s1684_s21 + $0x68] sm:$0xff] %v303_v13 }
  0x21   : > { %306 = vst [vmem:[%s1684_s21 + $0x70] sm:$0xff] %v305_v14 }
  0x22   : > { %308 = vst [vmem:[%s1684_s21 + $0x78] sm:$0xff] %v307_v15 }
  0x23   : > { %310 = vst [vmem:[%s1684_s21 + $0x80] sm:$0xff] %v309_v16 }
  0x24   : > { %312 = vst [vmem:[%s1684_s21 + $0x88] sm:$0xff] %v311_v17 }
  0x25   : > { %314 = vst [vmem:[%s1684_s21 + $0x90] sm:$0xff] %v313_v18 }
  0x26   : > { %316 = vst [vmem:[%s1684_s21 + $0x98] sm:$0xff] %v315_v19 }
  0x27   : > { %318 = vst [vmem:[%s1684_s21 + $0xa0] sm:$0xff] %v317_v20 }
  0x28   : > { %320 = vst [vmem:[%s1684_s21 + $0xa8] sm:$0xff] %v319_v21 }
  0x29   : > { %322 = vst [vmem:[%s1684_s21 + $0xb0] sm:$0xff] %v321_v22 }
  0x2a   : > { %324 = vst [vmem:[%s1684_s21 + $0xb8] sm:$0xff] %v323_v23 }
  0x2b PF: > { %330 = sbr.rel (!%p1663_p4) target bundleno = 51 (0x33), region = 67  ;;  %s332_s22 = sand.u32 (%p1663_p4), 1, %s1581_s28  }
  0x2c   : > { %s1298_s23 = sshll.u32 (%p1663_p4), %s1585_s29, 2  ;;  %s1297_s24 = sshll.u32 (%p1663_p4), %s332_s22, 4 }
  0x2d   : > { %s336_s10 = scalar_lea.vmem (%p1663_p4), %s1955_s1, %s1298_s23  ;;  %s334_s11 = scalar_lea.vmem (%p1663_p4), [#allocation3], %s1297_s24 }
  0x2e   : > { %v353_v24 = vld [vmem:[%s336_s10] sm:$0xf] (%p1663_p4)  ;;  %v355_v25 = vld [vmem:[%s336_s10 + $0x8] sm:$0xf] (%p1663_p4)  ;;  %v357_v26 = vld [vmem:[%s336_s10 + $0x10] sm:$0xf] (%p1663_p4) }
  0x2f   : > { %354 = vst [vmem:[%s334_s11] sm:$0xf] (%p1663_p4), %v353_v24  ;;  %v359_v27 = vld [vmem:[%s336_s10 + $0x18] sm:$0xf] (%p1663_p4) }
  0x30   : > { %356 = vst [vmem:[%s334_s11 + $0x4] sm:$0xf] %v355_v25 }
  0x31   : > { %358 = vst [vmem:[%s334_s11 + $0x8] sm:$0xf] %v357_v26 }
  0x32   : > { %360 = vst [vmem:[%s334_s11 + $0xc] sm:$0xf] %v359_v27 }
  0x33 PF: > { %p1299_p7 = scmp.ge.s32.totalorder %s1585_s29, 1  ;;  %p391_p8 = scmp.lt.s32.totalorder %s1585_s29, 3 }
  0x35   : > { %p392_p9 = pnand %p1299_p7, %p391_p8 }
  0x36   : > { %s398_s13 = sand.u32 (!%p392_p9), 1, %s1577_s27  }
  0x37   : > { %395 = sbr.rel (%p392_p9) target bundleno = 719 (0x2cf), region = 108 }
  0x38   : > { %s1534_s15 = smul.u32 (!%p392_p9), 192, %s398_s13 }
  0x3a   : > { %s1743_s16 = scalar_lea.vmem (!%p392_p9), [#allocation2], %s1534_s15 }
  0x3c   : > { %v1384_v28 = vld [vmem:[%s1743_s16 + $0x88] sm:$0xf]  ;;  %v1376_v30 = vld [vmem:[%s1743_s16 + $0x80] sm:$0xf]  ;;  %v1493_v33 = vld [vmem:[%s1743_s16 + $0x84] sm:$0xf] }
  0x3d   : > { %v1498_v29 = vld [vmem:[%s1743_s16 + $0xa4] sm:$0xf0]  ;;  %v1497_v32 = vld [vmem:[%s1743_s16 + $0x9c] sm:$0xf0]  ;;  %v1378_v34 = vld [vmem:[%s1743_s16 + $0xa0] sm:$0xf0] }
  0x3e   : > { %v1385_v31 = vor.u32 %v1498_v29, %v1384_v28  ;;  %v1377_v35 = vor.u32 %v1497_v32, %v1376_v30  ;;  %v1381_v36 = vor.u32 %v1493_v33, %v1378_v34  ;;  %v1352_v37 = vld [vmem:[%s1743_s16 + $0x48] sm:$0xf]  ;;  %v1344_v39 = vld [vmem:[%s1743_s16 + $0x40] sm:$0xf]  ;;  %v1485_v42 = vld [vmem:[%s1743_s16 + $0x44] sm:$0xf] }
  0x3f   : > { %v1490_v38 = vld [vmem:[%s1743_s16 + $0x64] sm:$0xf0]  ;;  %v1489_v41 = vld [vmem:[%s1743_s16 + $0x5c] sm:$0xf0]  ;;  %v1346_v43 = vld [vmem:[%s1743_s16 + $0x60] sm:$0xf0] }
  0x40   : > { %651 = vmatpush.bf16.msra.mxu3 %v1385_v31  ;;  %v1353_v40 = vor.u32 %v1490_v38, %v1352_v37  ;;  %613 = vmatpush.bf16.msra.mxu0 %v1377_v35  ;;  %v1345_v44 = vor.u32 %v1489_v41, %v1344_v39  ;;  %v1349_v45 = vor.u32 %v1485_v42, %v1346_v43  ;;  %v1320_v46 = vld [vmem:[%s1743_s16 + $0x8] sm:$0xf]  ;;  %v1312_v48 = vld [vmem:[%s1743_s16] sm:$0xf]  ;;  %v1477_v50 = vld [vmem:[%s1743_s16 + $0x4] sm:$0xf] }
  0x41   : > { %632 = vmatpush.bf16.msra.mxu1 %v1381_v36  ;;  %v1482_v47 = vld [vmem:[%s1743_s16 + $0x24] sm:$0xf0]  ;;  %v1481_v49 = vld [vmem:[%s1743_s16 + $0x1c] sm:$0xf0]  ;;  %v1314_v51 = vld [vmem:[%s1743_s16 + $0x20] sm:$0xf0] }
  0x42   : > { %v1494_v52 = vld [vmem:[%s1743_s16 + $0x8c] sm:$0xf]  ;;  %v1321_v54 = vor.u32 %v1482_v47, %v1320_v46  ;;  %v1400_v55 = vld [vmem:[%s1743_s16 + $0x98] sm:$0xf]  ;;  %v1770_v57 = vld [vmem:[%s1956_s2] sm:$0xff]  ;;  %v1313_v58 = vor.u32 %v1481_v49, %v1312_v48  ;;  %v1317_v59 = vor.u32 %v1477_v50, %v1314_v51  ;;  %vm601_vm0 = vcmask 392192  }
  0x43   : > { %v1386_v53 = vld [vmem:[%s1743_s16 + $0xa8] sm:$0xf0]  ;;  %v1500_v56 = vld [vmem:[%s1743_s16 + $0xb4] sm:$0xf0]  ;;  %v1392_v62 = vld [vmem:[%s1743_s16 + $0x90] sm:$0xf] }
  0x44   : > { %652 = vmatpush.bf16.msra.mxu3 %v1353_v40  ;;  %614 = vmatpush.bf16.msra.mxu0 %v1345_v44  ;;  %v1486_v60 = vld [vmem:[%s1743_s16 + $0x4c] sm:$0xf]  ;;  %v1401_v61 = vor.u32 %v1500_v56, %v1400_v55  ;;  %v1389_v63 = vor.u32 %v1494_v52, %v1386_v53  ;;  %v1499_v0 = vld [vmem:[%s1743_s16 + $0xac] sm:$0xf0]  ;;  %v1495_v1 = vld [vmem:[%s1743_s16 + $0x94] sm:$0xf] }
  0x45   : > { %633 = vmatpush.bf16.msra.mxu1 %v1349_v45  ;;  %v1394_v2 = vld [vmem:[%s1743_s16 + $0xb0] sm:$0xf0]  ;;  %v1354_v3 = vld [vmem:[%s1743_s16 + $0x68] sm:$0xf0]  ;;  %v1393_v4 = vor.u32 %v1499_v0, %v1392_v62  ;;  %v1368_v6 = vld [vmem:[%s1743_s16 + $0x58] sm:$0xf] }
  0x46   : > { %727 = vmatpush.bf16.msra.mxu2 %v1401_v61  ;;  %v1397_v5 = vor.u32 %v1495_v1, %v1394_v2  ;;  %v1492_v7 = vld [vmem:[%s1743_s16 + $0x74] sm:$0xf0]  ;;  %v1360_v9 = vld [vmem:[%s1743_s16 + $0x50] sm:$0xf]  ;;  %v1357_v11 = vor.u32 %v1486_v60, %v1354_v3  ;;  %v1478_v12 = vld [vmem:[%s1743_s16 + $0xc] sm:$0xf] }
  0x47   : > { %v1369_v8 = vor.u32 %v1492_v7, %v1368_v6  ;;  %v1491_v10 = vld [vmem:[%s1743_s16 + $0x6c] sm:$0xf0]  ;;  %v1322_v13 = vld [vmem:[%s1743_s16 + $0x28] sm:$0xf0]  ;;  %v1487_v15 = vld [vmem:[%s1743_s16 + $0x54] sm:$0xf] }
  0x48   : > { %653 = vmatpush.bf16.msra.mxu3 %v1321_v54  ;;  %615 = vmatpush.bf16.msra.mxu0 %v1313_v58  ;;  %v1361_v14 = vor.u32 %v1491_v10, %v1360_v9  ;;  %v1362_v16 = vld [vmem:[%s1743_s16 + $0x70] sm:$0xf0]  ;;  %v1336_v17 = vld [vmem:[%s1743_s16 + $0x18] sm:$0xf]  ;;  %v1328_v20 = vld [vmem:[%s1743_s16 + $0x10] sm:$0xf]  ;;  %v1325_v26 = vor.u32 %v1478_v12, %v1322_v13 }
  0x49   : > { %634 = vmatpush.bf16.msra.mxu1 %v1317_v59  ;;  %v1365_v18 = vor.u32 %v1487_v15, %v1362_v16  ;;  %v1484_v19 = vld [vmem:[%s1743_s16 + $0x34] sm:$0xf0]  ;;  %v1483_v21 = vld [vmem:[%s1743_s16 + $0x2c] sm:$0xf0]  ;;  %v1479_v23 = vld [vmem:[%s1743_s16 + $0x14] sm:$0xf] }
  0x4a   : > { %728 = vmatpush.bf16.msra.mxu2 %v1369_v8  ;;  %v1337_v22 = vor.u32 %v1484_v19, %v1336_v17  ;;  %v1330_v24 = vld [vmem:[%s1743_s16 + $0x30] sm:$0xf0]  ;;  %v1329_v27 = vor.u32 %v1483_v21, %v1328_v20  ;;  %v1587_v29 = vmov 0   ;;  %v1476_v30 = vld [vmem:[%s1956_s2 + $0x8] sm:$0xff]  ;;  %v788_v31 = vld [vmem:[%s1957_s3] sm:$0xff]  ;;  %vm974_vm1 = vcmask 261120  }
  0x4b   : > { %1410 = vmatmul.msk.bf16.vlgmr.msra.gmra.mxu3 %vm601_vm0, %v1770_v57  ;;  %1406 = vmatmul.msk.bf16.vlgmr.msra.gmra.mxu0 %vm601_vm0, %v1770_v57  ;;  %v790_v25 = vld [vmem:[%s1957_s3 + $0x10] sm:$0xff]  ;;  %v1333_v28 = vor.u32 %v1479_v23, %v1330_v24  ;;  %v791_v32 = vld [vmem:[%s1957_s3 + $0x18] sm:$0xff]  ;;  %v789_v41 = vld [vmem:[%s1957_s3 + $0x8] sm:$0xff]  ;;  %s1471_s27 = sshll.u32 (%p1667_p5), %s1291_s30, 2 }
  0x4c   : > { %670 = vmatpush.bf16.msrb.mxu3 %v1389_v63  ;;  %689 = vmatpush.bf16.msrb.mxu0 %v1393_v4  ;;  %v1496_v33 = vld [vmem:[%s1743_s16 + $0x9c] sm:$0xf]  ;;  %v850_v42 = vld [vmem:[%s1959_s5 + $0x60] sm:$0xff]  ;;  %v851_v44 = vld [vmem:[%s1959_s5 + $0x68] sm:$0xff]  ;;  %s1163_s23 = scalar_lea.vmem (%p1667_p5), %s1962_s8, %s1471_s27 }
  0x4d   : > { %708 = vmatpush.bf16.msrb.mxu1 %v1397_v5  ;;  %1560 = vset.pattern.permute.xlu0 %v1587_v29  ;;  %v1402_v34 = vld [vmem:[%s1743_s16 + $0xb8] sm:$0xf0]  ;;  %v846_v46 = vld [vmem:[%s1959_s5 + $0x40] sm:$0xff]  ;;  %v844_v47 = vld [vmem:[%s1959_s5 + $0x30] sm:$0xff] }
  0x4e   : > { %1408 = vmatmul.msk.bf16.vlgmr.msra.gmra.mxu1 %vm601_vm0, %v1770_v57  ;;  %804 = vperm.xlu0 %1560, %v790_v25   ;;  %v1405_v35 = vor.u32 %v1496_v33, %v1402_v34  ;;  %v1488_v36 = vld [vmem:[%s1743_s16 + $0x5c] sm:$0xf]  ;;  %v843_v49 = vld [vmem:[%s1959_s5 + $0x28] sm:$0xff]  ;;  %v840_v50 = vld [vmem:[%s1959_s5 + $0x10] sm:$0xff] }
  0x4f   : > { %1561 = vset.pattern.permute.xlu1 %v1587_v29  ;;  %729 = vmatpush.bf16.msra.mxu2 %v1337_v22  ;;  %v1370_v37 = vld [vmem:[%s1743_s16 + $0x78] sm:$0xf0]  ;;  %v838_v51 = vld [vmem:[%s1959_s5] sm:$0xff]  ;;  %v839_v52 = vld [vmem:[%s1959_s5 + $0x8] sm:$0xff] }
  0x50   : > { %671 = vmatpush.bf16.msrb.mxu3 %v1357_v11  ;;  %690 = vmatpush.bf16.msrb.mxu0 %v1361_v14  ;;  %v1373_v38 = vor.u32 %v1488_v36, %v1370_v37  ;;  %v1480_v39 = vld [vmem:[%s1743_s16 + $0x1c] sm:$0xf]  ;;  %v1077_v53 = vld [vmem:[%s1961_s7 + $0x8] sm:$0xff]  ;;  %v1078_v54 = vld [vmem:[%s1961_s7 + $0x10] sm:$0xff] }
  0x51   : > { %709 = vmatpush.bf16.msrb.mxu1 %v1365_v18  ;;  %1562 = vset.pattern.permute.xlu2 %v1587_v29  ;;  %v1338_v40 = vld [vmem:[%s1743_s16 + $0x38] sm:$0xf0]  ;;  %s1300_s16 = sshll.u32 %s398_s13, 4 }
  0x52   : > { %1418 = vmatmul.msk.bf16.vlgmr.msra.gmra.mxu2 %vm601_vm0, %v1770_v57  ;;  %794 = vperm.xlu1 %1561, %v788_v31   ;;  %v1341_v43 = vor.u32 %v1480_v39, %v1338_v40  ;;  %v849_v45 = vld [vmem:[%s1959_s5 + $0x58] sm:$0xff]  ;;  %s407_s20 = scalar_lea.vmem [#allocation3], %s1300_s16  ;;  %s440_s21 = scalar_lea.vmem [#allocation4], %s1300_s16 }
  0x53   : > { %v845_v48 = vld [vmem:[%s1959_s5 + $0x38] sm:$0xff] }
  0x54   : > { %672 = vmatpush.bf16.msrb.mxu3 %v1325_v26  ;;  %691 = vmatpush.bf16.msrb.mxu0 %v1329_v27 }
  0x55   : > { %710 = vmatpush.bf16.msrb.mxu1 %v1333_v28 }
  0x56   : > { %809 = vperm.xlu0 %1560, %v791_v32  }
  0x58   : > { %746 = vmatpush.bf16.msra.mxu3 %v1405_v35 }
  0x5a   : > { %799 = vperm.xlu1 %1561, %v789_v41  }
  0x5b   : > { %1411 = vmatmul.msk.bf16.gmra.mxu3 %vm601_vm0, %v1476_v30  ;;  %1407 = vmatmul.msk.bf16.gmra.mxu0 %vm601_vm0, %v1476_v30 }
  0x5c   : > { %747 = vmatpush.bf16.msra.mxu3 %v1373_v38 }
  0x5e   : > { %1409 = vmatmul.msk.bf16.gmra.mxu1 %vm601_vm0, %v1476_v30  ;;  %916 = vperm.xlu0 %1560, %v850_v42  }
  0x60   : > { %748 = vmatpush.bf16.msra.mxu3 %v1341_v43 }
  0x62   : > { %1419 = vmatmul.msk.bf16.gmra.mxu2 %vm601_vm0, %v1476_v30  ;;  %921 = vperm.xlu1 %1561, %v851_v44  }
  0x66   : > { %911 = vperm.xlu0 %1560, %v849_v45  }
  0x6a   : > { %896 = vperm.xlu1 %1561, %v846_v46  }
  0x6b   : > { %1412 = vmatmul.msk.bf16.vlgmr.msrb.gmra.mxu3 %vm601_vm0, %v1770_v57  ;;  %1414 = vmatmul.msk.bf16.vlgmr.msrb.gmra.mxu0 %vm601_vm0, %v1770_v57 }
  0x6e   : > { %1416 = vmatmul.msk.bf16.vlgmr.msrb.gmra.mxu1 %vm601_vm0, %v1770_v57  ;;  %886 = vperm.xlu0 %1560, %v844_v47  }
  0x72   : > { %891 = vperm.xlu1 %1561, %v845_v48  }
  0x76   : > { %881 = vperm.xlu0 %1560, %v843_v49  }
  0x7a   : > { %866 = vperm.xlu1 %1561, %v840_v50  }
  0x7b   : > { %1413 = vmatmul.msk.bf16.gmra.mxu3 %vm601_vm0, %v1476_v30  ;;  %1415 = vmatmul.msk.bf16.gmra.mxu0 %vm601_vm0, %v1476_v30 }
  0x7e   : > { %1417 = vmatmul.msk.bf16.gmra.mxu1 %vm601_vm0, %v1476_v30  ;;  %856 = vperm.xlu0 %1560, %v838_v51  }
  0x82   : > { %861 = vperm.xlu1 %1561, %v839_v52  }
  0x86   : > { %1087 = vperm.xlu0 %1560, %v1077_v53  }
  0x8a   : > { %1092 = vperm.xlu1 %1561, %v1078_v54  }
  0x8b   : > { %1420 = vmatmul.msk.bf16.vlgmr.msra.gmra.mxu3 %vm601_vm0, %v1770_v57 }
  0x9b   : > { %1421 = vmatmul.msk.bf16.gmra.mxu3 %vm601_vm0, %v1476_v30 }
  0xc0   : > { %v805_v46 = vpop.permute.xlu0 %804 }
  0xc4   : > { %v795_v20 = vpop.permute.xlu1 %794 }
  0xc8   : > { %v617_v56 = vpop.f32.mrf.mxu0 }
  0xcb   : > { %v636_v59 = vpop.f32.mrf.mxu1 }
  0xcc   : > { %v760_v7 = vmax.f32 %v617_v56, %v636_v59  ;;  %v800_v38 = vpop.permute.xlu1 %799  ;;  %v852_v59 = vld [vmem:[%s1959_s5 + $0x70] sm:$0xff] }
  0xcd   : > { %926 = vperm.xlu2 %1562, %v852_v59  }
  0xce   : > { %v655_v55 = vpop.f32.mrf.mxu3 }
  0xcf   : > { %v764_v9 = vmax.f32 %v760_v7, %v655_v55  ;;  %v1502_v7 = vld [vmem:[%s1958_s4 + $0x8] sm:$0xff] }
  0xd0   : > { %v619_v61 = vpop.f32.mrf.mxu0 }
  0xd3   : > { %v638_v62 = vpop.f32.mrf.mxu1 }
  0xd4   : > { %v761_v10 = vmax.f32 %v619_v61, %v638_v62  ;;  %v810_v62 = vpop.permute.xlu0 %809 }
  0xd5   : > { %v731_v11 = vpop.f32.mrf.mxu2 }
  0xd6   : > { %v657_v58 = vpop.f32.mrf.mxu3 }
  0xd7   : > { %v765_v15 = vmax.f32 %v761_v10, %v657_v58  ;;  %v841_v10 = vld [vmem:[%s1959_s5 + $0x18] sm:$0xff] }
  0xd8   : > { %v622_v0 = vpop.f32.mrf.mxu0 }
  0xdb   : > { %v641_v1 = vpop.f32.mrf.mxu1 }
  0xdc   : > { %v762_v24 = vmax.f32 %v622_v0, %v641_v1 }
  0xdd   : > { %v733_v22 = vpop.f32.mrf.mxu2 }
  0xde   : > { %v660_v60 = vpop.f32.mrf.mxu3 }
  0xdf   : > { %v766_v28 = vmax.f32 %v762_v24, %v660_v60 }
  0xe0   : > { %v624_v57 = vpop.f32.mrf.mxu0 }
  0xe3   : > { %v643_v4 = vpop.f32.mrf.mxu1 }
  0xe4   : > { %v763_v29 = vmax.f32 %v624_v57, %v643_v4  ;;  %v853_v57 = vld [vmem:[%s1959_s5 + $0x78] sm:$0xff] }
  0xe5   : > { %v736_v39 = vpop.f32.mrf.mxu2  ;;  %931 = vperm.xlu2 %1562, %v853_v57   ;;  %v1504_v4 = vld [vmem:[%s1958_s4 + $0x18] sm:$0xff] }
  0xe6   : > { %v662_v63 = vpop.f32.mrf.mxu3 }
  0xe7   : > { %v767_v35 = vmax.f32 %v763_v29, %v662_v63 }
  0xe8   : > { %v693_v5 = vpop.f32.mrf.mxu0 }
  0xeb   : > { %v712_v8 = vpop.f32.mrf.mxu1 }
  0xed   : > { %v738_v54 = vpop.f32.mrf.mxu2 }
  0xee   : > { %v674_v2 = vpop.f32.mrf.mxu3 }
  0xef   : > { %v768_v12 = vmax.f32 %v764_v9, %v674_v2  ;;  %v842_v9 = vld [vmem:[%s1959_s5 + $0x20] sm:$0xff] }
  0xf0   : > { %v695_v13 = vpop.f32.mrf.mxu0 }
  0xf1   : > { %v772_v16 = vmax.f32 %v768_v12, %v693_v5  ;;  %v848_v5 = vld [vmem:[%s1959_s5 + $0x50] sm:$0xff]  ;;  %v1506_v12 = vld [vmem:[%s1958_s4 + $0x28] sm:$0xff] }
  0xf2   : > { %906 = vperm.xlu2 %1562, %v848_v5  }
  0xf3   : > { %v714_v18 = vpop.f32.mrf.mxu1  ;;  %v776_v19 = vmax.f32 %v772_v16, %v712_v8  ;;  %v1505_v8 = vld [vmem:[%s1958_s4 + $0x20] sm:$0xff]  ;;  %v1508_v16 = vld [vmem:[%s1958_s4 + $0x38] sm:$0xff] }
  0xf5   : > { %v780_v26 = vmax.f32 %v776_v19, %v731_v11  ;;  %v1503_v11 = vld [vmem:[%s1958_s4 + $0x10] sm:$0xff] }
  0xf6   : > { %v676_v3 = vpop.f32.mrf.mxu3 }
  0xf7   : > { %v769_v17 = vmax.f32 %v765_v15, %v676_v3  ;;  %v1501_v3 = vld [vmem:[%s1958_s4] sm:$0xff]  ;;  %v1079_v15 = vld [vmem:[%s1961_s7 + $0x18] sm:$0xff] }
  0xf8   : > { %v698_v25 = vpop.f32.mrf.mxu0 }
  0xf9   : > { %v773_v21 = vmax.f32 %v769_v17, %v695_v13  ;;  %v1076_v13 = vld [vmem:[%s1961_s7] sm:$0xff]  ;;  %v917_v17 = vpop.permute.xlu0 %916 }
  0xfb   : > { %v777_v27 = vmax.f32 %v773_v21, %v714_v18  ;;  %v717_v31 = vpop.f32.mrf.mxu1  ;;  %v922_v18 = vpop.permute.xlu1 %921 }
  0xfd   : > { %v781_v32 = vmax.f32 %v777_v27, %v733_v22 }
  0xfe   : > { %v679_v6 = vpop.f32.mrf.mxu3 }
  0xff   : > { %v770_v33 = vmax.f32 %v766_v28, %v679_v6  ;;  %v847_v6 = vld [vmem:[%s1959_s5 + $0x48] sm:$0xff] }
 0x100   : > { %v700_v43 = vpop.f32.mrf.mxu0  ;;  %901 = vperm.xlu2 %1562, %v847_v6  }
 0x101   : > { %v774_v40 = vmax.f32 %v770_v33, %v698_v25  ;;  %v912_v19 = vpop.permute.xlu0 %911 }
 0x103   : > { %v778_v47 = vmax.f32 %v774_v40, %v717_v31  ;;  %v719_v50 = vpop.f32.mrf.mxu1 }
 0x105   : > { %v782_v52 = vmax.f32 %v778_v47, %v736_v39 }
 0x106   : > { %v681_v14 = vpop.f32.mrf.mxu3 }
 0x107   : > { %v771_v41 = vmax.f32 %v767_v35, %v681_v14  ;;  %v1507_v14 = vld [vmem:[%s1958_s4 + $0x30] sm:$0xff] }
 0x108   : > { %876 = vperm.xlu2 %1562, %v842_v9  }
 0x109   : > { %v775_v48 = vmax.f32 %v771_v41, %v700_v43  ;;  %v887_v22 = vpop.permute.xlu0 %886 }
 0x10b   : > { %v779_v53 = vmax.f32 %v775_v48, %v719_v50 }
 0x10d   : > { %v783_v56 = vmax.f32 %v779_v53, %v738_v54 }
 0x10e   : > { %v750_v23 = vpop.f32.mrf.mxu3 }
 0x10f   : > { %v784_v30 = vmax.f32 %v780_v26, %v750_v23 }
 0x110   : > { %871 = vperm.xlu2 %1562, %v841_v10  }
 0x111   : > { %v812_v36 = vadd.f32 %v795_v20, %v784_v30  ;;  %v897_v20 = vpop.permute.xlu1 %896  ;;  %v882_v5 = vpop.permute.xlu0 %881 }
 0x113   : > { %v816_v44 = vmax.f32 %v812_v36, 0.0 }
 0x116   : > { %v752_v34 = vpop.f32.mrf.mxu3 }
 0x117   : > { %v785_v37 = vmax.f32 %v781_v32, %v752_v34 }
 0x118   : > { %1082 = vperm.xlu2 %1562, %v1076_v13  }
 0x119   : > { %v813_v42 = vadd.f32 %v800_v38, %v785_v37  ;;  %v892_v24 = vpop.permute.xlu1 %891 }
 0x11b   : > { %v817_v45 = vmax.f32 %v813_v42, 0.0 }
 0x11d   : > { %v836_v49 = vpack.c.bf16 %v817_v45, %v816_v44 }
 0x11e   : > { %v755_v51 = vpop.f32.mrf.mxu3 }
 0x11f   : > { %v786_v55 = vmax.f32 %v782_v52, %v755_v51 }
 0x120   : > { %1097 = vperm.xlu2 %1562, %v1079_v15  }
 0x121   : > { %v814_v60 = vadd.f32 %v805_v46, %v786_v55  ;;  %v867_v57 = vpop.permute.xlu1 %866 }
 0x123   : > { %v818_v0 = vmax.f32 %v814_v60, 0.0 }
 0x126   : > { %v757_v58 = vpop.f32.mrf.mxu3 }
 0x127   : > { %v787_v61 = vmax.f32 %v783_v56, %v757_v58  ;;  %v927_v34 = vpop.permute.xlu2 %926 }
 0x129   : > { %v815_v63 = vadd.f32 %v810_v62, %v787_v61 }
 0x12b   : > { %v819_v1 = vmax.f32 %v815_v63, 0.0 }
 0x12d   : > { %v837_v2 = vpack.c.bf16 %v819_v1, %v818_v0 }
 0x12f   : > { %1005 = vmatpush.bf16.msra.mxu0 %v837_v2  ;;  %1531 = vmatpush.bf16.msrb.mxu2 %v837_v2 }
 0x133   : > { %1006 = vmatpush.bf16.msra.mxu0 %v836_v49  ;;  %1532 = vmatpush.bf16.msrb.mxu2 %v836_v49 }
 0x136   : > { %1454 = vmatmul.msk.bf16.vlgmr.msra.gmra.mxu0 %vm974_vm1, %v1501_v3  ;;  %1457 = vmatmul.msk.bf16.vlgmr.msrb.gmra.mxu2 %vm974_vm1, %v1504_v4 }
 0x13f   : > { %v932_v38 = vpop.permute.xlu2 %931 }
 0x146   : > { %1455 = vmatmul.msk.bf16.gmra.mxu0 %vm974_vm1, %v1502_v7  ;;  %1458 = vmatmul.msk.bf16.gmra.mxu2 %vm974_vm1, %v1505_v8 }
 0x14c   : > { %v907_v41 = vpop.permute.xlu2 %906 }
 0x156   : > { %1456 = vmatmul.msk.bf16.gmra.mxu0 %vm974_vm1, %v1503_v11  ;;  %1459 = vmatmul.msk.bf16.gmra.mxu2 %vm974_vm1, %v1506_v12 }
 0x15a   : > { %v902_v44 = vpop.permute.xlu2 %901 }
 0x162   : > { %v877_v59 = vpop.permute.xlu2 %876 }
 0x166   : > { %1460 = vmatmul.msk.bf16.gmra.mxu2 %vm974_vm1, %v1507_v14  ;;  %v862_v14 = vpop.permute.xlu1 %861 }
 0x16a   : > { %v872_v9 = vpop.permute.xlu2 %871 }
 0x176   : > { %1461 = vmatmul.msk.bf16.gmra.mxu2 %vm974_vm1, %v1508_v16 }
 0x1b3   : > { %v1008_v33 = vpop.f32.mrf.mxu0 }
 0x1b9   : > { %v1023_v21 = vpop.f32.mrf.mxu2 }
 0x1ba   : > { %v1024_v23 = vadd.f32 %v1023_v21, %v887_v22 }
 0x1bb   : > { %v1010_v36 = vpop.f32.mrf.mxu0 }
 0x1bc   : > { %v1054_v27 = vmax.f32 %v1024_v23, 0.0  ;;  %v1011_v15 = vadd.f32 %v1010_v36, %v862_v14 }
 0x1be   : > { %v1049_v21 = vmax.f32 %v1011_v15, 0.0 }
 0x1c1   : > { %v1025_v25 = vpop.f32.mrf.mxu2 }
 0x1c2   : > { %v1026_v26 = vadd.f32 %v1025_v25, %v892_v24  ;;  %v1509_v25 = vld [vmem:[%s1960_s6] sm:$0xff] }
 0x1c3   : > { %v1013_v39 = vpop.f32.mrf.mxu0 }
 0x1c4   : > { %v1055_v28 = vmax.f32 %v1026_v26, 0.0  ;;  %v1014_v13 = vadd.f32 %v1013_v39, %v867_v57  ;;  %v1510_v26 = vld [vmem:[%s1960_s6 + $0x8] sm:$0xff] }
 0x1c6   : > { %v1071_v29 = vpack.c.bf16 %v1055_v28, %v1054_v27  ;;  %v1512_v28 = vld [vmem:[%s407_s20] sm:$0xff]  }
 0x1c9   : > { %v1028_v30 = vpop.f32.mrf.mxu2 }
 0x1ca   : > { %v1029_v63 = vadd.f32 %v1028_v30, %v897_v20  ;;  %v1050_v20 = vmax.f32 %v1014_v13, 0.0 }
 0x1cb   : > { %v1015_v43 = vpop.f32.mrf.mxu0 }
 0x1cc   : > { %v1056_v4 = vmax.f32 %v1029_v63, 0.0  ;;  %v1016_v10 = vadd.f32 %v1015_v43, %v872_v9  ;;  %v1093_v43 = vpop.permute.xlu1 %1092 }
 0x1ce   : > { %v1051_v16 = vmax.f32 %v1016_v10, 0.0 }
 0x1d0   : > { %v1069_v22 = vpack.c.bf16 %v1051_v16, %v1050_v20 }
 0x1d1   : > { %v1030_v31 = vpop.f32.mrf.mxu2 }
 0x1d2   : > { %v1031_v60 = vadd.f32 %v1030_v31, %v902_v44  ;;  %v1513_v31 = vunpack.c.l.bf16 %v1512_v28 }
 0x1d3   : > { %v1018_v52 = vpop.f32.mrf.mxu0 }
 0x1d4   : > { %v1057_v1 = vmax.f32 %v1031_v60, 0.0  ;;  %v1019_v7 = vadd.f32 %v1018_v52, %v877_v59 }
 0x1d6   : > { %v1072_v6 = vpack.c.bf16 %v1057_v1, %v1056_v4  ;;  %v1052_v11 = vmax.f32 %v1019_v7, 0.0 }
 0x1d9   : > { %v1033_v32 = vpop.f32.mrf.mxu2 }
 0x1da   : > { %v1034_v56 = vadd.f32 %v1033_v32, %v907_v41  ;;  %v1514_v32 = vunpack.c.h.bf16 %v1512_v28 }
 0x1db   : > { %v1020_v3 = vpop.f32.mrf.mxu0 }
 0x1dc   : > { %v1058_v0 = vmax.f32 %v1034_v56, 0.0  ;;  %v1021_v8 = vadd.f32 %v1020_v3, %v882_v5 }
 0x1de   : > { %v1053_v12 = vmax.f32 %v1021_v8, 0.0 }
 0x1e1   : > { %v1035_v35 = vpop.f32.mrf.mxu2 }
 0x1e2   : > { %v1036_v53 = vadd.f32 %v1035_v35, %v912_v19 }
 0x1e4   : > { %v1059_v61 = vmax.f32 %v1036_v53, 0.0 }
 0x1e6   : > { %v1073_v2 = vpack.c.bf16 %v1059_v61, %v1058_v0 }
 0x1e9   : > { %v1038_v37 = vpop.f32.mrf.mxu2 }
 0x1ea   : > { %v1039_v49 = vadd.f32 %v1038_v37, %v917_v17  ;;  %v1070_v17 = vpack.c.bf16 %v1053_v12, %v1052_v11 }
 0x1ec   : > { %v1060_v58 = vmax.f32 %v1039_v49, 0.0 }
 0x1f1   : > { %v1040_v40 = vpop.f32.mrf.mxu2 }
 0x1f2   : > { %v1041_v47 = vadd.f32 %v1040_v40, %v922_v18  ;;  %v857_v18 = vpop.permute.xlu0 %856 }
 0x1f3   : > { %v1009_v19 = vadd.f32 %v1008_v33, %v857_v18 }
 0x1f4   : > { %v1061_v54 = vmax.f32 %v1041_v47, 0.0 }
 0x1f5   : > { %v1048_v23 = vmax.f32 %v1009_v19, 0.0 }
 0x1f6   : > { %v1074_v62 = vpack.c.bf16 %v1061_v54, %v1060_v58 }
 0x1f7   : > { %v1068_v24 = vpack.c.bf16 %v1049_v21, %v1048_v23 }
 0x1f9   : > { %v1043_v42 = vpop.f32.mrf.mxu2 }
 0x1fa   : > { %v1044_v45 = vadd.f32 %v1043_v42, %v927_v34  ;;  %v1088_v33 = vpop.permute.xlu0 %1087  ;;  %v1529_v42 = vld [vmem:[%s407_s20 + $0x8] sm:$0xff]  }
 0x1fc   : > { %v1062_v50 = vmax.f32 %v1044_v45, 0.0  ;;  %v1517_v45 = vunpack.c.l.bf16 %v1529_v42 }
 0x201   : > { %v1045_v46 = vpop.f32.mrf.mxu2 }
 0x202   : > { %v1046_v48 = vadd.f32 %v1045_v46, %v932_v38  ;;  %v1518_v46 = vunpack.c.h.bf16 %v1529_v42 }
 0x204   : > { %v1063_v51 = vmax.f32 %v1046_v48, 0.0 }
 0x206   : > { %v1075_v55 = vpack.c.bf16 %v1063_v51, %v1062_v50 }
 0x208   : > { %1112 = vmatpush.bf16.msra.mxu1 %v1075_v55 }
 0x20c   : > { %1113 = vmatpush.bf16.msra.mxu1 %v1074_v62 }
 0x210   : > { %1114 = vmatpush.bf16.msra.mxu1 %v1073_v2 }
 0x214   : > { %1115 = vmatpush.bf16.msra.mxu1 %v1072_v6 }
 0x218   : > { %1116 = vmatpush.bf16.msra.mxu1 %v1071_v29  ;;  %v1083_v29 = vpop.permute.xlu2 %1082 }
 0x21c   : > { %1117 = vmatpush.bf16.msra.mxu1 %v1070_v17 }
 0x220   : > { %1118 = vmatpush.bf16.msra.mxu1 %v1069_v22  ;;  %v1098_v47 = vpop.permute.xlu2 %1097 }
 0x224   : > { %1119 = vmatpush.bf16.msra.mxu1 %v1068_v24 }
 0x227   : > { %1120 = vmatmul.bf16.vlgmr.msra.gmra.mxu1 %v1509_v25 }
 0x237   : > { %1125 = vmatmul.bf16.gmra.mxu1 %v1510_v26 }
 0x2a4   : > { %v1121_v27 = vpop.f32.mrf.mxu1 }
 0x2a5   : > { %v1122_v30 = vadd.f32 %v1121_v27, %v1083_v29 }
 0x2a7   : > { %v1139_v35 = vadd.f32 %v1513_v31, %v1122_v30 }
 0x2a9   : > { %v1143_v38 = vmax.f32 %v1139_v35, 0.0 }
 0x2ac   : > { %v1123_v34 = vpop.f32.mrf.mxu1 }
 0x2ad   : > { %v1124_v36 = vadd.f32 %v1123_v34, %v1088_v33 }
 0x2af   : > { %v1140_v37 = vadd.f32 %v1514_v32, %v1124_v36 }
 0x2b1   : > { %v1144_v39 = vmax.f32 %v1140_v37, 0.0 }
 0x2b3   : > { %v1522_v40 = vpack.c.bf16 %v1144_v39, %v1143_v38 }
 0x2b4   : > { %v1126_v41 = vpop.f32.mrf.mxu1 }
 0x2b5   : > { %1523 = vst [vmem:[%s440_s21] sm:$0xff] %v1522_v40   ;;  %v1127_v44 = vadd.f32 %v1126_v41, %v1093_v43 }
 0x2b7   : > { %v1141_v49 = vadd.f32 %v1517_v45, %v1127_v44 }
 0x2b9   : > { %v1145_v52 = vmax.f32 %v1141_v49, 0.0 }
 0x2bc   : > { %v1128_v48 = vpop.f32.mrf.mxu1  ;;  %v1180_v55 = vld [vmem:[%s440_s21] sm:$0xf] (%p1667_p5)  ;;  %v1182_v56 = vld [vmem:[%s440_s21 + $0x4] sm:$0xf] (%p1667_p5) }
 0x2bd   : > { %v1129_v50 = vadd.f32 %v1128_v48, %v1098_v47  ;;  %1181 = vst [vmem:[%s1163_s23] sm:$0xf] (%p1667_p5), %v1180_v55 }
 0x2be   : > { %1183 = vst [vmem:[%s1163_s23 + $0x8] sm:$0xf] (%p1667_p5), %v1182_v56 }
 0x2bf   : > { %v1142_v51 = vadd.f32 %v1518_v46, %v1129_v50 }
 0x2c1   : > { %v1146_v53 = vmax.f32 %v1142_v51, 0.0  ;;  %1161 = sbr.rel (!%p1667_p5) target bundleno = 719 (0x2cf), region = 120 }
 0x2c3   : > { %v1527_v54 = vpack.c.bf16 %v1146_v53, %v1145_v52 }
 0x2c5   : > { %1530 = vst [vmem:[%s440_s21 + $0x8] sm:$0xff] %v1527_v54  }
 0x2cc   : > { %v1184_v58 = vld [vmem:[%s440_s21 + $0x8] sm:$0xf]  ;;  %v1186_v59 = vld [vmem:[%s440_s21 + $0xc] sm:$0xf] }
 0x2cd   : > { %1185 = vst [vmem:[%s1163_s23 + $0x10] sm:$0xf] %v1184_v58 }
 0x2ce   : > { %1187 = vst [vmem:[%s1163_s23 + $0x18] sm:$0xf] %v1186_v59 }
 0x2cf PF: > { %p15_p10 = scmp.ge.s32.totalorder %s1650_s9, 4   ;;  %s1965_s27 = smov %s1581_s28 }
 0x2d0   : > { %s1966_s28 = smov %s1661_s12  ;;  %s1967_s29 = smov %s1650_s9 }
 0x2d1   :  { %17 = sbr.rel (!%p15_p10) target bundleno = 2 (0x2), region = 200 }

// kernel: neg.17
= control target key start
LH: loop header
LB: loop body
LE: loop exit
PB: predicated region body
PF: predicated region fallthrough
CT: control target
= control target key end

     0   :  { %s136_s0 = inlined_call_operand.vmem [shape: f32[2,32,128], index: 0, kind: input, shape index: {}]   ;;  %s137_s1 = inlined_call_operand.vmem [shape: f32[2,32,128], index: 1, kind: output, shape index: {}]  }
   0x1   :  { %v2_v0 = vld [vmem:[%s136_s0] sm:$0xff]  ;;  %v66_v2 = vld [vmem:[%s136_s0 + $0x8] sm:$0xff]  ;;  %v70_v7 = vld [vmem:[%s136_s0 + $0x10] sm:$0xff] }
   0x2   :  { %v64_v1 = vld [vmem:[%s136_s0 + $0x20] sm:$0xff]  ;;  %v5_v3 = vxor.u32 2147483648, %v2_v0  ;;  %v20_v5 = vxor.u32 2147483648, %v66_v2  ;;  %v68_v6 = vld [vmem:[%s136_s0 + $0x28] sm:$0xff]  ;;  %v72_v8 = vld [vmem:[%s136_s0 + $0x30] sm:$0xff]  ;;  %v36_v11 = vxor.u32 2147483648, %v70_v7 }
   0x3   :  { %v12_v4 = vxor.u32 2147483648, %v64_v1  ;;  %v28_v9 = vxor.u32 2147483648, %v68_v6  ;;  %v74_v10 = vld [vmem:[%s136_s0 + $0x18] sm:$0xff]  ;;  %v44_v13 = vxor.u32 2147483648, %v72_v8 }
   0x4   :  { %7 = vst [vmem:[%s137_s1] sm:$0xff] %v5_v3  ;;  %v76_v12 = vld [vmem:[%s136_s0 + $0x38] sm:$0xff]  ;;  %v52_v14 = vxor.u32 2147483648, %v74_v10 }
   0x5   :  { %65 = vst [vmem:[%s137_s1 + $0x20] sm:$0xff] %v12_v4  ;;  %v60_v15 = vxor.u32 2147483648, %v76_v12 }
   0x6   :  { %67 = vst [vmem:[%s137_s1 + $0x8] sm:$0xff] %v20_v5 }
   0x7   :  { %69 = vst [vmem:[%s137_s1 + $0x28] sm:$0xff] %v28_v9 }
   0x8   :  { %71 = vst [vmem:[%s137_s1 + $0x10] sm:$0xff] %v36_v11 }
   0x9   :  { %73 = vst [vmem:[%s137_s1 + $0x30] sm:$0xff] %v44_v13 }
   0xa   :  { %75 = vst [vmem:[%s137_s1 + $0x18] sm:$0xff] %v52_v14 }
   0xb   :  { %77 = vst [vmem:[%s137_s1 + $0x38] sm:$0xff] %v60_v15 }

// kernel: neg.19
= control target key start
LH: loop header
LB: loop body
LE: loop exit
PB: predicated region body
PF: predicated region fallthrough
CT: control target
= control target key end

     0   :  { %s136_s0 = inlined_call_operand.vmem [shape: f32[2,32,32], index: 0, kind: input, shape index: {}]   ;;  %s137_s1 = inlined_call_operand.vmem [shape: f32[2,32,32], index: 1, kind: output, shape index: {}]  }
   0x1   :  { %v2_v0 = vld [vmem:[%s136_s0] sm:$0xff]  ;;  %v66_v2 = vld [vmem:[%s136_s0 + $0x8] sm:$0xff]  ;;  %v70_v7 = vld [vmem:[%s136_s0 + $0x10] sm:$0xff] }
   0x2   :  { %v64_v1 = vld [vmem:[%s136_s0 + $0x20] sm:$0xff]  ;;  %v5_v3 = vxor.u32 2147483648, %v2_v0  ;;  %v20_v5 = vxor.u32 2147483648, %v66_v2  ;;  %v68_v6 = vld [vmem:[%s136_s0 + $0x28] sm:$0xff]  ;;  %v72_v8 = vld [vmem:[%s136_s0 + $0x30] sm:$0xff]  ;;  %v36_v11 = vxor.u32 2147483648, %v70_v7 }
   0x3   :  { %v12_v4 = vxor.u32 2147483648, %v64_v1  ;;  %v28_v9 = vxor.u32 2147483648, %v68_v6  ;;  %v74_v10 = vld [vmem:[%s136_s0 + $0x18] sm:$0xff]  ;;  %v44_v13 = vxor.u32 2147483648, %v72_v8 }
   0x4   :  { %7 = vst [vmem:[%s137_s1] sm:$0xff] %v5_v3  ;;  %v76_v12 = vld [vmem:[%s136_s0 + $0x38] sm:$0xff]  ;;  %v52_v14 = vxor.u32 2147483648, %v74_v10 }
   0x5   :  { %65 = vst [vmem:[%s137_s1 + $0x20] sm:$0xff] %v12_v4  ;;  %v60_v15 = vxor.u32 2147483648, %v76_v12 }
   0x6   :  { %67 = vst [vmem:[%s137_s1 + $0x8] sm:$0xff] %v20_v5 }
   0x7   :  { %69 = vst [vmem:[%s137_s1 + $0x28] sm:$0xff] %v28_v9 }
   0x8   :  { %71 = vst [vmem:[%s137_s1 + $0x10] sm:$0xff] %v36_v11 }
   0x9   :  { %73 = vst [vmem:[%s137_s1 + $0x30] sm:$0xff] %v44_v13 }
   0xa   :  { %75 = vst [vmem:[%s137_s1 + $0x18] sm:$0xff] %v52_v14 }
   0xb   :  { %77 = vst [vmem:[%s137_s1 + $0x38] sm:$0xff] %v60_v15 }

// kernel: neg.26
= control target key start
LH: loop header
LB: loop body
LE: loop exit
PB: predicated region body
PF: predicated region fallthrough
CT: control target
= control target key end

     0   :  { %s40_s0 = inlined_call_operand.vmem [shape: f32[2,32,8], index: 0, kind: input, shape index: {}]   ;;  %s41_s1 = inlined_call_operand.vmem [shape: f32[2,32,8], index: 1, kind: output, shape index: {}]  }
   0x1   :  { %v2_v0 = vld [vmem:[%s40_s0] sm:$0xff]  ;;  %v16_v1 = vld [vmem:[%s40_s0 + $0x8] sm:$0xff] }
   0x2   :  { %v5_v2 = vxor.u32 2147483648, %v2_v0  ;;  %v12_v3 = vxor.u32 2147483648, %v16_v1 }
   0x4   :  { %7 = vst [vmem:[%s41_s1] sm:$0xff] %v5_v2 }
   0x5   :  { %17 = vst [vmem:[%s41_s1 + $0x8] sm:$0xff] %v12_v3 }

// kernel: neg.23
= control target key start
LH: loop header
LB: loop body
LE: loop exit
PB: predicated region body
PF: predicated region fallthrough
CT: control target
= control target key end

     0   :  { %s40_s0 = inlined_call_operand.vmem [shape: f32[2,2,2], index: 0, kind: input, shape index: {}]   ;;  %s41_s1 = inlined_call_operand.vmem [shape: f32[2,2,2], index: 1, kind: output, shape index: {}]  }
   0x1   :  { %v2_v0 = vld [vmem:[%s40_s0] sm:$0x3]  ;;  %v16_v1 = vld [vmem:[%s40_s0 + $0x2] sm:$0x3] }
   0x2   :  { %v5_v2 = vxor.u32 2147483648, %v2_v0  ;;  %v12_v3 = vxor.u32 2147483648, %v16_v1 }
   0x4   :  { %7 = vst [vmem:[%s41_s1] sm:$0x3] %v5_v2 }
   0x5   :  { %17 = vst [vmem:[%s41_s1 + $0x2] sm:$0x3] %v12_v3 }

// kernel: neg.22
= control target key start
LH: loop header
LB: loop body
LE: loop exit
PB: predicated region body
PF: predicated region fallthrough
CT: control target
= control target key end

     0   :  { %s40_s0 = inlined_call_operand.vmem [shape: f32[2,2,8], index: 0, kind: input, shape index: {}]   ;;  %s41_s1 = inlined_call_operand.vmem [shape: f32[2,2,8], index: 1, kind: output, shape index: {}]  }
   0x1   :  { %v2_v0 = vld [vmem:[%s40_s0] sm:$0x3]  ;;  %v16_v1 = vld [vmem:[%s40_s0 + $0x2] sm:$0x3] }
   0x2   :  { %v5_v2 = vxor.u32 2147483648, %v2_v0  ;;  %v12_v3 = vxor.u32 2147483648, %v16_v1 }
   0x4   :  { %7 = vst [vmem:[%s41_s1] sm:$0x3] %v5_v2 }
   0x5   :  { %17 = vst [vmem:[%s41_s1 + $0x2] sm:$0x3] %v12_v3 }

// kernel: neg.21
= control target key start
LH: loop header
LB: loop body
LE: loop exit
PB: predicated region body
PF: predicated region fallthrough
CT: control target
= control target key end

     0   :  { %s40_s0 = inlined_call_operand.vmem [shape: f32[2,8,8], index: 0, kind: input, shape index: {}]   ;;  %s41_s1 = inlined_call_operand.vmem [shape: f32[2,8,8], index: 1, kind: output, shape index: {}]  }
   0x1   :  { %v2_v0 = vld [vmem:[%s40_s0] sm:$0xff]  ;;  %v16_v1 = vld [vmem:[%s40_s0 + $0x8] sm:$0xff] }
   0x2   :  { %v5_v2 = vxor.u32 2147483648, %v2_v0  ;;  %v12_v3 = vxor.u32 2147483648, %v16_v1 }
   0x4   :  { %7 = vst [vmem:[%s41_s1] sm:$0xff] %v5_v2 }
   0x5   :  { %17 = vst [vmem:[%s41_s1 + $0x8] sm:$0xff] %v12_v3 }

// kernel: neg.20
= control target key start
LH: loop header
LB: loop body
LE: loop exit
PB: predicated region body
PF: predicated region fallthrough
CT: control target
= control target key end

     0   :  { %s40_s0 = inlined_call_operand.vmem [shape: f32[2,8,32], index: 0, kind: input, shape index: {}]   ;;  %s41_s1 = inlined_call_operand.vmem [shape: f32[2,8,32], index: 1, kind: output, shape index: {}]  }
   0x1   :  { %v2_v0 = vld [vmem:[%s40_s0] sm:$0xff]  ;;  %v16_v1 = vld [vmem:[%s40_s0 + $0x8] sm:$0xff] }
   0x2   :  { %v5_v2 = vxor.u32 2147483648, %v2_v0  ;;  %v12_v3 = vxor.u32 2147483648, %v16_v1 }
   0x4   :  { %7 = vst [vmem:[%s41_s1] sm:$0xff] %v5_v2 }
   0x5   :  { %17 = vst [vmem:[%s41_s1 + $0x8] sm:$0xff] %v12_v3 }

// kernel: neg.24
= control target key start
LH: loop header
LB: loop body
LE: loop exit
PB: predicated region body
PF: predicated region fallthrough
CT: control target
= control target key end

     0   :  { %s40_s0 = inlined_call_operand.vmem [shape: f32[2,8,2], index: 0, kind: input, shape index: {}]   ;;  %s41_s1 = inlined_call_operand.vmem [shape: f32[2,8,2], index: 1, kind: output, shape index: {}]  }
   0x1   :  { %v2_v0 = vld [vmem:[%s40_s0] sm:$0x3]  ;;  %v16_v1 = vld [vmem:[%s40_s0 + $0x2] sm:$0x3] }
   0x2   :  { %v5_v2 = vxor.u32 2147483648, %v2_v0  ;;  %v12_v3 = vxor.u32 2147483648, %v16_v1 }
   0x4   :  { %7 = vst [vmem:[%s41_s1] sm:$0x3] %v5_v2 }
   0x5   :  { %17 = vst [vmem:[%s41_s1 + $0x2] sm:$0x3] %v12_v3 }

// kernel: _lambda_.8
= control target key start
LH: loop header
LB: loop body
LE: loop exit
PB: predicated region body
PF: predicated region fallthrough
CT: control target
= control target key end

     0   :  { %s983_s24 = smov 0   ;;  %s985_s25 = smov 0   ;;  %s1106_s0 = inlined_call_operand.vmem [shape: bf16[32,256], index: 0, kind: input, shape index: {}]   ;;  %s1107_s1 = inlined_call_operand.vmem [shape: bf16[64,256], index: 1, kind: input, shape index: {}]   ;;  %s1108_s2 = inlined_call_operand.vmem [shape: bf16[32,32], index: 2, kind: input, shape index: {}]   ;;  %s1109_s3 = inlined_call_operand.vmem [shape: bf16[32,64], index: 3, kind: input, shape index: {}]   ;;  %s1110_s4 = inlined_call_operand.vmem [shape: f32[32,1], index: 4, kind: input, shape index: {}]   ;;  %s1111_s5 = inlined_call_operand.vmem [shape: bf16[32,32], index: 5, kind: input, shape index: {}]   ;;  %s1112_s6 = inlined_call_operand.vmem [shape: f32[32,1], index: 6, kind: input, shape index: {}]   ;;  %s1113_s7 = inlined_call_operand.vmem [shape: bf16[32,256], index: 7, kind: output, shape index: {}]  }
   0x1   :  { %s987_s26 = smov 0  }
   0x2 LB: > { %s793_s27 = sadd.s32 4294967295, %s940_s26   ;;  %s1000_s28 = sadd.s32 1, %s940_s26   ;;  %s940_s26 = sphi %s987_s26, %s1118_s26   ;;  %s936_s25 = sphi %s985_s25, %s1117_s25   ;;  %s932_s24 = sphi %s983_s24, %s1116_s24  }
   0x3   : > { %s21_s29 = ssub.s32 %s940_s26, %s1000_s28  ;;  %s24_s30 = sadd.s32 1, %s936_s25 }
   0x4   : > { %p22_p0 = scmp.eq.s32.totalorder %s21_s29, 0  ;;  %p31_p1 = scmp.ne.s32.totalorder %s936_s25, %s932_s24 }
   0x5   : > { %p32_p2 = scmp.eq.s32.totalorder %s940_s26, 0  ;;  %p192_p3 = scmp.eq.s32.totalorder %s793_s27, 1 }
   0x6   : > { %s1011_s8 = scalar_select %p22_p0, %s936_s25, %s24_s30  }
   0x7   : > { %p1013_p4 = por %p32_p2, %p31_p1  ;;  %p1017_p5 = por %p192_p3, %p31_p1 }
   0x8   : > { %p796_p6 = scmp.ge.s32.totalorder %s940_s26, 2 }
   0xa   : > { %229 = sbr.rel (%p796_p6) target bundleno = 35 (0x23), region = 36 }
   0xf   : > { %232 = sbr.rel (!%p1013_p4) target bundleno = 23 (0x17), region = 40  ;;  %s234_s11 = sand.u32 (%p1013_p4), 1, %s936_s25  }
  0x10   : > { %s798_s12 = sshll.u32 (%p1013_p4), %s940_s26, 2  ;;  %s797_s13 = sshll.u32 (%p1013_p4), %s234_s11, 4 }
  0x11   : > { %s238_s16 = scalar_lea.vmem (%p1013_p4), %s1106_s0, %s798_s12  ;;  %s236_s17 = scalar_lea.vmem (%p1013_p4), [#allocation2], %s797_s13 }
  0x12   : > { %v255_v0 = vld [vmem:[%s238_s16] sm:$0xf] (%p1013_p4)  ;;  %v257_v1 = vld [vmem:[%s238_s16 + $0x8] sm:$0xf] (%p1013_p4)  ;;  %v259_v2 = vld [vmem:[%s238_s16 + $0x10] sm:$0xf] (%p1013_p4) }
  0x13   : > { %256 = vst [vmem:[%s236_s17] sm:$0xf] (%p1013_p4), %v255_v0  ;;  %v261_v3 = vld [vmem:[%s238_s16 + $0x18] sm:$0xf] (%p1013_p4) }
  0x14   : > { %258 = vst [vmem:[%s236_s17 + $0x4] sm:$0xf] %v257_v1 }
  0x15   : > { %260 = vst [vmem:[%s236_s17 + $0x8] sm:$0xf] %v259_v2 }
  0x16   : > { %262 = vst [vmem:[%s236_s17 + $0xc] sm:$0xf] %v261_v3 }
  0x17 PF: > { %294 = sbr.rel (!%p1013_p4) target bundleno = 35 (0x23), region = 81  ;;  %s296_s18 = sand.u32 (%p1013_p4), 1, %s936_s25  }
  0x18   : > { %s800_s19 = sshll.u32 (%p1013_p4), %s940_s26, 2  ;;  %s799_s20 = sshll.u32 (%p1013_p4), %s296_s18, 5 }
  0x19   : > { %s300_s23 = scalar_lea.vmem (%p1013_p4), %s1107_s1, %s800_s19  ;;  %s298_s29 = scalar_lea.vmem (%p1013_p4), [#allocation3], %s799_s20 }
  0x1a   : > { %v317_v4 = vld [vmem:[%s300_s23] sm:$0xf] (%p1013_p4)  ;;  %v319_v5 = vld [vmem:[%s300_s23 + $0x8] sm:$0xf] (%p1013_p4)  ;;  %v321_v6 = vld [vmem:[%s300_s23 + $0x10] sm:$0xf] (%p1013_p4) }
  0x1b   : > { %318 = vst [vmem:[%s298_s29] sm:$0xf] (%p1013_p4), %v317_v4  ;;  %v323_v7 = vld [vmem:[%s300_s23 + $0x18] sm:$0xf] (%p1013_p4)  ;;  %v325_v8 = vld [vmem:[%s300_s23 + $0x20] sm:$0xf] (%p1013_p4) }
  0x1c   : > { %320 = vst [vmem:[%s298_s29 + $0x4] sm:$0xf] %v319_v5  ;;  %v327_v9 = vld [vmem:[%s300_s23 + $0x28] sm:$0xf]  ;;  %v329_v10 = vld [vmem:[%s300_s23 + $0x30] sm:$0xf] }
  0x1d   : > { %322 = vst [vmem:[%s298_s29 + $0x8] sm:$0xf] %v321_v6  ;;  %v331_v11 = vld [vmem:[%s300_s23 + $0x38] sm:$0xf] }
  0x1e   : > { %324 = vst [vmem:[%s298_s29 + $0xc] sm:$0xf] %v323_v7 }
  0x1f   : > { %326 = vst [vmem:[%s298_s29 + $0x10] sm:$0xf] %v325_v8 }
  0x20   : > { %328 = vst [vmem:[%s298_s29 + $0x14] sm:$0xf] %v327_v9 }
  0x21   : > { %330 = vst [vmem:[%s298_s29 + $0x18] sm:$0xf] %v329_v10 }
  0x22   : > { %332 = vst [vmem:[%s298_s29 + $0x1c] sm:$0xf] %v331_v11 }
  0x23 PF: > { %p801_p7 = scmp.ge.s32.totalorder %s940_s26, 1  ;;  %p371_p8 = scmp.lt.s32.totalorder %s940_s26, 3 }
  0x25   : > { %p372_p9 = pnand %p801_p7, %p371_p8 }
  0x26   : > { %s378_s30 = sand.u32 (!%p372_p9), 1, %s932_s24  }
  0x27   : > { %375 = sbr.rel (%p372_p9) target bundleno = 392 (0x188), region = 122  ;;  %s803_s9 = sshll.u32 (!%p372_p9), %s378_s30, 5 }
  0x28   : > { %s1039_s11 = sshll.u32 (!%p372_p9), %s378_s30, 4  ;;  %s387_s16 = scalar_lea.vmem (!%p372_p9), [#allocation3], %s803_s9 }
  0x29   : > { %s380_s17 = scalar_lea.vmem (!%p372_p9), [#allocation2], %s1039_s11  ;;  %s418_s30 = scalar_lea.vmem (!%p372_p9), [#allocation4], %s1039_s11 }
  0x2c   : > { %v550_v12 = vld [vmem:[%s1110_s4 + $0x10] sm:$0xff]  ;;  %v548_v13 = vld [vmem:[%s1110_s4] sm:$0xff]  ;;  %v942_v14 = vmov 0   ;;  %v872_v15 = vld [vmem:[%s387_s16 + $0x18] sm:$0xff]  ;;  %vm522_vm0 = vcmask 261120   ;;  %vm474_vm1 = vcmask 523264  }
  0x2d   : > { %915 = vset.pattern.permute.xlu0 %v942_v14  ;;  %916 = vset.pattern.permute.xlu1 %v942_v14  ;;  %v866_v16 = vld [vmem:[%s380_s17 + $0x8] sm:$0xff]  ;;  %v871_v17 = vld [vmem:[%s387_s16 + $0x10] sm:$0xff]  ;;  %v863_v21 = vld [vmem:[%s1108_s2] sm:$0xff]  ;;  %s860_s9 = sshll.u32 (%p1017_p5), %s793_s27, 2 }
  0x2e   : > { %564 = vperm.xlu0 %915, %v550_v12   ;;  %554 = vperm.xlu1 %916, %v548_v13   ;;  %v865_v18 = vld [vmem:[%s380_s17] sm:$0xff]  ;;  %v551_v19 = vld [vmem:[%s1110_s4 + $0x18] sm:$0xff]  ;;  %v549_v20 = vld [vmem:[%s1110_s4 + $0x8] sm:$0xff]  ;;  %s665_s13 = scalar_lea.vmem (%p1017_p5), %s1113_s7, %s860_s9 }
  0x2f   : > { %917 = vset.pattern.permute.xlu2 %v942_v14  ;;  %485 = vmatpush.bf16.msra.mxu0 %v872_v15  ;;  %v870_v22 = vld [vmem:[%s387_s16 + $0x8] sm:$0xff]  ;;  %v869_v23 = vld [vmem:[%s387_s16] sm:$0xff]  ;;  %v588_v25 = vld [vmem:[%s1112_s6 + $0x10] sm:$0xff] }
  0x30   : > { %886 = vmatpush.bf16.msra.mxu3 %v872_v15  ;;  %535 = vmatpush.bf16.msra.mxu1 %v866_v16  ;;  %v867_v24 = vld [vmem:[%s1109_s3] sm:$0xff]  ;;  %v589_v26 = vld [vmem:[%s1112_s6 + $0x18] sm:$0xff]  ;;  %v868_v27 = vld [vmem:[%s1109_s3 + $0x8] sm:$0xff] }
  0x31   : > { %v864_v28 = vld [vmem:[%s1108_s2 + $0x8] sm:$0xff]  ;;  %v586_v41 = vld [vmem:[%s1112_s6] sm:$0xff] }
  0x32   : > { %592 = vperm.xlu2 %917, %v586_v41   ;;  %v587_v52 = vld [vmem:[%s1112_s6 + $0x8] sm:$0xff]  ;;  %v873_v57 = vld [vmem:[%s1111_s5] sm:$0xff] }
  0x33   : > { %486 = vmatpush.bf16.msra.mxu0 %v871_v17  ;;  %v874_v58 = vld [vmem:[%s1111_s5 + $0x8] sm:$0xff] }
  0x34   : > { %887 = vmatpush.bf16.msra.mxu3 %v871_v17  ;;  %536 = vmatpush.bf16.msra.mxu1 %v865_v18 }
  0x36   : > { %569 = vperm.xlu0 %915, %v551_v19   ;;  %559 = vperm.xlu1 %916, %v549_v20  }
  0x37   : > { %847 = vmatmul.msk.bf16.vlgmr.msra.gmra.mxu1 %vm522_vm0, %v863_v21  ;;  %487 = vmatpush.bf16.msra.mxu0 %v870_v22 }
  0x38   : > { %888 = vmatpush.bf16.msra.mxu3 %v870_v22 }
  0x3a   : > { %597 = vperm.xlu2 %917, %v587_v52  }
  0x3b   : > { %488 = vmatpush.bf16.msra.mxu0 %v869_v23 }
  0x3c   : > { %889 = vmatpush.bf16.msra.mxu3 %v869_v23 }
  0x3e   : > { %602 = vperm.xlu0 %915, %v588_v25   ;;  %607 = vperm.xlu1 %916, %v589_v26  }
  0x3f   : > { %829 = vmatmul.msk.bf16.vlgmr.msra.gmra.mxu0 %vm474_vm1, %v867_v24  ;;  %830 = vmatmul.msk.bf16.vlgmr.msra.gmra.mxu3 %vm474_vm1, %v868_v27 }
  0x47   : > { %848 = vmatmul.msk.bf16.gmra.mxu1 %vm522_vm0, %v864_v28 }
  0x8c   : > { %v593_v59 = vpop.permute.xlu2 %592 }
  0x94   : > { %v598_v61 = vpop.permute.xlu2 %597 }
  0xa0   : > { %v565_v33 = vpop.permute.xlu0 %564  ;;  %v555_v34 = vpop.permute.xlu1 %554 }
  0xa8   : > { %v570_v45 = vpop.permute.xlu0 %569  ;;  %v560_v46 = vpop.permute.xlu1 %559 }
  0xb0   : > { %v603_v5 = vpop.permute.xlu0 %602  ;;  %v608_v7 = vpop.permute.xlu1 %607 }
  0xb4   : > { %v538_v29 = vpop.f32.mrf.mxu1 }
  0xbc   : > { %v540_v30 = vpop.f32.mrf.mxu1  ;;  %v490_v31 = vpop.f32.mrf.mxu0 }
  0xbd   : > { %v539_v42 = vadd.f32 %v538_v29, %v490_v31 }
  0xbf   : > { %v572_v49 = vadd.f32 %v555_v34, %v539_v42 }
  0xc1   : > { %v576_v55 = vmax.f32 %v572_v49, 0.0 }
  0xc2   : > { %v495_v32 = vpop.f32.mrf.mxu3 }
  0xc4   : > { %v543_v35 = vpop.f32.mrf.mxu1  ;;  %v492_v36 = vpop.f32.mrf.mxu0 }
  0xc5   : > { %v544_v37 = vadd.f32 %v543_v35, %v495_v32  ;;  %v541_v38 = vadd.f32 %v540_v30, %v492_v36 }
  0xc7   : > { %v574_v44 = vadd.f32 %v565_v33, %v544_v37  ;;  %v573_v47 = vadd.f32 %v560_v46, %v541_v38 }
  0xc9   : > { %v578_v50 = vmax.f32 %v574_v44, 0.0  ;;  %v577_v53 = vmax.f32 %v573_v47, 0.0 }
  0xca   : > { %v497_v39 = vpop.f32.mrf.mxu3 }
  0xcb   : > { %v584_v56 = vpack.c.bf16 %v577_v53, %v576_v55 }
  0xcc   : > { %v545_v40 = vpop.f32.mrf.mxu1 }
  0xcd   : > { %v546_v43 = vadd.f32 %v545_v40, %v497_v39 }
  0xcf   : > { %v575_v48 = vadd.f32 %v570_v45, %v546_v43 }
  0xd1   : > { %v579_v51 = vmax.f32 %v575_v48, 0.0 }
  0xd3   : > { %v585_v54 = vpack.c.bf16 %v579_v51, %v578_v50 }
  0xd5   : > { %632 = vmatpush.bf16.msra.mxu2 %v585_v54 }
  0xd9   : > { %633 = vmatpush.bf16.msra.mxu2 %v584_v56 }
  0xdc   : > { %857 = vmatmul.msk.bf16.vlgmr.msra.gmra.mxu2 %vm522_vm0, %v873_v57 }
  0xec   : > { %858 = vmatmul.msk.bf16.gmra.mxu2 %vm522_vm0, %v874_v58 }
 0x15f   : > { %v635_v60 = vpop.f32.mrf.mxu2 }
 0x160   : > { %v636_v62 = vadd.f32 %v635_v60, %v593_v59 }
 0x162   : > { %v645_v1 = vmax.f32 %v636_v62, 0.0 }
 0x167   : > { %v637_v63 = vpop.f32.mrf.mxu2 }
 0x168   : > { %v638_v0 = vadd.f32 %v637_v63, %v598_v61 }
 0x16a   : > { %v646_v2 = vmax.f32 %v638_v0, 0.0 }
 0x16c   : > { %v878_v3 = vpack.c.bf16 %v646_v2, %v645_v1 }
 0x16e   : > { %879 = vst [vmem:[%s418_s30] sm:$0xff] %v878_v3  }
 0x16f   : > { %v640_v4 = vpop.f32.mrf.mxu2 }
 0x170   : > { %v641_v6 = vadd.f32 %v640_v4, %v603_v5 }
 0x172   : > { %v647_v10 = vmax.f32 %v641_v6, 0.0 }
 0x175   : > { %v682_v13 = vld [vmem:[%s418_s30] sm:$0xf] (%p1017_p5)  ;;  %v684_v14 = vld [vmem:[%s418_s30 + $0x4] sm:$0xf] (%p1017_p5) }
 0x176   : > { %683 = vst [vmem:[%s665_s13] sm:$0xf] (%p1017_p5), %v682_v13 }
 0x177   : > { %v642_v8 = vpop.f32.mrf.mxu2  ;;  %685 = vst [vmem:[%s665_s13 + $0x8] sm:$0xf] (%p1017_p5), %v684_v14 }
 0x178   : > { %v643_v9 = vadd.f32 %v642_v8, %v608_v7 }
 0x17a   : > { %v648_v11 = vmax.f32 %v643_v9, 0.0  ;;  %663 = sbr.rel (!%p1017_p5) target bundleno = 392 (0x188), region = 134 }
 0x17c   : > { %v883_v12 = vpack.c.bf16 %v648_v11, %v647_v10 }
 0x17e   : > { %885 = vst [vmem:[%s418_s30 + $0x8] sm:$0xff] %v883_v12  }
 0x185   : > { %v686_v15 = vld [vmem:[%s418_s30 + $0x8] sm:$0xf]  ;;  %v688_v16 = vld [vmem:[%s418_s30 + $0xc] sm:$0xf] }
 0x186   : > { %687 = vst [vmem:[%s665_s13 + $0x10] sm:$0xf] %v686_v15 }
 0x187   : > { %689 = vst [vmem:[%s665_s13 + $0x18] sm:$0xf] %v688_v16 }
 0x188 PF: > { %p14_p10 = scmp.ge.s32.totalorder %s1000_s28, 4   ;;  %s1116_s24 = smov %s936_s25 }
 0x189   : > { %s1117_s25 = smov %s1011_s8  ;;  %s1118_s26 = smov %s1000_s28 }
 0x18a   :  { %16 = sbr.rel (!%p14_p10) target bundleno = 2 (0x2), region = 214 }

// kernel: _lambda_.9
= control target key start
LH: loop header
LB: loop body
LE: loop exit
PB: predicated region body
PF: predicated region fallthrough
CT: control target
= control target key end

     0   :  { %s524_s12 = smov 0   ;;  %s526_s13 = smov 0   ;;  %s602_s0 = inlined_call_operand.vmem [shape: bf16[32,256], index: 0, kind: input, shape index: {}]   ;;  %s603_s1 = inlined_call_operand.vmem [shape: bf16[32,32], index: 1, kind: input, shape index: {}]   ;;  %s604_s2 = inlined_call_operand.vmem [shape: f32[32,1], index: 2, kind: input, shape index: {}]   ;;  %s605_s3 = inlined_call_operand.vmem [shape: f32[32,256], index: 3, kind: output, shape index: {}]  }
   0x1   :  { %s528_s14 = smov 0  }
   0x2 LB: > { %s415_s15 = sadd.s32 4294967295, %s501_s14   ;;  %s541_s16 = sadd.s32 1, %s501_s14   ;;  %s501_s14 = sphi %s528_s14, %s609_s14   ;;  %s497_s13 = sphi %s526_s13, %s608_s13   ;;  %s493_s12 = sphi %s524_s12, %s607_s12  }
   0x3   : > { %s17_s17 = ssub.s32 %s501_s14, %s541_s16  ;;  %s20_s18 = sadd.s32 1, %s497_s13 }
   0x4   : > { %p18_p0 = scmp.eq.s32.totalorder %s17_s17, 0  ;;  %p27_p1 = scmp.ne.s32.totalorder %s497_s13, %s493_s12 }
   0x5   : > { %p28_p2 = scmp.eq.s32.totalorder %s501_s14, 0  ;;  %p99_p3 = scmp.eq.s32.totalorder %s415_s15, 1 }
   0x6   : > { %s552_s19 = scalar_select %p18_p0, %s497_s13, %s20_s18  }
   0x7   : > { %p29_p4 = por %p28_p2, %p27_p1  ;;  %p554_p5 = por %p99_p3, %p27_p1 }
   0x8   : > { %p418_p6 = scmp.ge.s32.totalorder %s501_s14, 2 }
   0xa   : > { %127 = sbr.rel (%p418_p6) target bundleno = 23 (0x17), region = 24 }
   0xf   : > { %130 = sbr.rel (!%p29_p4) target bundleno = 23 (0x17), region = 28  ;;  %s132_s21 = sand.u32 (%p29_p4), 1, %s497_s13  }
  0x10   : > { %s420_s22 = sshll.u32 (%p29_p4), %s501_s14, 2  ;;  %s419_s23 = sshll.u32 (%p29_p4), %s132_s21, 4 }
  0x11   : > { %s136_s26 = scalar_lea.vmem (%p29_p4), %s602_s0, %s420_s22  ;;  %s134_s27 = scalar_lea.vmem (%p29_p4), [#allocation2], %s419_s23 }
  0x12   : > { %v153_v0 = vld [vmem:[%s136_s26] sm:$0xf] (%p29_p4)  ;;  %v155_v1 = vld [vmem:[%s136_s26 + $0x8] sm:$0xf] (%p29_p4)  ;;  %v157_v2 = vld [vmem:[%s136_s26 + $0x10] sm:$0xf] (%p29_p4) }
  0x13   : > { %154 = vst [vmem:[%s134_s27] sm:$0xf] (%p29_p4), %v153_v0  ;;  %v159_v3 = vld [vmem:[%s136_s26 + $0x18] sm:$0xf] (%p29_p4) }
  0x14   : > { %156 = vst [vmem:[%s134_s27 + $0x4] sm:$0xf] %v155_v1 }
  0x15   : > { %158 = vst [vmem:[%s134_s27 + $0x8] sm:$0xf] %v157_v2 }
  0x16   : > { %160 = vst [vmem:[%s134_s27 + $0xc] sm:$0xf] %v159_v3 }
  0x17 PF: > { %p421_p7 = scmp.ge.s32.totalorder %s501_s14, 1  ;;  %p191_p8 = scmp.lt.s32.totalorder %s501_s14, 3 }
  0x19   : > { %p192_p9 = pnand %p421_p7, %p191_p8 }
  0x1a   : > { %s198_s28 = sand.u32 (!%p192_p9), 1, %s493_s12  }
  0x1b   : > { %195 = sbr.rel (%p192_p9) target bundleno = 189 (0xbd), region = 69  ;;  %s422_s4 = sshll.u32 (!%p192_p9), %s198_s28, 4 }
  0x1c   : > { %s200_s7 = scalar_lea.vmem (!%p192_p9), [#allocation2], %s422_s4  ;;  %s423_s22 = sshll.u32 (!%p192_p9), %s198_s28, 5 }
  0x1d   : > { %s219_s23 = scalar_lea.vmem (!%p192_p9), [#allocation3], %s423_s22 }
  0x20   : > { %v231_v4 = vld [vmem:[%s604_s2 + $0x10] sm:$0xff]  ;;  %v503_v5 = vmov 0   ;;  %v229_v6 = vld [vmem:[%s604_s2] sm:$0xff]  ;;  %v449_v7 = vld [vmem:[%s200_s7 + $0x8] sm:$0xff]  ;;  %vm275_vm0 = vcmask 261120   ;;  %s443_s24 = sshll.u32 (%p554_p5), %s415_s15, 3 }
  0x21   : > { %478 = vset.pattern.permute.xlu1 %v503_v5  ;;  %477 = vset.pattern.permute.xlu0 %v503_v5  ;;  %v448_v8 = vld [vmem:[%s200_s7] sm:$0xff]  ;;  %v232_v9 = vld [vmem:[%s604_s2 + $0x18] sm:$0xff]  ;;  %v230_v10 = vld [vmem:[%s604_s2 + $0x8] sm:$0xff]  ;;  %s313_s27 = scalar_lea.vmem (%p554_p5), %s605_s3, %s443_s24 }
  0x22   : > { %245 = vperm.xlu1 %478, %v231_v4   ;;  %235 = vperm.xlu0 %477, %v229_v6   ;;  %v446_v11 = vld [vmem:[%s603_s1] sm:$0xff]  ;;  %v447_v12 = vld [vmem:[%s603_s1 + $0x8] sm:$0xff] }
  0x23   : > { %288 = vmatpush.bf16.msra.mxu0 %v449_v7  ;;  %450 = vmatpush.bf16.msra.mxu1 %v449_v7 }
  0x27   : > { %289 = vmatpush.bf16.msra.mxu0 %v448_v8  ;;  %451 = vmatpush.bf16.msra.mxu1 %v448_v8 }
  0x2a   : > { %250 = vperm.xlu1 %478, %v232_v9   ;;  %240 = vperm.xlu0 %477, %v230_v10  }
  0x2b   : > { %440 = vmatmul.msk.bf16.vlgmr.msra.gmra.mxu0 %vm275_vm0, %v446_v11  ;;  %441 = vmatmul.msk.bf16.vlgmr.msra.gmra.mxu1 %vm275_vm0, %v447_v12 }
  0x94   : > { %v246_v13 = vpop.permute.xlu1 %245  ;;  %v236_v14 = vpop.permute.xlu0 %235 }
  0x9c   : > { %v251_v19 = vpop.permute.xlu1 %250  ;;  %v241_v20 = vpop.permute.xlu0 %240 }
  0xa8   : > { %v291_v15 = vpop.f32.mrf.mxu0  ;;  %v296_v16 = vpop.f32.mrf.mxu1 }
  0xa9   : > { %v292_v17 = vadd.f32 %v291_v15, %v236_v14  ;;  %v297_v18 = vadd.f32 %v296_v16, %v246_v13 }
  0xab   : > { %301 = vst [vmem:[%s219_s23] sm:$0xff] %v292_v17 }
  0xac   : > { %303 = vst [vmem:[%s219_s23 + $0x10] sm:$0xff] %v297_v18 }
  0xb0   : > { %v293_v21 = vpop.f32.mrf.mxu0  ;;  %v298_v22 = vpop.f32.mrf.mxu1  ;;  %311 = sbr.rel (!%p554_p5) target bundleno = 189 (0xbd), region = 77 }
  0xb1   : > { %v294_v23 = vadd.f32 %v293_v21, %v241_v20  ;;  %v299_v24 = vadd.f32 %v298_v22, %v251_v19 }
  0xb2   : > { %v348_v25 = vld [vmem:[%s219_s23] sm:$0xff] (%p554_p5) }
  0xb3   : > { %302 = vst [vmem:[%s219_s23 + $0x8] sm:$0xff] %v294_v23  ;;  %v352_v27 = vld [vmem:[%s219_s23 + $0x10] sm:$0xff] (%p554_p5) }
  0xb4   : > { %304 = vst [vmem:[%s219_s23 + $0x18] sm:$0xff] %v299_v24 }
  0xb5   : > { %349 = vst [vmem:[%s313_s27] sm:$0xff] %v348_v25 }
  0xb6   : > { %353 = vst [vmem:[%s313_s27 + $0x20] sm:$0xff] %v352_v27 }
  0xba   : > { %v350_v26 = vld [vmem:[%s219_s23 + $0x8] sm:$0xff] }
  0xbb   : > { %v354_v28 = vld [vmem:[%s219_s23 + $0x18] sm:$0xff]  ;;  %351 = vst [vmem:[%s313_s27 + $0x10] sm:$0xff] %v350_v26 }
  0xbc   : > { %355 = vst [vmem:[%s313_s27 + $0x30] sm:$0xff] %v354_v28 }
  0xbd PF: > { %p10_p10 = scmp.ge.s32.totalorder %s541_s16, 4   ;;  %s607_s12 = smov %s497_s13 }
  0xbe   : > { %s608_s13 = smov %s552_s19  ;;  %s609_s14 = smov %s541_s16 }
  0xbf   :  { %12 = sbr.rel (!%p10_p10) target bundleno = 2 (0x2), region = 146 }

</bundles_post_ra>
